<compile_context>
chip_gen: v5e
topology: v5e:2x2
jax: 0.10.0
libtpu: 0.0.40
codegen_flags: <defaults>
</compile_context>

<pallas_src>
import functools
import math

import jax
import jax.numpy as jnp
from jax.experimental import pallas as pl
from jax.experimental.pallas import tpu as pltpu

# ----- small synthetic BERT config -----------------------------------------
VOCAB = 128
HIDDEN = 32
NUM_HEADS = 4
HEAD_DIM = HIDDEN // NUM_HEADS
INTER = 64
NUM_LAYERS = 2
MAX_POS = 64
NUM_CLASSES = 3
LN_EPS = 1e-12

# Row indices inside the packed per-layer vector slab (L, 6, HIDDEN).
_BO, _LN1G, _LN1B, _BF, _LN2G, _LN2B = range(6)


def _layernorm(x, g, b):
    mu = jnp.mean(x, axis=-1, keepdims=True)
    var = jnp.mean(jnp.square(x - mu), axis=-1, keepdims=True)
    return (x - mu) * jax.lax.rsqrt(var + LN_EPS) * g + b


def _softmax_lastdim(s):
    # exp + row-sum + multiply by approx reciprocal (EUP) instead of a VALU divide.
    m = jnp.max(s, axis=-1, keepdims=True)
    p = jnp.exp(s - m)
    return p * pl.reciprocal(jnp.sum(p, axis=-1, keepdims=True), approx=True)


# ----- fused Pallas kernel ---------------------------------------------------
def bert_fused_kernel(x_ref, mask_ref, embln_ref,
                      wqkv_ref, bqkv_ref, wo_ref, lvec_ref,
                      wi_ref, bi_ref, wf_ref,
                      wp_ref, bp_ref, wc_ref, bc_ref,
                      o_ref, *, batch, seq):
    """Whole BERT forward: embeddings LN -> L encoder layers -> pooler -> classifier.

    Activations stay resident on-chip for the whole pass; only the
    (B, NUM_CLASSES) logits are written back to HBM.  Residual stream stays
    f32; matmul operands are cast to bf16 (f32 accumulation on the MXU).
    """
    bs = batch * seq
    scale = 1.0 / math.sqrt(HEAD_DIM)

    embln = embln_ref[...]                                         # (2, H) f32
    x = _layernorm(x_ref[...], embln[0:1, :], embln[1:2, :])       # (B*S, H) f32

    # HF-style additive attention-mask bias, computed once (hoisted out of the
    # layer loop) directly from the raw (B, S) mask.
    bias = ((1.0 - mask_ref[...]) * -10000.0).reshape(batch, 1, seq)   # (B, 1, S)

    # NUM_LAYERS == 2, NUM_HEADS == 4: static unroll keeps full scheduler
    # visibility and lets packed weights be indexed with static indices only.
    for l in range(NUM_LAYERS):
        w_l = wqkv_ref[l]          # (3*NH, H, HD)  bf16   [index = 3*h + {q,k,v}]
        b_l = bqkv_ref[l]          # (3*NH, 1, HD)  f32
        wo_l = wo_ref[l]           # (NH, HD, H)    bf16
        lv = lvec_ref[l]           # (6, H)         f32

        xb = x.astype(jnp.bfloat16)                                # (B*S, H)

        attn = None
        for h in range(NUM_HEADS):
            # Per-head projections: plain 2-D MXU matmuls, no lane slicing.
            q = (jnp.dot(xb, w_l[3 * h + 0], preferred_element_type=jnp.float32)
                 + b_l[3 * h + 0]).reshape(batch, seq, HEAD_DIM)
            k = (jnp.dot(xb, w_l[3 * h + 1], preferred_element_type=jnp.float32)
                 + b_l[3 * h + 1]).reshape(batch, seq, HEAD_DIM)
            v = (jnp.dot(xb, w_l[3 * h + 2], preferred_element_type=jnp.float32)
                 + b_l[3 * h + 2]).reshape(batch, seq, HEAD_DIM)

            # Batched (over batch only) QK^T, softmax, PV — known-good 3-D forms.
            s = jnp.einsum('bqd,bkd->bqk',
                           q.astype(jnp.bfloat16), k.astype(jnp.bfloat16),
                           preferred_element_type=jnp.float32) * scale + bias
            p = _softmax_lastdim(s)                                # f32
            ctx = jnp.einsum('bqk,bkd->bqd',
                             p.astype(jnp.bfloat16), v.astype(jnp.bfloat16),
                             preferred_element_type=jnp.float32)   # (B, S, HD)

            # Per-head output projection accumulated directly into the hidden
            # basis: mathematically identical to concat-heads @ W_o, but with
            # no lane-concat / relayout.
            o_h = jnp.dot(ctx.reshape(bs, HEAD_DIM).astype(jnp.bfloat16), wo_l[h],
                          preferred_element_type=jnp.float32)      # (B*S, H)
            attn = o_h if attn is None else attn + o_h
        attn = attn + lv[_BO:_BO + 1, :]

        h1 = _layernorm(attn + x, lv[_LN1G:_LN1G + 1, :], lv[_LN1B:_LN1B + 1, :])

        # TODO(synk): HF BERT uses exact erf-GELU; tanh approximation used for TPU lowering.
        inter = jax.nn.gelu(
            jnp.dot(h1.astype(jnp.bfloat16), wi_ref[l],
                    preferred_element_type=jnp.float32) + bi_ref[l],
            approximate=True)
        ffn = (jnp.dot(inter.astype(jnp.bfloat16), wf_ref[l],
                       preferred_element_type=jnp.float32)
               + lv[_BF:_BF + 1, :])
        x = _layernorm(ffn + h1, lv[_LN2G:_LN2G + 1, :], lv[_LN2B:_LN2B + 1, :])

    # Pooler + classifier folded into the same kernel ([CLS] = token 0 of each batch row).
    cls_tok = x.reshape(batch, seq, HIDDEN)[:, 0, :]               # (B, H)
    pooled = jnp.tanh(
        jnp.dot(cls_tok.astype(jnp.bfloat16), wp_ref[...],
                preferred_element_type=jnp.float32) + bp_ref[...])
    # dropout(p=0) is the identity.  (B, 3) output is lane-sparse but negligible here.
    o_ref[...] = (jnp.dot(pooled.astype(jnp.bfloat16), wc_ref[...],
                          preferred_element_type=jnp.float32) + bc_ref[...])


# ----- wrapper ---------------------------------------------------------------
def bert_for_task_forward(params, input_ids, attention_mask):
    """Equivalent of BertForTask.forward with task='classification' (one pallas_call)."""
    B, S = input_ids.shape

    # Embedding lookups (gathers) are glue, done in plain JAX.
    emb = (params['word_emb'][input_ids]
           + params['pos_emb'][jnp.arange(S)][None, :, :]
           + params['type_emb'][0][None, None, :]).astype(jnp.float32)  # token_type_ids == 0
    x0 = emb.reshape(B * S, HIDDEN)
    mask = attention_mask.astype(jnp.float32)                            # (B, S)

    pk = params['packed']
    inputs = [x0, mask, pk['embln'],
              pk['wqkv'], pk['bqkv'], pk['wo'], pk['lvec'],
              pk['wi'], pk['bi'], pk['wf'],
              pk['wp'], pk['bp'], pk['wc'], pk['bc']]

    # Single grid step; every operand is a full-array VMEM block (total weights
    # + activations << 1 MiB, fits the default scoped VMEM on v5e/v6e/v7x).
    in_specs = [pl.BlockSpec(a.shape, lambda i, _n=a.ndim: (0,) * _n) for a in inputs]

    kernel = functools.partial(bert_fused_kernel, batch=B, seq=S)
    return pl.pallas_call(
        kernel,
        grid=(1,),
        in_specs=in_specs,
        out_specs=pl.BlockSpec((B, NUM_CLASSES), lambda i: (0, 0)),
        out_shape=jax.ShapeDtypeStruct((B, NUM_CLASSES), jnp.float32),
        compiler_params=pltpu.CompilerParams(dimension_semantics=("arbitrary",)),
    )(*inputs)


# ----- deterministic synthetic parameters + kernel-side packing --------------
def _split_heads_w(w):
    # (H_in, H_out) with out column j = h*HD + d  ->  (NH, H_in, HD)
    return jnp.transpose(w.reshape(HIDDEN, NUM_HEADS, HEAD_DIM), (1, 0, 2))


def _split_heads_b(b):
    # (1, H) -> (NH, 1, HD)
    return b.reshape(NUM_HEADS, 1, HEAD_DIM)


def _pack_params(p):
    L = p['layers']

    def per_layer_wqkv(lp):
        wq, wk, wv = (_split_heads_w(lp[k]) for k in ('wq', 'wk', 'wv'))   # (NH,H,HD) each
        return jnp.stack([wq, wk, wv], axis=1).reshape(3 * NUM_HEADS, HIDDEN, HEAD_DIM)

    def per_layer_bqkv(lp):
        bq, bk, bv = (_split_heads_b(lp[k]) for k in ('bq', 'bk', 'bv'))   # (NH,1,HD) each
        return jnp.stack([bq, bk, bv], axis=1).reshape(3 * NUM_HEADS, 1, HEAD_DIM)

    return {
        'embln': jnp.concatenate([p['emb_ln_g'], p['emb_ln_b']], axis=0),        # (2, H)
        'wqkv': jnp.stack([per_layer_wqkv(lp) for lp in L]).astype(jnp.bfloat16),  # (L,3NH,H,HD)
        'bqkv': jnp.stack([per_layer_bqkv(lp) for lp in L]),                       # (L,3NH,1,HD)
        'wo': jnp.stack([lp['wo'].reshape(NUM_HEADS, HEAD_DIM, HIDDEN)
                         for lp in L]).astype(jnp.bfloat16),                       # (L,NH,HD,H)
        'lvec': jnp.stack([jnp.concatenate([lp['bo'], lp['ln1_g'], lp['ln1_b'],
                                            lp['bf'], lp['ln2_g'], lp['ln2_b']],
                                           axis=0) for lp in L]),                  # (L,6,H)
        'wi': jnp.stack([lp['wi'] for lp in L]).astype(jnp.bfloat16),              # (L,H,INTER)
        'bi': jnp.stack([lp['bi'] for lp in L]),                                   # (L,1,INTER)
        'wf': jnp.stack([lp['wf'] for lp in L]).astype(jnp.bfloat16),              # (L,INTER,H)
        'wp': p['pooler_w'].astype(jnp.bfloat16),
        'bp': p['pooler_b'],
        'wc': p['cls_w'].astype(jnp.bfloat16),
        'bc': p['cls_b'],
    }


def init_params(key):
    def nrm(k, shape):
        return jax.random.normal(k, shape, jnp.float32) * 0.02

    keys = iter(jax.random.split(key, 128))
    p = {
        'word_emb': nrm(next(keys), (VOCAB, HIDDEN)),
        'pos_emb': nrm(next(keys), (MAX_POS, HIDDEN)),
        'type_emb': nrm(next(keys), (2, HIDDEN)),
        'emb_ln_g': 1.0 + nrm(next(keys), (1, HIDDEN)),
        'emb_ln_b': nrm(next(keys), (1, HIDDEN)),
        'pooler_w': nrm(next(keys), (HIDDEN, HIDDEN)),
        'pooler_b': nrm(next(keys), (1, HIDDEN)),
        'cls_w': nrm(next(keys), (HIDDEN, NUM_CLASSES)),
        'cls_b': nrm(next(keys), (1, NUM_CLASSES)),
        'layers': [],
    }
    for _ in range(NUM_LAYERS):
        lp = {
            'wq': nrm(next(keys), (HIDDEN, HIDDEN)), 'bq': nrm(next(keys), (1, HIDDEN)),
            'wk': nrm(next(keys), (HIDDEN, HIDDEN)), 'bk': nrm(next(keys), (1, HIDDEN)),
            'wv': nrm(next(keys), (HIDDEN, HIDDEN)), 'bv': nrm(next(keys), (1, HIDDEN)),
            'wo': nrm(next(keys), (HIDDEN, HIDDEN)), 'bo': nrm(next(keys), (1, HIDDEN)),
            'ln1_g': 1.0 + nrm(next(keys), (1, HIDDEN)), 'ln1_b': nrm(next(keys), (1, HIDDEN)),
            'wi': nrm(next(keys), (HIDDEN, INTER)), 'bi': nrm(next(keys), (1, INTER)),
            'wf': nrm(next(keys), (INTER, HIDDEN)), 'bf': nrm(next(keys), (1, HIDDEN)),
            'ln2_g': 1.0 + nrm(next(keys), (1, HIDDEN)), 'ln2_b': nrm(next(keys), (1, HIDDEN)),
        }
        p['layers'].append(lp)

    # Per-head-split, bf16-cast, operand-packed weights for the fused kernel.
    p['packed'] = _pack_params(p)
    return p


# ----- plain-JAX reference (for a correctness smoke test) --------------------
def bert_reference(params, input_ids, attention_mask):
    B, S = input_ids.shape
    emb = (params['word_emb'][input_ids]
           + params['pos_emb'][jnp.arange(S)][None, :, :]
           + params['type_emb'][0][None, None, :]).astype(jnp.float32)
    h = _layernorm(emb, params['emb_ln_g'], params['emb_ln_b'])
    bias = ((1.0 - attention_mask.astype(jnp.float32)) * -10000.0)[:, None, None, :]
    for lp in params['layers']:
        q = h @ lp['wq'] + lp['bq']
        k = h @ lp['wk'] + lp['bk']
        v = h @ lp['wv'] + lp['bv']

        def split(t):
            return t.reshape(B, S, NUM_HEADS, HEAD_DIM).transpose(0, 2, 1, 3)

        qh, kh, vh = split(q), split(k), split(v)
        s = jnp.einsum('bhqd,bhkd->bhqk', qh, kh) / math.sqrt(HEAD_DIM) + bias
        p_ = jax.nn.softmax(s, axis=-1)
        ctx = jnp.einsum('bhqk,bhkd->bhqd', p_, vh).transpose(0, 2, 1, 3).reshape(B, S, HIDDEN)
        attn = ctx @ lp['wo'] + lp['bo']
        h1 = _layernorm(attn + h, lp['ln1_g'], lp['ln1_b'])
        inter = jax.nn.gelu(h1 @ lp['wi'] + lp['bi'], approximate=True)
        h = _layernorm(inter @ lp['wf'] + lp['bf'] + h1, lp['ln2_g'], lp['ln2_b'])
    cls_tok = h[:, 0, :]
    pooled = jnp.tanh(cls_tok @ params['pooler_w'] + params['pooler_b'])
    return pooled @ params['cls_w'] + params['cls_b']


if __name__ == "__main__":
    key = jax.random.PRNGKey(0)
    kp, kids = jax.random.split(key)
    params = init_params(kp)

    B, S = 2, 8
    input_ids = jax.random.randint(kids, (B, S), 0, VOCAB, dtype=jnp.int32)
    attention_mask = jnp.array([[1, 1, 1, 1, 1, 1, 1, 1],
                                [1, 1, 1, 1, 1, 1, 0, 0]], dtype=jnp.int32)

    logits = bert_for_task_forward(params, input_ids, attention_mask)
    jax.block_until_ready(logits)
    assert logits.shape == (B, NUM_CLASSES)

    with jax.default_matmul_precision("highest"):
        ref = bert_reference(params, input_ids, attention_mask)
    # bf16 MXU operands with f32 accumulation; tolerance sized accordingly.
    assert jnp.allclose(logits, ref, atol=5e-3, rtol=5e-2), (logits, ref)

    print("KERNEL_OK")
</pallas_src>

<mosaic_0001>
module attributes {stable_mosaic.version = 11 : i64} {
  func.func @bert_fused_kernel(%arg0: i32, %arg1: memref<16x32xf32, #tpu.memory_space<vmem>>, %arg2: memref<2x8xf32, #tpu.memory_space<vmem>>, %arg3: memref<2x32xf32, #tpu.memory_space<vmem>>, %arg4: memref<2x12x32x8xbf16, #tpu.memory_space<vmem>>, %arg5: memref<2x12x1x8xf32, #tpu.memory_space<vmem>>, %arg6: memref<2x4x8x32xbf16, #tpu.memory_space<vmem>>, %arg7: memref<2x6x32xf32, #tpu.memory_space<vmem>>, %arg8: memref<2x32x64xbf16, #tpu.memory_space<vmem>>, %arg9: memref<2x1x64xf32, #tpu.memory_space<vmem>>, %arg10: memref<2x64x32xbf16, #tpu.memory_space<vmem>>, %arg11: memref<32x32xbf16, #tpu.memory_space<vmem>>, %arg12: memref<1x32xf32, #tpu.memory_space<vmem>>, %arg13: memref<32x3xbf16, #tpu.memory_space<vmem>>, %arg14: memref<1x3xf32, #tpu.memory_space<vmem>>, %arg15: memref<2x3xf32, #tpu.memory_space<vmem>>) attributes {dimension_semantics = [#tpu.dimension_semantics<arbitrary>], iteration_bounds = array<i64: 1>, scalar_prefetch = 0 : i64, scratch_operands = 0 : i64, tpu.core_type = #tpu.core_type<tc>, window_params = [{pipeline_mode = #tpu.pipeline_mode<synchronous>, transform_indices = @transform_0, window_bounds = array<i64: 16, 32>}, {pipeline_mode = #tpu.pipeline_mode<synchronous>, transform_indices = @transform_1, window_bounds = array<i64: 2, 8>}, {pipeline_mode = #tpu.pipeline_mode<synchronous>, transform_indices = @transform_2, window_bounds = array<i64: 2, 32>}, {pipeline_mode = #tpu.pipeline_mode<synchronous>, transform_indices = @transform_3, window_bounds = array<i64: 2, 12, 32, 8>}, {pipeline_mode = #tpu.pipeline_mode<synchronous>, transform_indices = @transform_4, window_bounds = array<i64: 2, 12, 1, 8>}, {pipeline_mode = #tpu.pipeline_mode<synchronous>, transform_indices = @transform_5, window_bounds = array<i64: 2, 4, 8, 32>}, {pipeline_mode = #tpu.pipeline_mode<synchronous>, transform_indices = @transform_6, window_bounds = array<i64: 2, 6, 32>}, {pipeline_mode = #tpu.pipeline_mode<synchronous>, transform_indices = @transform_7, window_bounds = array<i64: 2, 32, 64>}, {pipeline_mode = #tpu.pipeline_mode<synchronous>, transform_indices = @transform_8, window_bounds = array<i64: 2, 1, 64>}, {pipeline_mode = #tpu.pipeline_mode<synchronous>, transform_indices = @transform_9, window_bounds = array<i64: 2, 64, 32>}, {pipeline_mode = #tpu.pipeline_mode<synchronous>, transform_indices = @transform_10, window_bounds = array<i64: 32, 32>}, {pipeline_mode = #tpu.pipeline_mode<synchronous>, transform_indices = @transform_11, window_bounds = array<i64: 1, 32>}, {pipeline_mode = #tpu.pipeline_mode<synchronous>, transform_indices = @transform_12, window_bounds = array<i64: 32, 3>}, {pipeline_mode = #tpu.pipeline_mode<synchronous>, transform_indices = @transform_13, window_bounds = array<i64: 1, 3>}, {pipeline_mode = #tpu.pipeline_mode<synchronous>, transform_indices = @transform_14, window_bounds = array<i64: 2, 3>}]} {
    %c0 = arith.constant 0 : index
    %c0_0 = arith.constant 0 : index
    %0 = vector.load %arg3[%c0, %c0_0] : memref<2x32xf32, #tpu.memory_space<vmem>>, vector<2x32xf32>
    %c0_1 = arith.constant 0 : index
    %c0_2 = arith.constant 0 : index
    %1 = vector.load %arg1[%c0_1, %c0_2] : memref<16x32xf32, #tpu.memory_space<vmem>>, vector<16x32xf32>
    %2 = vector.extract_strided_slice %0 {offsets = [0, 0], sizes = [1, 32], strides = [1, 1]} : vector<2x32xf32> to vector<1x32xf32>
    %3 = vector.extract_strided_slice %0 {offsets = [1, 0], sizes = [1, 32], strides = [1, 1]} : vector<2x32xf32> to vector<1x32xf32>
    %cst = arith.constant dense<0.000000e+00> : vector<16xf32>
    %4 = vector.multi_reduction <add>, %1, %cst [1] : vector<16x32xf32> to vector<16xf32>
    %5 = vector.shape_cast %4 : vector<16xf32> to vector<16x1xf32>
    %cst_3 = arith.constant 3.200000e+01 : f32
    %6 = vector.broadcast %cst_3 : f32 to vector<16x1xf32>
    %7 = arith.divf %5, %6 : vector<16x1xf32>
    %8 = vector.broadcast %7 : vector<16x1xf32> to vector<16x32xf32>
    %9 = arith.subf %1, %8 : vector<16x32xf32>
    %10 = arith.mulf %9, %9 : vector<16x32xf32>
    %cst_4 = arith.constant dense<0.000000e+00> : vector<16xf32>
    %11 = vector.multi_reduction <add>, %10, %cst_4 [1] : vector<16x32xf32> to vector<16xf32>
    %12 = vector.shape_cast %11 : vector<16xf32> to vector<16x1xf32>
    %cst_5 = arith.constant 3.200000e+01 : f32
    %13 = vector.broadcast %cst_5 : f32 to vector<16x1xf32>
    %14 = arith.divf %12, %13 : vector<16x1xf32>
    %15 = vector.broadcast %7 : vector<16x1xf32> to vector<16x32xf32>
    %16 = arith.subf %1, %15 : vector<16x32xf32>
    %cst_6 = arith.constant 9.99999996E-13 : f32
    %17 = vector.broadcast %cst_6 : f32 to vector<16x1xf32>
    %18 = arith.addf %14, %17 : vector<16x1xf32>
    %19 = math.rsqrt %18 : vector<16x1xf32>
    %20 = vector.broadcast %19 : vector<16x1xf32> to vector<16x32xf32>
    %21 = arith.mulf %16, %20 : vector<16x32xf32>
    %22 = vector.broadcast %2 : vector<1x32xf32> to vector<16x32xf32>
    %23 = arith.mulf %21, %22 : vector<16x32xf32>
    %24 = vector.broadcast %3 : vector<1x32xf32> to vector<16x32xf32>
    %25 = arith.addf %23, %24 : vector<16x32xf32>
    %c0_7 = arith.constant 0 : index
    %c0_8 = arith.constant 0 : index
    %26 = vector.load %arg2[%c0_7, %c0_8] : memref<2x8xf32, #tpu.memory_space<vmem>>, vector<2x8xf32>
    %cst_9 = arith.constant 1.000000e+00 : f32
    %27 = vector.broadcast %cst_9 : f32 to vector<2x8xf32>
    %28 = arith.subf %27, %26 : vector<2x8xf32>
    %cst_10 = arith.constant -1.000000e+04 : f32
    %29 = vector.broadcast %cst_10 : f32 to vector<2x8xf32>
    %30 = arith.mulf %28, %29 : vector<2x8xf32>
    %31 = vector.shape_cast %30 : vector<2x8xf32> to vector<2x1x8xf32>
    %c0_11 = arith.constant 0 : index
    %c0_12 = arith.constant 0 : index
    %c0_13 = arith.constant 0 : index
    %c0_14 = arith.constant 0 : index
    %32 = vector.load %arg4[%c0_11, %c0_12, %c0_13, %c0_14] : memref<2x12x32x8xbf16, #tpu.memory_space<vmem>>, vector<1x12x32x8xbf16>
    %33 = vector.shape_cast %32 : vector<1x12x32x8xbf16> to vector<12x32x8xbf16>
    %c0_15 = arith.constant 0 : index
    %c0_16 = arith.constant 0 : index
    %c0_17 = arith.constant 0 : index
    %c0_18 = arith.constant 0 : index
    %34 = vector.load %arg5[%c0_15, %c0_16, %c0_17, %c0_18] : memref<2x12x1x8xf32, #tpu.memory_space<vmem>>, vector<1x12x1x8xf32>
    %35 = vector.shape_cast %34 : vector<1x12x1x8xf32> to vector<12x1x8xf32>
    %c0_19 = arith.constant 0 : index
    %c0_20 = arith.constant 0 : index
    %c0_21 = arith.constant 0 : index
    %c0_22 = arith.constant 0 : index
    %36 = vector.load %arg6[%c0_19, %c0_20, %c0_21, %c0_22] : memref<2x4x8x32xbf16, #tpu.memory_space<vmem>>, vector<1x4x8x32xbf16>
    %37 = vector.shape_cast %36 : vector<1x4x8x32xbf16> to vector<4x8x32xbf16>
    %c0_23 = arith.constant 0 : index
    %c0_24 = arith.constant 0 : index
    %c0_25 = arith.constant 0 : index
    %38 = vector.load %arg7[%c0_23, %c0_24, %c0_25] : memref<2x6x32xf32, #tpu.memory_space<vmem>>, vector<1x6x32xf32>
    %39 = vector.shape_cast %38 : vector<1x6x32xf32> to vector<6x32xf32>
    %40 = arith.truncf %25 : vector<16x32xf32> to vector<16x32xbf16>
    %41 = vector.extract_strided_slice %33 {offsets = [0, 0, 0], sizes = [1, 32, 8], strides = [1, 1, 1]} : vector<12x32x8xbf16> to vector<1x32x8xbf16>
    %42 = vector.shape_cast %41 : vector<1x32x8xbf16> to vector<32x8xbf16>
    %cst_26 = arith.constant dense<0.000000e+00> : vector<16x8xf32>
    %43 = tpu.matmul %40, %42, %cst_26 {dimension_numbers = #tpu.dot_dimension_numbers<[1], [0], [0], [1], [0, 0, 1, 1], [], []>} : vector<16x32xbf16>, vector<32x8xbf16>, vector<16x8xf32> -> vector<16x8xf32>
    %44 = vector.extract_strided_slice %35 {offsets = [0, 0, 0], sizes = [1, 1, 8], strides = [1, 1, 1]} : vector<12x1x8xf32> to vector<1x1x8xf32>
    %45 = vector.shape_cast %44 : vector<1x1x8xf32> to vector<1x8xf32>
    %46 = vector.broadcast %45 : vector<1x8xf32> to vector<16x8xf32>
    %47 = arith.addf %43, %46 : vector<16x8xf32>
    %48 = vector.shape_cast %47 : vector<16x8xf32> to vector<2x8x8xf32>
    %49 = vector.extract_strided_slice %33 {offsets = [1, 0, 0], sizes = [1, 32, 8], strides = [1, 1, 1]} : vector<12x32x8xbf16> to vector<1x32x8xbf16>
    %50 = vector.shape_cast %49 : vector<1x32x8xbf16> to vector<32x8xbf16>
    %cst_27 = arith.constant dense<0.000000e+00> : vector<16x8xf32>
    %51 = tpu.matmul %40, %50, %cst_27 {dimension_numbers = #tpu.dot_dimension_numbers<[1], [0], [0], [1], [0, 0, 1, 1], [], []>} : vector<16x32xbf16>, vector<32x8xbf16>, vector<16x8xf32> -> vector<16x8xf32>
    %52 = vector.extract_strided_slice %35 {offsets = [1, 0, 0], sizes = [1, 1, 8], strides = [1, 1, 1]} : vector<12x1x8xf32> to vector<1x1x8xf32>
    %53 = vector.shape_cast %52 : vector<1x1x8xf32> to vector<1x8xf32>
    %54 = vector.broadcast %53 : vector<1x8xf32> to vector<16x8xf32>
    %55 = arith.addf %51, %54 : vector<16x8xf32>
    %56 = vector.shape_cast %55 : vector<16x8xf32> to vector<2x8x8xf32>
    %57 = vector.extract_strided_slice %33 {offsets = [2, 0, 0], sizes = [1, 32, 8], strides = [1, 1, 1]} : vector<12x32x8xbf16> to vector<1x32x8xbf16>
    %58 = vector.shape_cast %57 : vector<1x32x8xbf16> to vector<32x8xbf16>
    %cst_28 = arith.constant dense<0.000000e+00> : vector<16x8xf32>
    %59 = tpu.matmul %40, %58, %cst_28 {dimension_numbers = #tpu.dot_dimension_numbers<[1], [0], [0], [1], [0, 0, 1, 1], [], []>} : vector<16x32xbf16>, vector<32x8xbf16>, vector<16x8xf32> -> vector<16x8xf32>
    %60 = vector.extract_strided_slice %35 {offsets = [2, 0, 0], sizes = [1, 1, 8], strides = [1, 1, 1]} : vector<12x1x8xf32> to vector<1x1x8xf32>
    %61 = vector.shape_cast %60 : vector<1x1x8xf32> to vector<1x8xf32>
    %62 = vector.broadcast %61 : vector<1x8xf32> to vector<16x8xf32>
    %63 = arith.addf %59, %62 : vector<16x8xf32>
    %64 = vector.shape_cast %63 : vector<16x8xf32> to vector<2x8x8xf32>
    %65 = arith.truncf %48 : vector<2x8x8xf32> to vector<2x8x8xbf16>
    %66 = arith.truncf %56 : vector<2x8x8xf32> to vector<2x8x8xbf16>
    "tpu.trace_start"() <{level = 10 : i32, message = "bqd,bkd->bqk"}> : () -> ()
    %cst_29 = arith.constant dense<0.000000e+00> : vector<2x8x8xf32>
    %67 = tpu.matmul %65, %66, %cst_29 {dimension_numbers = #tpu.dot_dimension_numbers<[2], [2], [1], [1], [0, 0, 0, 1, 1, 1], [0], [0]>} : vector<2x8x8xbf16>, vector<2x8x8xbf16>, vector<2x8x8xf32> -> vector<2x8x8xf32>
    "tpu.trace_stop"() : () -> ()
    %cst_30 = arith.constant 0.353553385 : f32
    %68 = vector.broadcast %cst_30 : f32 to vector<2x8x8xf32>
    %69 = arith.mulf %67, %68 : vector<2x8x8xf32>
    %70 = vector.broadcast %31 : vector<2x1x8xf32> to vector<2x8x8xf32>
    %71 = arith.addf %69, %70 : vector<2x8x8xf32>
    %cst_31 = arith.constant dense<0xFF800000> : vector<2x8xf32>
    %72 = vector.multi_reduction <maximumf>, %71, %cst_31 [2] : vector<2x8x8xf32> to vector<2x8xf32>
    %73 = vector.shape_cast %72 : vector<2x8xf32> to vector<2x8x1xf32>
    %74 = vector.broadcast %73 : vector<2x8x1xf32> to vector<2x8x8xf32>
    %75 = arith.subf %71, %74 : vector<2x8x8xf32>
    %76 = math.exp %75 : vector<2x8x8xf32>
    %cst_32 = arith.constant dense<0.000000e+00> : vector<2x8xf32>
    %77 = vector.multi_reduction <add>, %76, %cst_32 [2] : vector<2x8x8xf32> to vector<2x8xf32>
    %78 = vector.shape_cast %77 : vector<2x8xf32> to vector<2x8x1xf32>
    %79 = tpu.reciprocal %78 {approx = true} : vector<2x8x1xf32> -> vector<2x8x1xf32>
    %80 = vector.broadcast %79 : vector<2x8x1xf32> to vector<2x8x8xf32>
    %81 = arith.mulf %76, %80 : vector<2x8x8xf32>
    %82 = arith.truncf %81 : vector<2x8x8xf32> to vector<2x8x8xbf16>
    %83 = arith.truncf %64 : vector<2x8x8xf32> to vector<2x8x8xbf16>
    "tpu.trace_start"() <{level = 10 : i32, message = "bqk,bkd->bqd"}> : () -> ()
    %cst_33 = arith.constant dense<0.000000e+00> : vector<2x8x8xf32>
    %84 = tpu.matmul %82, %83, %cst_33 {dimension_numbers = #tpu.dot_dimension_numbers<[2], [1], [1], [2], [0, 0, 0, 1, 1, 2], [0], [0]>} : vector<2x8x8xbf16>, vector<2x8x8xbf16>, vector<2x8x8xf32> -> vector<2x8x8xf32>
    "tpu.trace_stop"() : () -> ()
    %85 = vector.shape_cast %84 : vector<2x8x8xf32> to vector<16x8xf32>
    %86 = arith.truncf %85 : vector<16x8xf32> to vector<16x8xbf16>
    %87 = vector.extract_strided_slice %37 {offsets = [0, 0, 0], sizes = [1, 8, 32], strides = [1, 1, 1]} : vector<4x8x32xbf16> to vector<1x8x32xbf16>
    %88 = vector.shape_cast %87 : vector<1x8x32xbf16> to vector<8x32xbf16>
    %cst_34 = arith.constant dense<0.000000e+00> : vector<16x32xf32>
    %89 = tpu.matmul %86, %88, %cst_34 {dimension_numbers = #tpu.dot_dimension_numbers<[1], [0], [0], [1], [0, 0, 1, 1], [], []>} : vector<16x8xbf16>, vector<8x32xbf16>, vector<16x32xf32> -> vector<16x32xf32>
    %90 = vector.extract_strided_slice %33 {offsets = [3, 0, 0], sizes = [1, 32, 8], strides = [1, 1, 1]} : vector<12x32x8xbf16> to vector<1x32x8xbf16>
    %91 = vector.shape_cast %90 : vector<1x32x8xbf16> to vector<32x8xbf16>
    %cst_35 = arith.constant dense<0.000000e+00> : vector<16x8xf32>
    %92 = tpu.matmul %40, %91, %cst_35 {dimension_numbers = #tpu.dot_dimension_numbers<[1], [0], [0], [1], [0, 0, 1, 1], [], []>} : vector<16x32xbf16>, vector<32x8xbf16>, vector<16x8xf32> -> vector<16x8xf32>
    %93 = vector.extract_strided_slice %35 {offsets = [3, 0, 0], sizes = [1, 1, 8], strides = [1, 1, 1]} : vector<12x1x8xf32> to vector<1x1x8xf32>
    %94 = vector.shape_cast %93 : vector<1x1x8xf32> to vector<1x8xf32>
    %95 = vector.broadcast %94 : vector<1x8xf32> to vector<16x8xf32>
    %96 = arith.addf %92, %95 : vector<16x8xf32>
    %97 = vector.shape_cast %96 : vector<16x8xf32> to vector<2x8x8xf32>
    %98 = vector.extract_strided_slice %33 {offsets = [4, 0, 0], sizes = [1, 32, 8], strides = [1, 1, 1]} : vector<12x32x8xbf16> to vector<1x32x8xbf16>
    %99 = vector.shape_cast %98 : vector<1x32x8xbf16> to vector<32x8xbf16>
    %cst_36 = arith.constant dense<0.000000e+00> : vector<16x8xf32>
    %100 = tpu.matmul %40, %99, %cst_36 {dimension_numbers = #tpu.dot_dimension_numbers<[1], [0], [0], [1], [0, 0, 1, 1], [], []>} : vector<16x32xbf16>, vector<32x8xbf16>, vector<16x8xf32> -> vector<16x8xf32>
    %101 = vector.extract_strided_slice %35 {offsets = [4, 0, 0], sizes = [1, 1, 8], strides = [1, 1, 1]} : vector<12x1x8xf32> to vector<1x1x8xf32>
    %102 = vector.shape_cast %101 : vector<1x1x8xf32> to vector<1x8xf32>
    %103 = vector.broadcast %102 : vector<1x8xf32> to vector<16x8xf32>
    %104 = arith.addf %100, %103 : vector<16x8xf32>
    %105 = vector.shape_cast %104 : vector<16x8xf32> to vector<2x8x8xf32>
    %106 = vector.extract_strided_slice %33 {offsets = [5, 0, 0], sizes = [1, 32, 8], strides = [1, 1, 1]} : vector<12x32x8xbf16> to vector<1x32x8xbf16>
    %107 = vector.shape_cast %106 : vector<1x32x8xbf16> to vector<32x8xbf16>
    %cst_37 = arith.constant dense<0.000000e+00> : vector<16x8xf32>
    %108 = tpu.matmul %40, %107, %cst_37 {dimension_numbers = #tpu.dot_dimension_numbers<[1], [0], [0], [1], [0, 0, 1, 1], [], []>} : vector<16x32xbf16>, vector<32x8xbf16>, vector<16x8xf32> -> vector<16x8xf32>
    %109 = vector.extract_strided_slice %35 {offsets = [5, 0, 0], sizes = [1, 1, 8], strides = [1, 1, 1]} : vector<12x1x8xf32> to vector<1x1x8xf32>
    %110 = vector.shape_cast %109 : vector<1x1x8xf32> to vector<1x8xf32>
    %111 = vector.broadcast %110 : vector<1x8xf32> to vector<16x8xf32>
    %112 = arith.addf %108, %111 : vector<16x8xf32>
    %113 = vector.shape_cast %112 : vector<16x8xf32> to vector<2x8x8xf32>
    %114 = arith.truncf %97 : vector<2x8x8xf32> to vector<2x8x8xbf16>
    %115 = arith.truncf %105 : vector<2x8x8xf32> to vector<2x8x8xbf16>
    "tpu.trace_start"() <{level = 10 : i32, message = "bqd,bkd->bqk"}> : () -> ()
    %cst_38 = arith.constant dense<0.000000e+00> : vector<2x8x8xf32>
    %116 = tpu.matmul %114, %115, %cst_38 {dimension_numbers = #tpu.dot_dimension_numbers<[2], [2], [1], [1], [0, 0, 0, 1, 1, 1], [0], [0]>} : vector<2x8x8xbf16>, vector<2x8x8xbf16>, vector<2x8x8xf32> -> vector<2x8x8xf32>
    "tpu.trace_stop"() : () -> ()
    %cst_39 = arith.constant 0.353553385 : f32
    %117 = vector.broadcast %cst_39 : f32 to vector<2x8x8xf32>
    %118 = arith.mulf %116, %117 : vector<2x8x8xf32>
    %119 = vector.broadcast %31 : vector<2x1x8xf32> to vector<2x8x8xf32>
    %120 = arith.addf %118, %119 : vector<2x8x8xf32>
    %cst_40 = arith.constant dense<0xFF800000> : vector<2x8xf32>
    %121 = vector.multi_reduction <maximumf>, %120, %cst_40 [2] : vector<2x8x8xf32> to vector<2x8xf32>
    %122 = vector.shape_cast %121 : vector<2x8xf32> to vector<2x8x1xf32>
    %123 = vector.broadcast %122 : vector<2x8x1xf32> to vector<2x8x8xf32>
    %124 = arith.subf %120, %123 : vector<2x8x8xf32>
    %125 = math.exp %124 : vector<2x8x8xf32>
    %cst_41 = arith.constant dense<0.000000e+00> : vector<2x8xf32>
    %126 = vector.multi_reduction <add>, %125, %cst_41 [2] : vector<2x8x8xf32> to vector<2x8xf32>
    %127 = vector.shape_cast %126 : vector<2x8xf32> to vector<2x8x1xf32>
    %128 = tpu.reciprocal %127 {approx = true} : vector<2x8x1xf32> -> vector<2x8x1xf32>
    %129 = vector.broadcast %128 : vector<2x8x1xf32> to vector<2x8x8xf32>
    %130 = arith.mulf %125, %129 : vector<2x8x8xf32>
    %131 = arith.truncf %130 : vector<2x8x8xf32> to vector<2x8x8xbf16>
    %132 = arith.truncf %113 : vector<2x8x8xf32> to vector<2x8x8xbf16>
    "tpu.trace_start"() <{level = 10 : i32, message = "bqk,bkd->bqd"}> : () -> ()
    %cst_42 = arith.constant dense<0.000000e+00> : vector<2x8x8xf32>
    %133 = tpu.matmul %131, %132, %cst_42 {dimension_numbers = #tpu.dot_dimension_numbers<[2], [1], [1], [2], [0, 0, 0, 1, 1, 2], [0], [0]>} : vector<2x8x8xbf16>, vector<2x8x8xbf16>, vector<2x8x8xf32> -> vector<2x8x8xf32>
    "tpu.trace_stop"() : () -> ()
    %134 = vector.shape_cast %133 : vector<2x8x8xf32> to vector<16x8xf32>
    %135 = arith.truncf %134 : vector<16x8xf32> to vector<16x8xbf16>
    %136 = vector.extract_strided_slice %37 {offsets = [1, 0, 0], sizes = [1, 8, 32], strides = [1, 1, 1]} : vector<4x8x32xbf16> to vector<1x8x32xbf16>
    %137 = vector.shape_cast %136 : vector<1x8x32xbf16> to vector<8x32xbf16>
    %cst_43 = arith.constant dense<0.000000e+00> : vector<16x32xf32>
    %138 = tpu.matmul %135, %137, %cst_43 {dimension_numbers = #tpu.dot_dimension_numbers<[1], [0], [0], [1], [0, 0, 1, 1], [], []>} : vector<16x8xbf16>, vector<8x32xbf16>, vector<16x32xf32> -> vector<16x32xf32>
    %139 = arith.addf %89, %138 : vector<16x32xf32>
    %140 = vector.extract_strided_slice %33 {offsets = [6, 0, 0], sizes = [1, 32, 8], strides = [1, 1, 1]} : vector<12x32x8xbf16> to vector<1x32x8xbf16>
    %141 = vector.shape_cast %140 : vector<1x32x8xbf16> to vector<32x8xbf16>
    %cst_44 = arith.constant dense<0.000000e+00> : vector<16x8xf32>
    %142 = tpu.matmul %40, %141, %cst_44 {dimension_numbers = #tpu.dot_dimension_numbers<[1], [0], [0], [1], [0, 0, 1, 1], [], []>} : vector<16x32xbf16>, vector<32x8xbf16>, vector<16x8xf32> -> vector<16x8xf32>
    %143 = vector.extract_strided_slice %35 {offsets = [6, 0, 0], sizes = [1, 1, 8], strides = [1, 1, 1]} : vector<12x1x8xf32> to vector<1x1x8xf32>
    %144 = vector.shape_cast %143 : vector<1x1x8xf32> to vector<1x8xf32>
    %145 = vector.broadcast %144 : vector<1x8xf32> to vector<16x8xf32>
    %146 = arith.addf %142, %145 : vector<16x8xf32>
    %147 = vector.shape_cast %146 : vector<16x8xf32> to vector<2x8x8xf32>
    %148 = vector.extract_strided_slice %33 {offsets = [7, 0, 0], sizes = [1, 32, 8], strides = [1, 1, 1]} : vector<12x32x8xbf16> to vector<1x32x8xbf16>
    %149 = vector.shape_cast %148 : vector<1x32x8xbf16> to vector<32x8xbf16>
    %cst_45 = arith.constant dense<0.000000e+00> : vector<16x8xf32>
    %150 = tpu.matmul %40, %149, %cst_45 {dimension_numbers = #tpu.dot_dimension_numbers<[1], [0], [0], [1], [0, 0, 1, 1], [], []>} : vector<16x32xbf16>, vector<32x8xbf16>, vector<16x8xf32> -> vector<16x8xf32>
    %151 = vector.extract_strided_slice %35 {offsets = [7, 0, 0], sizes = [1, 1, 8], strides = [1, 1, 1]} : vector<12x1x8xf32> to vector<1x1x8xf32>
    %152 = vector.shape_cast %151 : vector<1x1x8xf32> to vector<1x8xf32>
    %153 = vector.broadcast %152 : vector<1x8xf32> to vector<16x8xf32>
    %154 = arith.addf %150, %153 : vector<16x8xf32>
    %155 = vector.shape_cast %154 : vector<16x8xf32> to vector<2x8x8xf32>
    %156 = vector.extract_strided_slice %33 {offsets = [8, 0, 0], sizes = [1, 32, 8], strides = [1, 1, 1]} : vector<12x32x8xbf16> to vector<1x32x8xbf16>
    %157 = vector.shape_cast %156 : vector<1x32x8xbf16> to vector<32x8xbf16>
    %cst_46 = arith.constant dense<0.000000e+00> : vector<16x8xf32>
    %158 = tpu.matmul %40, %157, %cst_46 {dimension_numbers = #tpu.dot_dimension_numbers<[1], [0], [0], [1], [0, 0, 1, 1], [], []>} : vector<16x32xbf16>, vector<32x8xbf16>, vector<16x8xf32> -> vector<16x8xf32>
    %159 = vector.extract_strided_slice %35 {offsets = [8, 0, 0], sizes = [1, 1, 8], strides = [1, 1, 1]} : vector<12x1x8xf32> to vector<1x1x8xf32>
    %160 = vector.shape_cast %159 : vector<1x1x8xf32> to vector<1x8xf32>
    %161 = vector.broadcast %160 : vector<1x8xf32> to vector<16x8xf32>
    %162 = arith.addf %158, %161 : vector<16x8xf32>
    %163 = vector.shape_cast %162 : vector<16x8xf32> to vector<2x8x8xf32>
    %164 = arith.truncf %147 : vector<2x8x8xf32> to vector<2x8x8xbf16>
    %165 = arith.truncf %155 : vector<2x8x8xf32> to vector<2x8x8xbf16>
    "tpu.trace_start"() <{level = 10 : i32, message = "bqd,bkd->bqk"}> : () -> ()
    %cst_47 = arith.constant dense<0.000000e+00> : vector<2x8x8xf32>
    %166 = tpu.matmul %164, %165, %cst_47 {dimension_numbers = #tpu.dot_dimension_numbers<[2], [2], [1], [1], [0, 0, 0, 1, 1, 1], [0], [0]>} : vector<2x8x8xbf16>, vector<2x8x8xbf16>, vector<2x8x8xf32> -> vector<2x8x8xf32>
    "tpu.trace_stop"() : () -> ()
    %cst_48 = arith.constant 0.353553385 : f32
    %167 = vector.broadcast %cst_48 : f32 to vector<2x8x8xf32>
    %168 = arith.mulf %166, %167 : vector<2x8x8xf32>
    %169 = vector.broadcast %31 : vector<2x1x8xf32> to vector<2x8x8xf32>
    %170 = arith.addf %168, %169 : vector<2x8x8xf32>
    %cst_49 = arith.constant dense<0xFF800000> : vector<2x8xf32>
    %171 = vector.multi_reduction <maximumf>, %170, %cst_49 [2] : vector<2x8x8xf32> to vector<2x8xf32>
    %172 = vector.shape_cast %171 : vector<2x8xf32> to vector<2x8x1xf32>
    %173 = vector.broadcast %172 : vector<2x8x1xf32> to vector<2x8x8xf32>
    %174 = arith.subf %170, %173 : vector<2x8x8xf32>
    %175 = math.exp %174 : vector<2x8x8xf32>
    %cst_50 = arith.constant dense<0.000000e+00> : vector<2x8xf32>
    %176 = vector.multi_reduction <add>, %175, %cst_50 [2] : vector<2x8x8xf32> to vector<2x8xf32>
    %177 = vector.shape_cast %176 : vector<2x8xf32> to vector<2x8x1xf32>
    %178 = tpu.reciprocal %177 {approx = true} : vector<2x8x1xf32> -> vector<2x8x1xf32>
    %179 = vector.broadcast %178 : vector<2x8x1xf32> to vector<2x8x8xf32>
    %180 = arith.mulf %175, %179 : vector<2x8x8xf32>
    %181 = arith.truncf %180 : vector<2x8x8xf32> to vector<2x8x8xbf16>
    %182 = arith.truncf %163 : vector<2x8x8xf32> to vector<2x8x8xbf16>
    "tpu.trace_start"() <{level = 10 : i32, message = "bqk,bkd->bqd"}> : () -> ()
    %cst_51 = arith.constant dense<0.000000e+00> : vector<2x8x8xf32>
    %183 = tpu.matmul %181, %182, %cst_51 {dimension_numbers = #tpu.dot_dimension_numbers<[2], [1], [1], [2], [0, 0, 0, 1, 1, 2], [0], [0]>} : vector<2x8x8xbf16>, vector<2x8x8xbf16>, vector<2x8x8xf32> -> vector<2x8x8xf32>
    "tpu.trace_stop"() : () -> ()
    %184 = vector.shape_cast %183 : vector<2x8x8xf32> to vector<16x8xf32>
    %185 = arith.truncf %184 : vector<16x8xf32> to vector<16x8xbf16>
    %186 = vector.extract_strided_slice %37 {offsets = [2, 0, 0], sizes = [1, 8, 32], strides = [1, 1, 1]} : vector<4x8x32xbf16> to vector<1x8x32xbf16>
    %187 = vector.shape_cast %186 : vector<1x8x32xbf16> to vector<8x32xbf16>
    %cst_52 = arith.constant dense<0.000000e+00> : vector<16x32xf32>
    %188 = tpu.matmul %185, %187, %cst_52 {dimension_numbers = #tpu.dot_dimension_numbers<[1], [0], [0], [1], [0, 0, 1, 1], [], []>} : vector<16x8xbf16>, vector<8x32xbf16>, vector<16x32xf32> -> vector<16x32xf32>
    %189 = arith.addf %139, %188 : vector<16x32xf32>
    %190 = vector.extract_strided_slice %33 {offsets = [9, 0, 0], sizes = [1, 32, 8], strides = [1, 1, 1]} : vector<12x32x8xbf16> to vector<1x32x8xbf16>
    %191 = vector.shape_cast %190 : vector<1x32x8xbf16> to vector<32x8xbf16>
    %cst_53 = arith.constant dense<0.000000e+00> : vector<16x8xf32>
    %192 = tpu.matmul %40, %191, %cst_53 {dimension_numbers = #tpu.dot_dimension_numbers<[1], [0], [0], [1], [0, 0, 1, 1], [], []>} : vector<16x32xbf16>, vector<32x8xbf16>, vector<16x8xf32> -> vector<16x8xf32>
    %193 = vector.extract_strided_slice %35 {offsets = [9, 0, 0], sizes = [1, 1, 8], strides = [1, 1, 1]} : vector<12x1x8xf32> to vector<1x1x8xf32>
    %194 = vector.shape_cast %193 : vector<1x1x8xf32> to vector<1x8xf32>
    %195 = vector.broadcast %194 : vector<1x8xf32> to vector<16x8xf32>
    %196 = arith.addf %192, %195 : vector<16x8xf32>
    %197 = vector.shape_cast %196 : vector<16x8xf32> to vector<2x8x8xf32>
    %198 = vector.extract_strided_slice %33 {offsets = [10, 0, 0], sizes = [1, 32, 8], strides = [1, 1, 1]} : vector<12x32x8xbf16> to vector<1x32x8xbf16>
    %199 = vector.shape_cast %198 : vector<1x32x8xbf16> to vector<32x8xbf16>
    %cst_54 = arith.constant dense<0.000000e+00> : vector<16x8xf32>
    %200 = tpu.matmul %40, %199, %cst_54 {dimension_numbers = #tpu.dot_dimension_numbers<[1], [0], [0], [1], [0, 0, 1, 1], [], []>} : vector<16x32xbf16>, vector<32x8xbf16>, vector<16x8xf32> -> vector<16x8xf32>
    %201 = vector.extract_strided_slice %35 {offsets = [10, 0, 0], sizes = [1, 1, 8], strides = [1, 1, 1]} : vector<12x1x8xf32> to vector<1x1x8xf32>
    %202 = vector.shape_cast %201 : vector<1x1x8xf32> to vector<1x8xf32>
    %203 = vector.broadcast %202 : vector<1x8xf32> to vector<16x8xf32>
    %204 = arith.addf %200, %203 : vector<16x8xf32>
    %205 = vector.shape_cast %204 : vector<16x8xf32> to vector<2x8x8xf32>
    %206 = vector.extract_strided_slice %33 {offsets = [11, 0, 0], sizes = [1, 32, 8], strides = [1, 1, 1]} : vector<12x32x8xbf16> to vector<1x32x8xbf16>
    %207 = vector.shape_cast %206 : vector<1x32x8xbf16> to vector<32x8xbf16>
    %cst_55 = arith.constant dense<0.000000e+00> : vector<16x8xf32>
    %208 = tpu.matmul %40, %207, %cst_55 {dimension_numbers = #tpu.dot_dimension_numbers<[1], [0], [0], [1], [0, 0, 1, 1], [], []>} : vector<16x32xbf16>, vector<32x8xbf16>, vector<16x8xf32> -> vector<16x8xf32>
    %209 = vector.extract_strided_slice %35 {offsets = [11, 0, 0], sizes = [1, 1, 8], strides = [1, 1, 1]} : vector<12x1x8xf32> to vector<1x1x8xf32>
    %210 = vector.shape_cast %209 : vector<1x1x8xf32> to vector<1x8xf32>
    %211 = vector.broadcast %210 : vector<1x8xf32> to vector<16x8xf32>
    %212 = arith.addf %208, %211 : vector<16x8xf32>
    %213 = vector.shape_cast %212 : vector<16x8xf32> to vector<2x8x8xf32>
    %214 = arith.truncf %197 : vector<2x8x8xf32> to vector<2x8x8xbf16>
    %215 = arith.truncf %205 : vector<2x8x8xf32> to vector<2x8x8xbf16>
    "tpu.trace_start"() <{level = 10 : i32, message = "bqd,bkd->bqk"}> : () -> ()
    %cst_56 = arith.constant dense<0.000000e+00> : vector<2x8x8xf32>
    %216 = tpu.matmul %214, %215, %cst_56 {dimension_numbers = #tpu.dot_dimension_numbers<[2], [2], [1], [1], [0, 0, 0, 1, 1, 1], [0], [0]>} : vector<2x8x8xbf16>, vector<2x8x8xbf16>, vector<2x8x8xf32> -> vector<2x8x8xf32>
    "tpu.trace_stop"() : () -> ()
    %cst_57 = arith.constant 0.353553385 : f32
    %217 = vector.broadcast %cst_57 : f32 to vector<2x8x8xf32>
    %218 = arith.mulf %216, %217 : vector<2x8x8xf32>
    %219 = vector.broadcast %31 : vector<2x1x8xf32> to vector<2x8x8xf32>
    %220 = arith.addf %218, %219 : vector<2x8x8xf32>
    %cst_58 = arith.constant dense<0xFF800000> : vector<2x8xf32>
    %221 = vector.multi_reduction <maximumf>, %220, %cst_58 [2] : vector<2x8x8xf32> to vector<2x8xf32>
    %222 = vector.shape_cast %221 : vector<2x8xf32> to vector<2x8x1xf32>
    %223 = vector.broadcast %222 : vector<2x8x1xf32> to vector<2x8x8xf32>
    %224 = arith.subf %220, %223 : vector<2x8x8xf32>
    %225 = math.exp %224 : vector<2x8x8xf32>
    %cst_59 = arith.constant dense<0.000000e+00> : vector<2x8xf32>
    %226 = vector.multi_reduction <add>, %225, %cst_59 [2] : vector<2x8x8xf32> to vector<2x8xf32>
    %227 = vector.shape_cast %226 : vector<2x8xf32> to vector<2x8x1xf32>
    %228 = tpu.reciprocal %227 {approx = true} : vector<2x8x1xf32> -> vector<2x8x1xf32>
    %229 = vector.broadcast %228 : vector<2x8x1xf32> to vector<2x8x8xf32>
    %230 = arith.mulf %225, %229 : vector<2x8x8xf32>
    %231 = arith.truncf %230 : vector<2x8x8xf32> to vector<2x8x8xbf16>
    %232 = arith.truncf %213 : vector<2x8x8xf32> to vector<2x8x8xbf16>
    "tpu.trace_start"() <{level = 10 : i32, message = "bqk,bkd->bqd"}> : () -> ()
    %cst_60 = arith.constant dense<0.000000e+00> : vector<2x8x8xf32>
    %233 = tpu.matmul %231, %232, %cst_60 {dimension_numbers = #tpu.dot_dimension_numbers<[2], [1], [1], [2], [0, 0, 0, 1, 1, 2], [0], [0]>} : vector<2x8x8xbf16>, vector<2x8x8xbf16>, vector<2x8x8xf32> -> vector<2x8x8xf32>
    "tpu.trace_stop"() : () -> ()
    %234 = vector.shape_cast %233 : vector<2x8x8xf32> to vector<16x8xf32>
    %235 = arith.truncf %234 : vector<16x8xf32> to vector<16x8xbf16>
    %236 = vector.extract_strided_slice %37 {offsets = [3, 0, 0], sizes = [1, 8, 32], strides = [1, 1, 1]} : vector<4x8x32xbf16> to vector<1x8x32xbf16>
    %237 = vector.shape_cast %236 : vector<1x8x32xbf16> to vector<8x32xbf16>
    %cst_61 = arith.constant dense<0.000000e+00> : vector<16x32xf32>
    %238 = tpu.matmul %235, %237, %cst_61 {dimension_numbers = #tpu.dot_dimension_numbers<[1], [0], [0], [1], [0, 0, 1, 1], [], []>} : vector<16x8xbf16>, vector<8x32xbf16>, vector<16x32xf32> -> vector<16x32xf32>
    %239 = arith.addf %189, %238 : vector<16x32xf32>
    %240 = vector.extract_strided_slice %39 {offsets = [0, 0], sizes = [1, 32], strides = [1, 1]} : vector<6x32xf32> to vector<1x32xf32>
    %241 = vector.broadcast %240 : vector<1x32xf32> to vector<16x32xf32>
    %242 = arith.addf %239, %241 : vector<16x32xf32>
    %243 = arith.addf %242, %25 : vector<16x32xf32>
    %244 = vector.extract_strided_slice %39 {offsets = [1, 0], sizes = [1, 32], strides = [1, 1]} : vector<6x32xf32> to vector<1x32xf32>
    %245 = vector.extract_strided_slice %39 {offsets = [2, 0], sizes = [1, 32], strides = [1, 1]} : vector<6x32xf32> to vector<1x32xf32>
    %cst_62 = arith.constant dense<0.000000e+00> : vector<16xf32>
    %246 = vector.multi_reduction <add>, %243, %cst_62 [1] : vector<16x32xf32> to vector<16xf32>
    %247 = vector.shape_cast %246 : vector<16xf32> to vector<16x1xf32>
    %cst_63 = arith.constant 3.200000e+01 : f32
    %248 = vector.broadcast %cst_63 : f32 to vector<16x1xf32>
    %249 = arith.divf %247, %248 : vector<16x1xf32>
    %250 = vector.broadcast %249 : vector<16x1xf32> to vector<16x32xf32>
    %251 = arith.subf %243, %250 : vector<16x32xf32>
    %252 = arith.mulf %251, %251 : vector<16x32xf32>
    %cst_64 = arith.constant dense<0.000000e+00> : vector<16xf32>
    %253 = vector.multi_reduction <add>, %252, %cst_64 [1] : vector<16x32xf32> to vector<16xf32>
    %254 = vector.shape_cast %253 : vector<16xf32> to vector<16x1xf32>
    %cst_65 = arith.constant 3.200000e+01 : f32
    %255 = vector.broadcast %cst_65 : f32 to vector<16x1xf32>
    %256 = arith.divf %254, %255 : vector<16x1xf32>
    %257 = vector.broadcast %249 : vector<16x1xf32> to vector<16x32xf32>
    %258 = arith.subf %243, %257 : vector<16x32xf32>
    %cst_66 = arith.constant 9.99999996E-13 : f32
    %259 = vector.broadcast %cst_66 : f32 to vector<16x1xf32>
    %260 = arith.addf %256, %259 : vector<16x1xf32>
    %261 = math.rsqrt %260 : vector<16x1xf32>
    %262 = vector.broadcast %261 : vector<16x1xf32> to vector<16x32xf32>
    %263 = arith.mulf %258, %262 : vector<16x32xf32>
    %264 = vector.broadcast %244 : vector<1x32xf32> to vector<16x32xf32>
    %265 = arith.mulf %263, %264 : vector<16x32xf32>
    %266 = vector.broadcast %245 : vector<1x32xf32> to vector<16x32xf32>
    %267 = arith.addf %265, %266 : vector<16x32xf32>
    %268 = arith.truncf %267 : vector<16x32xf32> to vector<16x32xbf16>
    %c0_67 = arith.constant 0 : index
    %c0_68 = arith.constant 0 : index
    %c0_69 = arith.constant 0 : index
    %269 = vector.load %arg8[%c0_67, %c0_68, %c0_69] : memref<2x32x64xbf16, #tpu.memory_space<vmem>>, vector<1x32x64xbf16>
    %270 = vector.shape_cast %269 : vector<1x32x64xbf16> to vector<32x64xbf16>
    %cst_70 = arith.constant dense<0.000000e+00> : vector<16x64xf32>
    %271 = tpu.matmul %268, %270, %cst_70 {dimension_numbers = #tpu.dot_dimension_numbers<[1], [0], [0], [1], [0, 0, 1, 1], [], []>} : vector<16x32xbf16>, vector<32x64xbf16>, vector<16x64xf32> -> vector<16x64xf32>
    %c0_71 = arith.constant 0 : index
    %c0_72 = arith.constant 0 : index
    %c0_73 = arith.constant 0 : index
    %272 = vector.load %arg9[%c0_71, %c0_72, %c0_73] : memref<2x1x64xf32, #tpu.memory_space<vmem>>, vector<1x1x64xf32>
    %273 = vector.shape_cast %272 : vector<1x1x64xf32> to vector<1x64xf32>
    %274 = vector.broadcast %273 : vector<1x64xf32> to vector<16x64xf32>
    %275 = arith.addf %271, %274 : vector<16x64xf32>
    %276 = arith.mulf %275, %275 : vector<16x64xf32>
    %277 = arith.mulf %275, %276 : vector<16x64xf32>
    %cst_74 = arith.constant 4.471500e-02 : f32
    %278 = vector.broadcast %cst_74 : f32 to vector<16x64xf32>
    %279 = arith.mulf %278, %277 : vector<16x64xf32>
    %280 = arith.addf %275, %279 : vector<16x64xf32>
    %cst_75 = arith.constant 0.797884583 : f32
    %281 = vector.broadcast %cst_75 : f32 to vector<16x64xf32>
    %282 = arith.mulf %281, %280 : vector<16x64xf32>
    %283 = math.tanh %282 : vector<16x64xf32>
    %cst_76 = arith.constant 1.000000e+00 : f32
    %284 = vector.broadcast %cst_76 : f32 to vector<16x64xf32>
    %285 = arith.addf %284, %283 : vector<16x64xf32>
    %cst_77 = arith.constant 5.000000e-01 : f32
    %286 = vector.broadcast %cst_77 : f32 to vector<16x64xf32>
    %287 = arith.mulf %286, %285 : vector<16x64xf32>
    %288 = arith.mulf %275, %287 : vector<16x64xf32>
    %289 = arith.truncf %288 : vector<16x64xf32> to vector<16x64xbf16>
    %c0_78 = arith.constant 0 : index
    %c0_79 = arith.constant 0 : index
    %c0_80 = arith.constant 0 : index
    %290 = vector.load %arg10[%c0_78, %c0_79, %c0_80] : memref<2x64x32xbf16, #tpu.memory_space<vmem>>, vector<1x64x32xbf16>
    %291 = vector.shape_cast %290 : vector<1x64x32xbf16> to vector<64x32xbf16>
    %cst_81 = arith.constant dense<0.000000e+00> : vector<16x32xf32>
    %292 = tpu.matmul %289, %291, %cst_81 {dimension_numbers = #tpu.dot_dimension_numbers<[1], [0], [0], [1], [0, 0, 1, 1], [], []>} : vector<16x64xbf16>, vector<64x32xbf16>, vector<16x32xf32> -> vector<16x32xf32>
    %293 = vector.extract_strided_slice %39 {offsets = [3, 0], sizes = [1, 32], strides = [1, 1]} : vector<6x32xf32> to vector<1x32xf32>
    %294 = vector.broadcast %293 : vector<1x32xf32> to vector<16x32xf32>
    %295 = arith.addf %292, %294 : vector<16x32xf32>
    %296 = arith.addf %295, %267 : vector<16x32xf32>
    %297 = vector.extract_strided_slice %39 {offsets = [4, 0], sizes = [1, 32], strides = [1, 1]} : vector<6x32xf32> to vector<1x32xf32>
    %298 = vector.extract_strided_slice %39 {offsets = [5, 0], sizes = [1, 32], strides = [1, 1]} : vector<6x32xf32> to vector<1x32xf32>
    %cst_82 = arith.constant dense<0.000000e+00> : vector<16xf32>
    %299 = vector.multi_reduction <add>, %296, %cst_82 [1] : vector<16x32xf32> to vector<16xf32>
    %300 = vector.shape_cast %299 : vector<16xf32> to vector<16x1xf32>
    %cst_83 = arith.constant 3.200000e+01 : f32
    %301 = vector.broadcast %cst_83 : f32 to vector<16x1xf32>
    %302 = arith.divf %300, %301 : vector<16x1xf32>
    %303 = vector.broadcast %302 : vector<16x1xf32> to vector<16x32xf32>
    %304 = arith.subf %296, %303 : vector<16x32xf32>
    %305 = arith.mulf %304, %304 : vector<16x32xf32>
    %cst_84 = arith.constant dense<0.000000e+00> : vector<16xf32>
    %306 = vector.multi_reduction <add>, %305, %cst_84 [1] : vector<16x32xf32> to vector<16xf32>
    %307 = vector.shape_cast %306 : vector<16xf32> to vector<16x1xf32>
    %cst_85 = arith.constant 3.200000e+01 : f32
    %308 = vector.broadcast %cst_85 : f32 to vector<16x1xf32>
    %309 = arith.divf %307, %308 : vector<16x1xf32>
    %310 = vector.broadcast %302 : vector<16x1xf32> to vector<16x32xf32>
    %311 = arith.subf %296, %310 : vector<16x32xf32>
    %cst_86 = arith.constant 9.99999996E-13 : f32
    %312 = vector.broadcast %cst_86 : f32 to vector<16x1xf32>
    %313 = arith.addf %309, %312 : vector<16x1xf32>
    %314 = math.rsqrt %313 : vector<16x1xf32>
    %315 = vector.broadcast %314 : vector<16x1xf32> to vector<16x32xf32>
    %316 = arith.mulf %311, %315 : vector<16x32xf32>
    %317 = vector.broadcast %297 : vector<1x32xf32> to vector<16x32xf32>
    %318 = arith.mulf %316, %317 : vector<16x32xf32>
    %319 = vector.broadcast %298 : vector<1x32xf32> to vector<16x32xf32>
    %320 = arith.addf %318, %319 : vector<16x32xf32>
    %c1 = arith.constant 1 : index
    %c0_87 = arith.constant 0 : index
    %c0_88 = arith.constant 0 : index
    %c0_89 = arith.constant 0 : index
    %321 = vector.load %arg4[%c1, %c0_87, %c0_88, %c0_89] : memref<2x12x32x8xbf16, #tpu.memory_space<vmem>>, vector<1x12x32x8xbf16>
    %322 = vector.shape_cast %321 : vector<1x12x32x8xbf16> to vector<12x32x8xbf16>
    %c1_90 = arith.constant 1 : index
    %c0_91 = arith.constant 0 : index
    %c0_92 = arith.constant 0 : index
    %c0_93 = arith.constant 0 : index
    %323 = vector.load %arg5[%c1_90, %c0_91, %c0_92, %c0_93] : memref<2x12x1x8xf32, #tpu.memory_space<vmem>>, vector<1x12x1x8xf32>
    %324 = vector.shape_cast %323 : vector<1x12x1x8xf32> to vector<12x1x8xf32>
    %c1_94 = arith.constant 1 : index
    %c0_95 = arith.constant 0 : index
    %c0_96 = arith.constant 0 : index
    %c0_97 = arith.constant 0 : index
    %325 = vector.load %arg6[%c1_94, %c0_95, %c0_96, %c0_97] : memref<2x4x8x32xbf16, #tpu.memory_space<vmem>>, vector<1x4x8x32xbf16>
    %326 = vector.shape_cast %325 : vector<1x4x8x32xbf16> to vector<4x8x32xbf16>
    %c1_98 = arith.constant 1 : index
    %c0_99 = arith.constant 0 : index
    %c0_100 = arith.constant 0 : index
    %327 = vector.load %arg7[%c1_98, %c0_99, %c0_100] : memref<2x6x32xf32, #tpu.memory_space<vmem>>, vector<1x6x32xf32>
    %328 = vector.shape_cast %327 : vector<1x6x32xf32> to vector<6x32xf32>
    %329 = arith.truncf %320 : vector<16x32xf32> to vector<16x32xbf16>
    %330 = vector.extract_strided_slice %322 {offsets = [0, 0, 0], sizes = [1, 32, 8], strides = [1, 1, 1]} : vector<12x32x8xbf16> to vector<1x32x8xbf16>
    %331 = vector.shape_cast %330 : vector<1x32x8xbf16> to vector<32x8xbf16>
    %cst_101 = arith.constant dense<0.000000e+00> : vector<16x8xf32>
    %332 = tpu.matmul %329, %331, %cst_101 {dimension_numbers = #tpu.dot_dimension_numbers<[1], [0], [0], [1], [0, 0, 1, 1], [], []>} : vector<16x32xbf16>, vector<32x8xbf16>, vector<16x8xf32> -> vector<16x8xf32>
    %333 = vector.extract_strided_slice %324 {offsets = [0, 0, 0], sizes = [1, 1, 8], strides = [1, 1, 1]} : vector<12x1x8xf32> to vector<1x1x8xf32>
    %334 = vector.shape_cast %333 : vector<1x1x8xf32> to vector<1x8xf32>
    %335 = vector.broadcast %334 : vector<1x8xf32> to vector<16x8xf32>
    %336 = arith.addf %332, %335 : vector<16x8xf32>
    %337 = vector.shape_cast %336 : vector<16x8xf32> to vector<2x8x8xf32>
    %338 = vector.extract_strided_slice %322 {offsets = [1, 0, 0], sizes = [1, 32, 8], strides = [1, 1, 1]} : vector<12x32x8xbf16> to vector<1x32x8xbf16>
    %339 = vector.shape_cast %338 : vector<1x32x8xbf16> to vector<32x8xbf16>
    %cst_102 = arith.constant dense<0.000000e+00> : vector<16x8xf32>
    %340 = tpu.matmul %329, %339, %cst_102 {dimension_numbers = #tpu.dot_dimension_numbers<[1], [0], [0], [1], [0, 0, 1, 1], [], []>} : vector<16x32xbf16>, vector<32x8xbf16>, vector<16x8xf32> -> vector<16x8xf32>
    %341 = vector.extract_strided_slice %324 {offsets = [1, 0, 0], sizes = [1, 1, 8], strides = [1, 1, 1]} : vector<12x1x8xf32> to vector<1x1x8xf32>
    %342 = vector.shape_cast %341 : vector<1x1x8xf32> to vector<1x8xf32>
    %343 = vector.broadcast %342 : vector<1x8xf32> to vector<16x8xf32>
    %344 = arith.addf %340, %343 : vector<16x8xf32>
    %345 = vector.shape_cast %344 : vector<16x8xf32> to vector<2x8x8xf32>
    %346 = vector.extract_strided_slice %322 {offsets = [2, 0, 0], sizes = [1, 32, 8], strides = [1, 1, 1]} : vector<12x32x8xbf16> to vector<1x32x8xbf16>
    %347 = vector.shape_cast %346 : vector<1x32x8xbf16> to vector<32x8xbf16>
    %cst_103 = arith.constant dense<0.000000e+00> : vector<16x8xf32>
    %348 = tpu.matmul %329, %347, %cst_103 {dimension_numbers = #tpu.dot_dimension_numbers<[1], [0], [0], [1], [0, 0, 1, 1], [], []>} : vector<16x32xbf16>, vector<32x8xbf16>, vector<16x8xf32> -> vector<16x8xf32>
    %349 = vector.extract_strided_slice %324 {offsets = [2, 0, 0], sizes = [1, 1, 8], strides = [1, 1, 1]} : vector<12x1x8xf32> to vector<1x1x8xf32>
    %350 = vector.shape_cast %349 : vector<1x1x8xf32> to vector<1x8xf32>
    %351 = vector.broadcast %350 : vector<1x8xf32> to vector<16x8xf32>
    %352 = arith.addf %348, %351 : vector<16x8xf32>
    %353 = vector.shape_cast %352 : vector<16x8xf32> to vector<2x8x8xf32>
    %354 = arith.truncf %337 : vector<2x8x8xf32> to vector<2x8x8xbf16>
    %355 = arith.truncf %345 : vector<2x8x8xf32> to vector<2x8x8xbf16>
    "tpu.trace_start"() <{level = 10 : i32, message = "bqd,bkd->bqk"}> : () -> ()
    %cst_104 = arith.constant dense<0.000000e+00> : vector<2x8x8xf32>
    %356 = tpu.matmul %354, %355, %cst_104 {dimension_numbers = #tpu.dot_dimension_numbers<[2], [2], [1], [1], [0, 0, 0, 1, 1, 1], [0], [0]>} : vector<2x8x8xbf16>, vector<2x8x8xbf16>, vector<2x8x8xf32> -> vector<2x8x8xf32>
    "tpu.trace_stop"() : () -> ()
    %cst_105 = arith.constant 0.353553385 : f32
    %357 = vector.broadcast %cst_105 : f32 to vector<2x8x8xf32>
    %358 = arith.mulf %356, %357 : vector<2x8x8xf32>
    %359 = vector.broadcast %31 : vector<2x1x8xf32> to vector<2x8x8xf32>
    %360 = arith.addf %358, %359 : vector<2x8x8xf32>
    %cst_106 = arith.constant dense<0xFF800000> : vector<2x8xf32>
    %361 = vector.multi_reduction <maximumf>, %360, %cst_106 [2] : vector<2x8x8xf32> to vector<2x8xf32>
    %362 = vector.shape_cast %361 : vector<2x8xf32> to vector<2x8x1xf32>
    %363 = vector.broadcast %362 : vector<2x8x1xf32> to vector<2x8x8xf32>
    %364 = arith.subf %360, %363 : vector<2x8x8xf32>
    %365 = math.exp %364 : vector<2x8x8xf32>
    %cst_107 = arith.constant dense<0.000000e+00> : vector<2x8xf32>
    %366 = vector.multi_reduction <add>, %365, %cst_107 [2] : vector<2x8x8xf32> to vector<2x8xf32>
    %367 = vector.shape_cast %366 : vector<2x8xf32> to vector<2x8x1xf32>
    %368 = tpu.reciprocal %367 {approx = true} : vector<2x8x1xf32> -> vector<2x8x1xf32>
    %369 = vector.broadcast %368 : vector<2x8x1xf32> to vector<2x8x8xf32>
    %370 = arith.mulf %365, %369 : vector<2x8x8xf32>
    %371 = arith.truncf %370 : vector<2x8x8xf32> to vector<2x8x8xbf16>
    %372 = arith.truncf %353 : vector<2x8x8xf32> to vector<2x8x8xbf16>
    "tpu.trace_start"() <{level = 10 : i32, message = "bqk,bkd->bqd"}> : () -> ()
    %cst_108 = arith.constant dense<0.000000e+00> : vector<2x8x8xf32>
    %373 = tpu.matmul %371, %372, %cst_108 {dimension_numbers = #tpu.dot_dimension_numbers<[2], [1], [1], [2], [0, 0, 0, 1, 1, 2], [0], [0]>} : vector<2x8x8xbf16>, vector<2x8x8xbf16>, vector<2x8x8xf32> -> vector<2x8x8xf32>
    "tpu.trace_stop"() : () -> ()
    %374 = vector.shape_cast %373 : vector<2x8x8xf32> to vector<16x8xf32>
    %375 = arith.truncf %374 : vector<16x8xf32> to vector<16x8xbf16>
    %376 = vector.extract_strided_slice %326 {offsets = [0, 0, 0], sizes = [1, 8, 32], strides = [1, 1, 1]} : vector<4x8x32xbf16> to vector<1x8x32xbf16>
    %377 = vector.shape_cast %376 : vector<1x8x32xbf16> to vector<8x32xbf16>
    %cst_109 = arith.constant dense<0.000000e+00> : vector<16x32xf32>
    %378 = tpu.matmul %375, %377, %cst_109 {dimension_numbers = #tpu.dot_dimension_numbers<[1], [0], [0], [1], [0, 0, 1, 1], [], []>} : vector<16x8xbf16>, vector<8x32xbf16>, vector<16x32xf32> -> vector<16x32xf32>
    %379 = vector.extract_strided_slice %322 {offsets = [3, 0, 0], sizes = [1, 32, 8], strides = [1, 1, 1]} : vector<12x32x8xbf16> to vector<1x32x8xbf16>
    %380 = vector.shape_cast %379 : vector<1x32x8xbf16> to vector<32x8xbf16>
    %cst_110 = arith.constant dense<0.000000e+00> : vector<16x8xf32>
    %381 = tpu.matmul %329, %380, %cst_110 {dimension_numbers = #tpu.dot_dimension_numbers<[1], [0], [0], [1], [0, 0, 1, 1], [], []>} : vector<16x32xbf16>, vector<32x8xbf16>, vector<16x8xf32> -> vector<16x8xf32>
    %382 = vector.extract_strided_slice %324 {offsets = [3, 0, 0], sizes = [1, 1, 8], strides = [1, 1, 1]} : vector<12x1x8xf32> to vector<1x1x8xf32>
    %383 = vector.shape_cast %382 : vector<1x1x8xf32> to vector<1x8xf32>
    %384 = vector.broadcast %383 : vector<1x8xf32> to vector<16x8xf32>
    %385 = arith.addf %381, %384 : vector<16x8xf32>
    %386 = vector.shape_cast %385 : vector<16x8xf32> to vector<2x8x8xf32>
    %387 = vector.extract_strided_slice %322 {offsets = [4, 0, 0], sizes = [1, 32, 8], strides = [1, 1, 1]} : vector<12x32x8xbf16> to vector<1x32x8xbf16>
    %388 = vector.shape_cast %387 : vector<1x32x8xbf16> to vector<32x8xbf16>
    %cst_111 = arith.constant dense<0.000000e+00> : vector<16x8xf32>
    %389 = tpu.matmul %329, %388, %cst_111 {dimension_numbers = #tpu.dot_dimension_numbers<[1], [0], [0], [1], [0, 0, 1, 1], [], []>} : vector<16x32xbf16>, vector<32x8xbf16>, vector<16x8xf32> -> vector<16x8xf32>
    %390 = vector.extract_strided_slice %324 {offsets = [4, 0, 0], sizes = [1, 1, 8], strides = [1, 1, 1]} : vector<12x1x8xf32> to vector<1x1x8xf32>
    %391 = vector.shape_cast %390 : vector<1x1x8xf32> to vector<1x8xf32>
    %392 = vector.broadcast %391 : vector<1x8xf32> to vector<16x8xf32>
    %393 = arith.addf %389, %392 : vector<16x8xf32>
    %394 = vector.shape_cast %393 : vector<16x8xf32> to vector<2x8x8xf32>
    %395 = vector.extract_strided_slice %322 {offsets = [5, 0, 0], sizes = [1, 32, 8], strides = [1, 1, 1]} : vector<12x32x8xbf16> to vector<1x32x8xbf16>
    %396 = vector.shape_cast %395 : vector<1x32x8xbf16> to vector<32x8xbf16>
    %cst_112 = arith.constant dense<0.000000e+00> : vector<16x8xf32>
    %397 = tpu.matmul %329, %396, %cst_112 {dimension_numbers = #tpu.dot_dimension_numbers<[1], [0], [0], [1], [0, 0, 1, 1], [], []>} : vector<16x32xbf16>, vector<32x8xbf16>, vector<16x8xf32> -> vector<16x8xf32>
    %398 = vector.extract_strided_slice %324 {offsets = [5, 0, 0], sizes = [1, 1, 8], strides = [1, 1, 1]} : vector<12x1x8xf32> to vector<1x1x8xf32>
    %399 = vector.shape_cast %398 : vector<1x1x8xf32> to vector<1x8xf32>
    %400 = vector.broadcast %399 : vector<1x8xf32> to vector<16x8xf32>
    %401 = arith.addf %397, %400 : vector<16x8xf32>
    %402 = vector.shape_cast %401 : vector<16x8xf32> to vector<2x8x8xf32>
    %403 = arith.truncf %386 : vector<2x8x8xf32> to vector<2x8x8xbf16>
    %404 = arith.truncf %394 : vector<2x8x8xf32> to vector<2x8x8xbf16>
    "tpu.trace_start"() <{level = 10 : i32, message = "bqd,bkd->bqk"}> : () -> ()
    %cst_113 = arith.constant dense<0.000000e+00> : vector<2x8x8xf32>
    %405 = tpu.matmul %403, %404, %cst_113 {dimension_numbers = #tpu.dot_dimension_numbers<[2], [2], [1], [1], [0, 0, 0, 1, 1, 1], [0], [0]>} : vector<2x8x8xbf16>, vector<2x8x8xbf16>, vector<2x8x8xf32> -> vector<2x8x8xf32>
    "tpu.trace_stop"() : () -> ()
    %cst_114 = arith.constant 0.353553385 : f32
    %406 = vector.broadcast %cst_114 : f32 to vector<2x8x8xf32>
    %407 = arith.mulf %405, %406 : vector<2x8x8xf32>
    %408 = vector.broadcast %31 : vector<2x1x8xf32> to vector<2x8x8xf32>
    %409 = arith.addf %407, %408 : vector<2x8x8xf32>
    %cst_115 = arith.constant dense<0xFF800000> : vector<2x8xf32>
    %410 = vector.multi_reduction <maximumf>, %409, %cst_115 [2] : vector<2x8x8xf32> to vector<2x8xf32>
    %411 = vector.shape_cast %410 : vector<2x8xf32> to vector<2x8x1xf32>
    %412 = vector.broadcast %411 : vector<2x8x1xf32> to vector<2x8x8xf32>
    %413 = arith.subf %409, %412 : vector<2x8x8xf32>
    %414 = math.exp %413 : vector<2x8x8xf32>
    %cst_116 = arith.constant dense<0.000000e+00> : vector<2x8xf32>
    %415 = vector.multi_reduction <add>, %414, %cst_116 [2] : vector<2x8x8xf32> to vector<2x8xf32>
    %416 = vector.shape_cast %415 : vector<2x8xf32> to vector<2x8x1xf32>
    %417 = tpu.reciprocal %416 {approx = true} : vector<2x8x1xf32> -> vector<2x8x1xf32>
    %418 = vector.broadcast %417 : vector<2x8x1xf32> to vector<2x8x8xf32>
    %419 = arith.mulf %414, %418 : vector<2x8x8xf32>
    %420 = arith.truncf %419 : vector<2x8x8xf32> to vector<2x8x8xbf16>
    %421 = arith.truncf %402 : vector<2x8x8xf32> to vector<2x8x8xbf16>
    "tpu.trace_start"() <{level = 10 : i32, message = "bqk,bkd->bqd"}> : () -> ()
    %cst_117 = arith.constant dense<0.000000e+00> : vector<2x8x8xf32>
    %422 = tpu.matmul %420, %421, %cst_117 {dimension_numbers = #tpu.dot_dimension_numbers<[2], [1], [1], [2], [0, 0, 0, 1, 1, 2], [0], [0]>} : vector<2x8x8xbf16>, vector<2x8x8xbf16>, vector<2x8x8xf32> -> vector<2x8x8xf32>
    "tpu.trace_stop"() : () -> ()
    %423 = vector.shape_cast %422 : vector<2x8x8xf32> to vector<16x8xf32>
    %424 = arith.truncf %423 : vector<16x8xf32> to vector<16x8xbf16>
    %425 = vector.extract_strided_slice %326 {offsets = [1, 0, 0], sizes = [1, 8, 32], strides = [1, 1, 1]} : vector<4x8x32xbf16> to vector<1x8x32xbf16>
    %426 = vector.shape_cast %425 : vector<1x8x32xbf16> to vector<8x32xbf16>
    %cst_118 = arith.constant dense<0.000000e+00> : vector<16x32xf32>
    %427 = tpu.matmul %424, %426, %cst_118 {dimension_numbers = #tpu.dot_dimension_numbers<[1], [0], [0], [1], [0, 0, 1, 1], [], []>} : vector<16x8xbf16>, vector<8x32xbf16>, vector<16x32xf32> -> vector<16x32xf32>
    %428 = arith.addf %378, %427 : vector<16x32xf32>
    %429 = vector.extract_strided_slice %322 {offsets = [6, 0, 0], sizes = [1, 32, 8], strides = [1, 1, 1]} : vector<12x32x8xbf16> to vector<1x32x8xbf16>
    %430 = vector.shape_cast %429 : vector<1x32x8xbf16> to vector<32x8xbf16>
    %cst_119 = arith.constant dense<0.000000e+00> : vector<16x8xf32>
    %431 = tpu.matmul %329, %430, %cst_119 {dimension_numbers = #tpu.dot_dimension_numbers<[1], [0], [0], [1], [0, 0, 1, 1], [], []>} : vector<16x32xbf16>, vector<32x8xbf16>, vector<16x8xf32> -> vector<16x8xf32>
    %432 = vector.extract_strided_slice %324 {offsets = [6, 0, 0], sizes = [1, 1, 8], strides = [1, 1, 1]} : vector<12x1x8xf32> to vector<1x1x8xf32>
    %433 = vector.shape_cast %432 : vector<1x1x8xf32> to vector<1x8xf32>
    %434 = vector.broadcast %433 : vector<1x8xf32> to vector<16x8xf32>
    %435 = arith.addf %431, %434 : vector<16x8xf32>
    %436 = vector.shape_cast %435 : vector<16x8xf32> to vector<2x8x8xf32>
    %437 = vector.extract_strided_slice %322 {offsets = [7, 0, 0], sizes = [1, 32, 8], strides = [1, 1, 1]} : vector<12x32x8xbf16> to vector<1x32x8xbf16>
    %438 = vector.shape_cast %437 : vector<1x32x8xbf16> to vector<32x8xbf16>
    %cst_120 = arith.constant dense<0.000000e+00> : vector<16x8xf32>
    %439 = tpu.matmul %329, %438, %cst_120 {dimension_numbers = #tpu.dot_dimension_numbers<[1], [0], [0], [1], [0, 0, 1, 1], [], []>} : vector<16x32xbf16>, vector<32x8xbf16>, vector<16x8xf32> -> vector<16x8xf32>
    %440 = vector.extract_strided_slice %324 {offsets = [7, 0, 0], sizes = [1, 1, 8], strides = [1, 1, 1]} : vector<12x1x8xf32> to vector<1x1x8xf32>
    %441 = vector.shape_cast %440 : vector<1x1x8xf32> to vector<1x8xf32>
    %442 = vector.broadcast %441 : vector<1x8xf32> to vector<16x8xf32>
    %443 = arith.addf %439, %442 : vector<16x8xf32>
    %444 = vector.shape_cast %443 : vector<16x8xf32> to vector<2x8x8xf32>
    %445 = vector.extract_strided_slice %322 {offsets = [8, 0, 0], sizes = [1, 32, 8], strides = [1, 1, 1]} : vector<12x32x8xbf16> to vector<1x32x8xbf16>
    %446 = vector.shape_cast %445 : vector<1x32x8xbf16> to vector<32x8xbf16>
    %cst_121 = arith.constant dense<0.000000e+00> : vector<16x8xf32>
    %447 = tpu.matmul %329, %446, %cst_121 {dimension_numbers = #tpu.dot_dimension_numbers<[1], [0], [0], [1], [0, 0, 1, 1], [], []>} : vector<16x32xbf16>, vector<32x8xbf16>, vector<16x8xf32> -> vector<16x8xf32>
    %448 = vector.extract_strided_slice %324 {offsets = [8, 0, 0], sizes = [1, 1, 8], strides = [1, 1, 1]} : vector<12x1x8xf32> to vector<1x1x8xf32>
    %449 = vector.shape_cast %448 : vector<1x1x8xf32> to vector<1x8xf32>
    %450 = vector.broadcast %449 : vector<1x8xf32> to vector<16x8xf32>
    %451 = arith.addf %447, %450 : vector<16x8xf32>
    %452 = vector.shape_cast %451 : vector<16x8xf32> to vector<2x8x8xf32>
    %453 = arith.truncf %436 : vector<2x8x8xf32> to vector<2x8x8xbf16>
    %454 = arith.truncf %444 : vector<2x8x8xf32> to vector<2x8x8xbf16>
    "tpu.trace_start"() <{level = 10 : i32, message = "bqd,bkd->bqk"}> : () -> ()
    %cst_122 = arith.constant dense<0.000000e+00> : vector<2x8x8xf32>
    %455 = tpu.matmul %453, %454, %cst_122 {dimension_numbers = #tpu.dot_dimension_numbers<[2], [2], [1], [1], [0, 0, 0, 1, 1, 1], [0], [0]>} : vector<2x8x8xbf16>, vector<2x8x8xbf16>, vector<2x8x8xf32> -> vector<2x8x8xf32>
    "tpu.trace_stop"() : () -> ()
    %cst_123 = arith.constant 0.353553385 : f32
    %456 = vector.broadcast %cst_123 : f32 to vector<2x8x8xf32>
    %457 = arith.mulf %455, %456 : vector<2x8x8xf32>
    %458 = vector.broadcast %31 : vector<2x1x8xf32> to vector<2x8x8xf32>
    %459 = arith.addf %457, %458 : vector<2x8x8xf32>
    %cst_124 = arith.constant dense<0xFF800000> : vector<2x8xf32>
    %460 = vector.multi_reduction <maximumf>, %459, %cst_124 [2] : vector<2x8x8xf32> to vector<2x8xf32>
    %461 = vector.shape_cast %460 : vector<2x8xf32> to vector<2x8x1xf32>
    %462 = vector.broadcast %461 : vector<2x8x1xf32> to vector<2x8x8xf32>
    %463 = arith.subf %459, %462 : vector<2x8x8xf32>
    %464 = math.exp %463 : vector<2x8x8xf32>
    %cst_125 = arith.constant dense<0.000000e+00> : vector<2x8xf32>
    %465 = vector.multi_reduction <add>, %464, %cst_125 [2] : vector<2x8x8xf32> to vector<2x8xf32>
    %466 = vector.shape_cast %465 : vector<2x8xf32> to vector<2x8x1xf32>
    %467 = tpu.reciprocal %466 {approx = true} : vector<2x8x1xf32> -> vector<2x8x1xf32>
    %468 = vector.broadcast %467 : vector<2x8x1xf32> to vector<2x8x8xf32>
    %469 = arith.mulf %464, %468 : vector<2x8x8xf32>
    %470 = arith.truncf %469 : vector<2x8x8xf32> to vector<2x8x8xbf16>
    %471 = arith.truncf %452 : vector<2x8x8xf32> to vector<2x8x8xbf16>
    "tpu.trace_start"() <{level = 10 : i32, message = "bqk,bkd->bqd"}> : () -> ()
    %cst_126 = arith.constant dense<0.000000e+00> : vector<2x8x8xf32>
    %472 = tpu.matmul %470, %471, %cst_126 {dimension_numbers = #tpu.dot_dimension_numbers<[2], [1], [1], [2], [0, 0, 0, 1, 1, 2], [0], [0]>} : vector<2x8x8xbf16>, vector<2x8x8xbf16>, vector<2x8x8xf32> -> vector<2x8x8xf32>
    "tpu.trace_stop"() : () -> ()
    %473 = vector.shape_cast %472 : vector<2x8x8xf32> to vector<16x8xf32>
    %474 = arith.truncf %473 : vector<16x8xf32> to vector<16x8xbf16>
    %475 = vector.extract_strided_slice %326 {offsets = [2, 0, 0], sizes = [1, 8, 32], strides = [1, 1, 1]} : vector<4x8x32xbf16> to vector<1x8x32xbf16>
    %476 = vector.shape_cast %475 : vector<1x8x32xbf16> to vector<8x32xbf16>
    %cst_127 = arith.constant dense<0.000000e+00> : vector<16x32xf32>
    %477 = tpu.matmul %474, %476, %cst_127 {dimension_numbers = #tpu.dot_dimension_numbers<[1], [0], [0], [1], [0, 0, 1, 1], [], []>} : vector<16x8xbf16>, vector<8x32xbf16>, vector<16x32xf32> -> vector<16x32xf32>
    %478 = arith.addf %428, %477 : vector<16x32xf32>
    %479 = vector.extract_strided_slice %322 {offsets = [9, 0, 0], sizes = [1, 32, 8], strides = [1, 1, 1]} : vector<12x32x8xbf16> to vector<1x32x8xbf16>
    %480 = vector.shape_cast %479 : vector<1x32x8xbf16> to vector<32x8xbf16>
    %cst_128 = arith.constant dense<0.000000e+00> : vector<16x8xf32>
    %481 = tpu.matmul %329, %480, %cst_128 {dimension_numbers = #tpu.dot_dimension_numbers<[1], [0], [0], [1], [0, 0, 1, 1], [], []>} : vector<16x32xbf16>, vector<32x8xbf16>, vector<16x8xf32> -> vector<16x8xf32>
    %482 = vector.extract_strided_slice %324 {offsets = [9, 0, 0], sizes = [1, 1, 8], strides = [1, 1, 1]} : vector<12x1x8xf32> to vector<1x1x8xf32>
    %483 = vector.shape_cast %482 : vector<1x1x8xf32> to vector<1x8xf32>
    %484 = vector.broadcast %483 : vector<1x8xf32> to vector<16x8xf32>
    %485 = arith.addf %481, %484 : vector<16x8xf32>
    %486 = vector.shape_cast %485 : vector<16x8xf32> to vector<2x8x8xf32>
    %487 = vector.extract_strided_slice %322 {offsets = [10, 0, 0], sizes = [1, 32, 8], strides = [1, 1, 1]} : vector<12x32x8xbf16> to vector<1x32x8xbf16>
    %488 = vector.shape_cast %487 : vector<1x32x8xbf16> to vector<32x8xbf16>
    %cst_129 = arith.constant dense<0.000000e+00> : vector<16x8xf32>
    %489 = tpu.matmul %329, %488, %cst_129 {dimension_numbers = #tpu.dot_dimension_numbers<[1], [0], [0], [1], [0, 0, 1, 1], [], []>} : vector<16x32xbf16>, vector<32x8xbf16>, vector<16x8xf32> -> vector<16x8xf32>
    %490 = vector.extract_strided_slice %324 {offsets = [10, 0, 0], sizes = [1, 1, 8], strides = [1, 1, 1]} : vector<12x1x8xf32> to vector<1x1x8xf32>
    %491 = vector.shape_cast %490 : vector<1x1x8xf32> to vector<1x8xf32>
    %492 = vector.broadcast %491 : vector<1x8xf32> to vector<16x8xf32>
    %493 = arith.addf %489, %492 : vector<16x8xf32>
    %494 = vector.shape_cast %493 : vector<16x8xf32> to vector<2x8x8xf32>
    %495 = vector.extract_strided_slice %322 {offsets = [11, 0, 0], sizes = [1, 32, 8], strides = [1, 1, 1]} : vector<12x32x8xbf16> to vector<1x32x8xbf16>
    %496 = vector.shape_cast %495 : vector<1x32x8xbf16> to vector<32x8xbf16>
    %cst_130 = arith.constant dense<0.000000e+00> : vector<16x8xf32>
    %497 = tpu.matmul %329, %496, %cst_130 {dimension_numbers = #tpu.dot_dimension_numbers<[1], [0], [0], [1], [0, 0, 1, 1], [], []>} : vector<16x32xbf16>, vector<32x8xbf16>, vector<16x8xf32> -> vector<16x8xf32>
    %498 = vector.extract_strided_slice %324 {offsets = [11, 0, 0], sizes = [1, 1, 8], strides = [1, 1, 1]} : vector<12x1x8xf32> to vector<1x1x8xf32>
    %499 = vector.shape_cast %498 : vector<1x1x8xf32> to vector<1x8xf32>
    %500 = vector.broadcast %499 : vector<1x8xf32> to vector<16x8xf32>
    %501 = arith.addf %497, %500 : vector<16x8xf32>
    %502 = vector.shape_cast %501 : vector<16x8xf32> to vector<2x8x8xf32>
    %503 = arith.truncf %486 : vector<2x8x8xf32> to vector<2x8x8xbf16>
    %504 = arith.truncf %494 : vector<2x8x8xf32> to vector<2x8x8xbf16>
    "tpu.trace_start"() <{level = 10 : i32, message = "bqd,bkd->bqk"}> : () -> ()
    %cst_131 = arith.constant dense<0.000000e+00> : vector<2x8x8xf32>
    %505 = tpu.matmul %503, %504, %cst_131 {dimension_numbers = #tpu.dot_dimension_numbers<[2], [2], [1], [1], [0, 0, 0, 1, 1, 1], [0], [0]>} : vector<2x8x8xbf16>, vector<2x8x8xbf16>, vector<2x8x8xf32> -> vector<2x8x8xf32>
    "tpu.trace_stop"() : () -> ()
    %cst_132 = arith.constant 0.353553385 : f32
    %506 = vector.broadcast %cst_132 : f32 to vector<2x8x8xf32>
    %507 = arith.mulf %505, %506 : vector<2x8x8xf32>
    %508 = vector.broadcast %31 : vector<2x1x8xf32> to vector<2x8x8xf32>
    %509 = arith.addf %507, %508 : vector<2x8x8xf32>
    %cst_133 = arith.constant dense<0xFF800000> : vector<2x8xf32>
    %510 = vector.multi_reduction <maximumf>, %509, %cst_133 [2] : vector<2x8x8xf32> to vector<2x8xf32>
    %511 = vector.shape_cast %510 : vector<2x8xf32> to vector<2x8x1xf32>
    %512 = vector.broadcast %511 : vector<2x8x1xf32> to vector<2x8x8xf32>
    %513 = arith.subf %509, %512 : vector<2x8x8xf32>
    %514 = math.exp %513 : vector<2x8x8xf32>
    %cst_134 = arith.constant dense<0.000000e+00> : vector<2x8xf32>
    %515 = vector.multi_reduction <add>, %514, %cst_134 [2] : vector<2x8x8xf32> to vector<2x8xf32>
    %516 = vector.shape_cast %515 : vector<2x8xf32> to vector<2x8x1xf32>
    %517 = tpu.reciprocal %516 {approx = true} : vector<2x8x1xf32> -> vector<2x8x1xf32>
    %518 = vector.broadcast %517 : vector<2x8x1xf32> to vector<2x8x8xf32>
    %519 = arith.mulf %514, %518 : vector<2x8x8xf32>
    %520 = arith.truncf %519 : vector<2x8x8xf32> to vector<2x8x8xbf16>
    %521 = arith.truncf %502 : vector<2x8x8xf32> to vector<2x8x8xbf16>
    "tpu.trace_start"() <{level = 10 : i32, message = "bqk,bkd->bqd"}> : () -> ()
    %cst_135 = arith.constant dense<0.000000e+00> : vector<2x8x8xf32>
    %522 = tpu.matmul %520, %521, %cst_135 {dimension_numbers = #tpu.dot_dimension_numbers<[2], [1], [1], [2], [0, 0, 0, 1, 1, 2], [0], [0]>} : vector<2x8x8xbf16>, vector<2x8x8xbf16>, vector<2x8x8xf32> -> vector<2x8x8xf32>
    "tpu.trace_stop"() : () -> ()
    %523 = vector.shape_cast %522 : vector<2x8x8xf32> to vector<16x8xf32>
    %524 = arith.truncf %523 : vector<16x8xf32> to vector<16x8xbf16>
    %525 = vector.extract_strided_slice %326 {offsets = [3, 0, 0], sizes = [1, 8, 32], strides = [1, 1, 1]} : vector<4x8x32xbf16> to vector<1x8x32xbf16>
    %526 = vector.shape_cast %525 : vector<1x8x32xbf16> to vector<8x32xbf16>
    %cst_136 = arith.constant dense<0.000000e+00> : vector<16x32xf32>
    %527 = tpu.matmul %524, %526, %cst_136 {dimension_numbers = #tpu.dot_dimension_numbers<[1], [0], [0], [1], [0, 0, 1, 1], [], []>} : vector<16x8xbf16>, vector<8x32xbf16>, vector<16x32xf32> -> vector<16x32xf32>
    %528 = arith.addf %478, %527 : vector<16x32xf32>
    %529 = vector.extract_strided_slice %328 {offsets = [0, 0], sizes = [1, 32], strides = [1, 1]} : vector<6x32xf32> to vector<1x32xf32>
    %530 = vector.broadcast %529 : vector<1x32xf32> to vector<16x32xf32>
    %531 = arith.addf %528, %530 : vector<16x32xf32>
    %532 = arith.addf %531, %320 : vector<16x32xf32>
    %533 = vector.extract_strided_slice %328 {offsets = [1, 0], sizes = [1, 32], strides = [1, 1]} : vector<6x32xf32> to vector<1x32xf32>
    %534 = vector.extract_strided_slice %328 {offsets = [2, 0], sizes = [1, 32], strides = [1, 1]} : vector<6x32xf32> to vector<1x32xf32>
    %cst_137 = arith.constant dense<0.000000e+00> : vector<16xf32>
    %535 = vector.multi_reduction <add>, %532, %cst_137 [1] : vector<16x32xf32> to vector<16xf32>
    %536 = vector.shape_cast %535 : vector<16xf32> to vector<16x1xf32>
    %cst_138 = arith.constant 3.200000e+01 : f32
    %537 = vector.broadcast %cst_138 : f32 to vector<16x1xf32>
    %538 = arith.divf %536, %537 : vector<16x1xf32>
    %539 = vector.broadcast %538 : vector<16x1xf32> to vector<16x32xf32>
    %540 = arith.subf %532, %539 : vector<16x32xf32>
    %541 = arith.mulf %540, %540 : vector<16x32xf32>
    %cst_139 = arith.constant dense<0.000000e+00> : vector<16xf32>
    %542 = vector.multi_reduction <add>, %541, %cst_139 [1] : vector<16x32xf32> to vector<16xf32>
    %543 = vector.shape_cast %542 : vector<16xf32> to vector<16x1xf32>
    %cst_140 = arith.constant 3.200000e+01 : f32
    %544 = vector.broadcast %cst_140 : f32 to vector<16x1xf32>
    %545 = arith.divf %543, %544 : vector<16x1xf32>
    %546 = vector.broadcast %538 : vector<16x1xf32> to vector<16x32xf32>
    %547 = arith.subf %532, %546 : vector<16x32xf32>
    %cst_141 = arith.constant 9.99999996E-13 : f32
    %548 = vector.broadcast %cst_141 : f32 to vector<16x1xf32>
    %549 = arith.addf %545, %548 : vector<16x1xf32>
    %550 = math.rsqrt %549 : vector<16x1xf32>
    %551 = vector.broadcast %550 : vector<16x1xf32> to vector<16x32xf32>
    %552 = arith.mulf %547, %551 : vector<16x32xf32>
    %553 = vector.broadcast %533 : vector<1x32xf32> to vector<16x32xf32>
    %554 = arith.mulf %552, %553 : vector<16x32xf32>
    %555 = vector.broadcast %534 : vector<1x32xf32> to vector<16x32xf32>
    %556 = arith.addf %554, %555 : vector<16x32xf32>
    %557 = arith.truncf %556 : vector<16x32xf32> to vector<16x32xbf16>
    %c1_142 = arith.constant 1 : index
    %c0_143 = arith.constant 0 : index
    %c0_144 = arith.constant 0 : index
    %558 = vector.load %arg8[%c1_142, %c0_143, %c0_144] : memref<2x32x64xbf16, #tpu.memory_space<vmem>>, vector<1x32x64xbf16>
    %559 = vector.shape_cast %558 : vector<1x32x64xbf16> to vector<32x64xbf16>
    %cst_145 = arith.constant dense<0.000000e+00> : vector<16x64xf32>
    %560 = tpu.matmul %557, %559, %cst_145 {dimension_numbers = #tpu.dot_dimension_numbers<[1], [0], [0], [1], [0, 0, 1, 1], [], []>} : vector<16x32xbf16>, vector<32x64xbf16>, vector<16x64xf32> -> vector<16x64xf32>
    %c1_146 = arith.constant 1 : index
    %c0_147 = arith.constant 0 : index
    %c0_148 = arith.constant 0 : index
    %561 = vector.load %arg9[%c1_146, %c0_147, %c0_148] : memref<2x1x64xf32, #tpu.memory_space<vmem>>, vector<1x1x64xf32>
    %562 = vector.shape_cast %561 : vector<1x1x64xf32> to vector<1x64xf32>
    %563 = vector.broadcast %562 : vector<1x64xf32> to vector<16x64xf32>
    %564 = arith.addf %560, %563 : vector<16x64xf32>
    %565 = arith.mulf %564, %564 : vector<16x64xf32>
    %566 = arith.mulf %564, %565 : vector<16x64xf32>
    %cst_149 = arith.constant 4.471500e-02 : f32
    %567 = vector.broadcast %cst_149 : f32 to vector<16x64xf32>
    %568 = arith.mulf %567, %566 : vector<16x64xf32>
    %569 = arith.addf %564, %568 : vector<16x64xf32>
    %cst_150 = arith.constant 0.797884583 : f32
    %570 = vector.broadcast %cst_150 : f32 to vector<16x64xf32>
    %571 = arith.mulf %570, %569 : vector<16x64xf32>
    %572 = math.tanh %571 : vector<16x64xf32>
    %cst_151 = arith.constant 1.000000e+00 : f32
    %573 = vector.broadcast %cst_151 : f32 to vector<16x64xf32>
    %574 = arith.addf %573, %572 : vector<16x64xf32>
    %cst_152 = arith.constant 5.000000e-01 : f32
    %575 = vector.broadcast %cst_152 : f32 to vector<16x64xf32>
    %576 = arith.mulf %575, %574 : vector<16x64xf32>
    %577 = arith.mulf %564, %576 : vector<16x64xf32>
    %578 = arith.truncf %577 : vector<16x64xf32> to vector<16x64xbf16>
    %c1_153 = arith.constant 1 : index
    %c0_154 = arith.constant 0 : index
    %c0_155 = arith.constant 0 : index
    %579 = vector.load %arg10[%c1_153, %c0_154, %c0_155] : memref<2x64x32xbf16, #tpu.memory_space<vmem>>, vector<1x64x32xbf16>
    %580 = vector.shape_cast %579 : vector<1x64x32xbf16> to vector<64x32xbf16>
    %cst_156 = arith.constant dense<0.000000e+00> : vector<16x32xf32>
    %581 = tpu.matmul %578, %580, %cst_156 {dimension_numbers = #tpu.dot_dimension_numbers<[1], [0], [0], [1], [0, 0, 1, 1], [], []>} : vector<16x64xbf16>, vector<64x32xbf16>, vector<16x32xf32> -> vector<16x32xf32>
    %582 = vector.extract_strided_slice %328 {offsets = [3, 0], sizes = [1, 32], strides = [1, 1]} : vector<6x32xf32> to vector<1x32xf32>
    %583 = vector.broadcast %582 : vector<1x32xf32> to vector<16x32xf32>
    %584 = arith.addf %581, %583 : vector<16x32xf32>
    %585 = arith.addf %584, %556 : vector<16x32xf32>
    %586 = vector.extract_strided_slice %328 {offsets = [4, 0], sizes = [1, 32], strides = [1, 1]} : vector<6x32xf32> to vector<1x32xf32>
    %587 = vector.extract_strided_slice %328 {offsets = [5, 0], sizes = [1, 32], strides = [1, 1]} : vector<6x32xf32> to vector<1x32xf32>
    %cst_157 = arith.constant dense<0.000000e+00> : vector<16xf32>
    %588 = vector.multi_reduction <add>, %585, %cst_157 [1] : vector<16x32xf32> to vector<16xf32>
    %589 = vector.shape_cast %588 : vector<16xf32> to vector<16x1xf32>
    %cst_158 = arith.constant 3.200000e+01 : f32
    %590 = vector.broadcast %cst_158 : f32 to vector<16x1xf32>
    %591 = arith.divf %589, %590 : vector<16x1xf32>
    %592 = vector.broadcast %591 : vector<16x1xf32> to vector<16x32xf32>
    %593 = arith.subf %585, %592 : vector<16x32xf32>
    %594 = arith.mulf %593, %593 : vector<16x32xf32>
    %cst_159 = arith.constant dense<0.000000e+00> : vector<16xf32>
    %595 = vector.multi_reduction <add>, %594, %cst_159 [1] : vector<16x32xf32> to vector<16xf32>
    %596 = vector.shape_cast %595 : vector<16xf32> to vector<16x1xf32>
    %cst_160 = arith.constant 3.200000e+01 : f32
    %597 = vector.broadcast %cst_160 : f32 to vector<16x1xf32>
    %598 = arith.divf %596, %597 : vector<16x1xf32>
    %599 = vector.broadcast %591 : vector<16x1xf32> to vector<16x32xf32>
    %600 = arith.subf %585, %599 : vector<16x32xf32>
    %cst_161 = arith.constant 9.99999996E-13 : f32
    %601 = vector.broadcast %cst_161 : f32 to vector<16x1xf32>
    %602 = arith.addf %598, %601 : vector<16x1xf32>
    %603 = math.rsqrt %602 : vector<16x1xf32>
    %604 = vector.broadcast %603 : vector<16x1xf32> to vector<16x32xf32>
    %605 = arith.mulf %600, %604 : vector<16x32xf32>
    %606 = vector.broadcast %586 : vector<1x32xf32> to vector<16x32xf32>
    %607 = arith.mulf %605, %606 : vector<16x32xf32>
    %608 = vector.broadcast %587 : vector<1x32xf32> to vector<16x32xf32>
    %609 = arith.addf %607, %608 : vector<16x32xf32>
    %610 = vector.shape_cast %609 : vector<16x32xf32> to vector<2x8x32xf32>
    %611 = vector.extract_strided_slice %610 {offsets = [0, 0, 0], sizes = [2, 1, 32], strides = [1, 1, 1]} : vector<2x8x32xf32> to vector<2x1x32xf32>
    %612 = vector.shape_cast %611 : vector<2x1x32xf32> to vector<2x32xf32>
    %613 = arith.truncf %612 : vector<2x32xf32> to vector<2x32xbf16>
    %c0_162 = arith.constant 0 : index
    %c0_163 = arith.constant 0 : index
    %614 = vector.load %arg11[%c0_162, %c0_163] : memref<32x32xbf16, #tpu.memory_space<vmem>>, vector<32x32xbf16>
    %cst_164 = arith.constant dense<0.000000e+00> : vector<2x32xf32>
    %615 = tpu.matmul %613, %614, %cst_164 {dimension_numbers = #tpu.dot_dimension_numbers<[1], [0], [0], [1], [0, 0, 1, 1], [], []>} : vector<2x32xbf16>, vector<32x32xbf16>, vector<2x32xf32> -> vector<2x32xf32>
    %c0_165 = arith.constant 0 : index
    %c0_166 = arith.constant 0 : index
    %616 = vector.load %arg12[%c0_165, %c0_166] : memref<1x32xf32, #tpu.memory_space<vmem>>, vector<1x32xf32>
    %617 = vector.broadcast %616 : vector<1x32xf32> to vector<2x32xf32>
    %618 = arith.addf %615, %617 : vector<2x32xf32>
    %619 = math.tanh %618 : vector<2x32xf32>
    %620 = arith.truncf %619 : vector<2x32xf32> to vector<2x32xbf16>
    %c0_167 = arith.constant 0 : index
    %c0_168 = arith.constant 0 : index
    %621 = vector.load %arg13[%c0_167, %c0_168] : memref<32x3xbf16, #tpu.memory_space<vmem>>, vector<32x3xbf16>
    %cst_169 = arith.constant dense<0.000000e+00> : vector<2x3xf32>
    %622 = tpu.matmul %620, %621, %cst_169 {dimension_numbers = #tpu.dot_dimension_numbers<[1], [0], [0], [1], [0, 0, 1, 1], [], []>} : vector<2x32xbf16>, vector<32x3xbf16>, vector<2x3xf32> -> vector<2x3xf32>
    %c0_170 = arith.constant 0 : index
    %c0_171 = arith.constant 0 : index
    %623 = vector.load %arg14[%c0_170, %c0_171] : memref<1x3xf32, #tpu.memory_space<vmem>>, vector<1x3xf32>
    %624 = vector.broadcast %623 : vector<1x3xf32> to vector<2x3xf32>
    %625 = arith.addf %622, %624 : vector<2x3xf32>
    %c0_172 = arith.constant 0 : index
    %c0_173 = arith.constant 0 : index
    %626 = vector.load %arg15[%c0_172, %c0_173] : memref<2x3xf32, #tpu.memory_space<vmem>>, vector<2x3xf32>
    tpu.vector_store %arg15[%c0_172, %c0_173], %625 {strides = array<i32>} : memref<2x3xf32, #tpu.memory_space<vmem>>, vector<2x3xf32>,
    return
  }
  func.func @transform_0(%arg0: i32) -> (i32, i32) {
    %c0_i32 = arith.constant 0 : i32
    %c0_i32_0 = arith.constant 0 : i32
    %c0_i32_1 = arith.constant 0 : i32
    return %c0_i32, %c0_i32_0 : i32, i32
  }
  func.func @transform_1(%arg0: i32) -> (i32, i32) {
    %c0_i32 = arith.constant 0 : i32
    %c0_i32_0 = arith.constant 0 : i32
    %c0_i32_1 = arith.constant 0 : i32
    return %c0_i32, %c0_i32_0 : i32, i32
  }
  func.func @transform_2(%arg0: i32) -> (i32, i32) {
    %c0_i32 = arith.constant 0 : i32
    %c0_i32_0 = arith.constant 0 : i32
    %c0_i32_1 = arith.constant 0 : i32
    return %c0_i32, %c0_i32_0 : i32, i32
  }
  func.func @transform_3(%arg0: i32) -> (i32, i32, i32, i32) {
    %c0_i32 = arith.constant 0 : i32
    %c0_i32_0 = arith.constant 0 : i32
    %c0_i32_1 = arith.constant 0 : i32
    %c0_i32_2 = arith.constant 0 : i32
    %c0_i32_3 = arith.constant 0 : i32
    return %c0_i32, %c0_i32_0, %c0_i32_1, %c0_i32_2 : i32, i32, i32, i32
  }
  func.func @transform_4(%arg0: i32) -> (i32, i32, i32, i32) {
    %c0_i32 = arith.constant 0 : i32
    %c0_i32_0 = arith.constant 0 : i32
    %c0_i32_1 = arith.constant 0 : i32
    %c0_i32_2 = arith.constant 0 : i32
    %c0_i32_3 = arith.constant 0 : i32
    return %c0_i32, %c0_i32_0, %c0_i32_1, %c0_i32_2 : i32, i32, i32, i32
  }
  func.func @transform_5(%arg0: i32) -> (i32, i32, i32, i32) {
    %c0_i32 = arith.constant 0 : i32
    %c0_i32_0 = arith.constant 0 : i32
    %c0_i32_1 = arith.constant 0 : i32
    %c0_i32_2 = arith.constant 0 : i32
    %c0_i32_3 = arith.constant 0 : i32
    return %c0_i32, %c0_i32_0, %c0_i32_1, %c0_i32_2 : i32, i32, i32, i32
  }
  func.func @transform_6(%arg0: i32) -> (i32, i32, i32) {
    %c0_i32 = arith.constant 0 : i32
    %c0_i32_0 = arith.constant 0 : i32
    %c0_i32_1 = arith.constant 0 : i32
    %c0_i32_2 = arith.constant 0 : i32
    return %c0_i32, %c0_i32_0, %c0_i32_1 : i32, i32, i32
  }
  func.func @transform_7(%arg0: i32) -> (i32, i32, i32) {
    %c0_i32 = arith.constant 0 : i32
    %c0_i32_0 = arith.constant 0 : i32
    %c0_i32_1 = arith.constant 0 : i32
    %c0_i32_2 = arith.constant 0 : i32
    return %c0_i32, %c0_i32_0, %c0_i32_1 : i32, i32, i32
  }
  func.func @transform_8(%arg0: i32) -> (i32, i32, i32) {
    %c0_i32 = arith.constant 0 : i32
    %c0_i32_0 = arith.constant 0 : i32
    %c0_i32_1 = arith.constant 0 : i32
    %c0_i32_2 = arith.constant 0 : i32
    return %c0_i32, %c0_i32_0, %c0_i32_1 : i32, i32, i32
  }
  func.func @transform_9(%arg0: i32) -> (i32, i32, i32) {
    %c0_i32 = arith.constant 0 : i32
    %c0_i32_0 = arith.constant 0 : i32
    %c0_i32_1 = arith.constant 0 : i32
    %c0_i32_2 = arith.constant 0 : i32
    return %c0_i32, %c0_i32_0, %c0_i32_1 : i32, i32, i32
  }
  func.func @transform_10(%arg0: i32) -> (i32, i32) {
    %c0_i32 = arith.constant 0 : i32
    %c0_i32_0 = arith.constant 0 : i32
    %c0_i32_1 = arith.constant 0 : i32
    return %c0_i32, %c0_i32_0 : i32, i32
  }
  func.func @transform_11(%arg0: i32) -> (i32, i32) {
    %c0_i32 = arith.constant 0 : i32
    %c0_i32_0 = arith.constant 0 : i32
    %c0_i32_1 = arith.constant 0 : i32
    return %c0_i32, %c0_i32_0 : i32, i32
  }
  func.func @transform_12(%arg0: i32) -> (i32, i32) {
    %c0_i32 = arith.constant 0 : i32
    %c0_i32_0 = arith.constant 0 : i32
    %c0_i32_1 = arith.constant 0 : i32
    return %c0_i32, %c0_i32_0 : i32, i32
  }
  func.func @transform_13(%arg0: i32) -> (i32, i32) {
    %c0_i32 = arith.constant 0 : i32
    %c0_i32_0 = arith.constant 0 : i32
    %c0_i32_1 = arith.constant 0 : i32
    return %c0_i32, %c0_i32_0 : i32, i32
  }
  func.func @transform_14(%arg0: i32) -> (i32, i32) {
    %c0_i32 = arith.constant 0 : i32
    %c0_i32_0 = arith.constant 0 : i32
    %c0_i32_1 = arith.constant 0 : i32
    return %c0_i32, %c0_i32_0 : i32, i32
  }
}

</mosaic_0001>

<bundles_post_ra>
// kernel: tpu_custom_call.1
= control target key start
LH: loop header
LB: loop body
LE: loop exit
PB: predicated region body
PF: predicated region fallthrough
CT: control target
= control target key end

     0   :  { %vm52_vm0 = vcmask 261120   ;;  %s3852_s0 = inlined_call_operand.vmem [shape: f32[16,32], index: 0, kind: input, shape index: {}]   ;;  %s3853_s1 = inlined_call_operand.vmem [shape: f32[2,8], index: 1, kind: input, shape index: {}]   ;;  %s3854_s2 = inlined_call_operand.vmem [shape: f32[2,32], index: 2, kind: input, shape index: {}]   ;;  %s3855_s3 = inlined_call_operand.vmem [shape: bf16[2,12,32,8], index: 3, kind: input, shape index: {}]   ;;  %s3856_s4 = inlined_call_operand.vmem [shape: f32[2,12,1,8], index: 4, kind: input, shape index: {}]   ;;  %s3857_s5 = inlined_call_operand.vmem [shape: bf16[2,4,8,32], index: 5, kind: input, shape index: {}]   ;;  %s3858_s6 = inlined_call_operand.vmem [shape: f32[2,6,32], index: 6, kind: input, shape index: {}]   ;;  %s3859_s7 = inlined_call_operand.vmem [shape: bf16[2,32,64], index: 7, kind: input, shape index: {}]   ;;  %s3860_s8 = inlined_call_operand.vmem [shape: f32[2,1,64], index: 8, kind: input, shape index: {}]   ;;  %s3861_s9 = inlined_call_operand.vmem [shape: bf16[2,64,32], index: 9, kind: input, shape index: {}]   ;;  %s3862_s10 = inlined_call_operand.vmem [shape: bf16[32,32], index: 10, kind: input, shape index: {}]   ;;  %s3863_s11 = inlined_call_operand.vmem [shape: f32[1,32], index: 11, kind: input, shape index: {}]   ;;  %s3864_s12 = inlined_call_operand.vmem [shape: bf16[32,3], index: 12, kind: input, shape index: {}]   ;;  %s3865_s13 = inlined_call_operand.vmem [shape: f32[1,3], index: 13, kind: input, shape index: {}]   ;;  %s3866_s14 = inlined_call_operand.hbm [shape: f32[2,3], index: 14, kind: output, shape index: {}]  }
   0x1   :  { %v50_v0 = vld [vmem:[%s3852_s0] sm:$0xff]  ;;  %v51_v1 = vld [vmem:[%s3852_s0 + $0x8] sm:$0xff] }
   0x2   :  { %v53_v2 = vsel %vm52_vm0, %v50_v0, 0.0  ;;  %v56_v3 = vsel %vm52_vm0, %v51_v1, 0.0 }
   0x3   :  { %54 = vadd.xlane.f32.xlu0 %v53_v2 }
   0xb   :  { %57 = vadd.xlane.f32.xlu0 %v56_v3 }
   0xc   :  { %19 = vsyncpa [#allocation3], 0  ;;  %v3169_v4 = vmov 32.0   ;;  %v2954_v21 = vld [vmem:[%s3855_s3 + $0x8] sm:$0xff]  ;;  %v2956_v22 = vld [vmem:[%s3855_s3 + $0x18] sm:$0xff]  ;;  %vm275_vm8 = vcmask 64512  }
   0xd   :  { %3047 = vrcp.f32 %v3169_v4  ;;  %v2958_v23 = vld [vmem:[%s3855_s3 + $0x28] sm:$0xff]  ;;  %205 = vmatpush.bf16.msra.mxu0 %v2954_v21  ;;  %234 = vmatpush.bf16.msra.mxu1 %v2956_v22  ;;  %v2953_v26 = vld [vmem:[%s3855_s3] sm:$0xff]  ;;  %v2955_v27 = vld [vmem:[%s3855_s3 + $0x10] sm:$0xff]  ;;  %vm351_vm9 = vcmask 1043456   ;;  %s3170_s25 = smov [#allocation2]   ;;  %s2540_s26 = sshll.u32 %s3866_s14, 4  ;;  %s2541_s26 = int_to_ptr.hbm [resolvable:$true] %s2540_s26 }
   0xe   :  { %263 = vmatpush.bf16.msra.mxu2 %v2958_v23  ;;  %v2957_v28 = vld [vmem:[%s3855_s3 + $0x20] sm:$0xff]  ;;  %v2960_v63 = vld [vmem:[%s3855_s3 + $0x38] sm:$0xff]  ;;  %v2959_v4 = vld [vmem:[%s3855_s3 + $0x30] sm:$0xff] }
   0xf   :  { %v49_v42 = vld [vmem:[%s3854_s2] sm:$0x3] }
  0x10   :  { %v104_v47 = vperm.slane %v49_v42, 0  ;;  %v107_v51 = vperm.slane %v49_v42, 1  ;;  %v3020_v57 = vld [vmem:[%s3856_s4 + $0x1] ss:$0 sm:$0xff]  ;;  %v3019_v61 = vld [vmem:[%s3856_s4] ss:$0 sm:$0xff] }
  0x11   :  { %206 = vmatpush.bf16.msra.mxu0 %v2953_v26  ;;  %235 = vmatpush.bf16.msra.mxu1 %v2955_v27  ;;  %v110_v23 = vld [vmem:[%s3853_s1] sm:$0x3] }
  0x12   :  { %264 = vmatpush.bf16.msra.mxu2 %v2957_v28 }
  0x13   :  { %v3048_v5 = vpop.eup %3047 }
  0x14   :  { %v60_v6 = vmul.f32 32.0, %v3048_v5  ;;  %vm64_vm1 = vweird.f32 %v3048_v5 }
  0x16   :  { %v61_v7 = vsub.f32 1.0, %v60_v6 }
  0x18   :  { %v62_v8 = vmul.f32 %v3048_v5, %v61_v7 }
  0x1a   :  { %v63_v9 = vadd.f32 %v3048_v5, %v62_v8 }
  0x1c   :  { %v3254_v10 = vsel %vm64_vm1, %v3048_v5, %v63_v9  ;;  %vm1211_vm1 = vcmask 523264  }
  0x76   :  { %v55_v11 = vpop.xlane.xlu0 %54 }
  0x77   :  { %v66_v12 = vmul.f32 %v3254_v10, %v55_v11 }
  0x79   :  { %v68_v13 = vsub.f32 %v50_v0, %v66_v12  ;;  %v3021_v0 = vld [vmem:[%s3856_s4 + $0x2] ss:$0 sm:$0xff]  ;;  %v2962_v12 = vld [vmem:[%s3855_s3 + $0x48] sm:$0xff] }
  0x7b   :  { %v70_v14 = vmul.f32 %v68_v13, %v68_v13 }
  0x7d   :  { %v72_v15 = vsel %vm52_vm0, %v70_v14, 0.0 }
  0x7e   :  { %73 = vadd.xlane.f32.xlu1 %v72_v15  ;;  %v58_v16 = vpop.xlane.xlu0 %57 }
  0x7f   :  { %v67_v17 = vmul.f32 %v3254_v10, %v58_v16 }
  0x81   :  { %v69_v18 = vsub.f32 %v51_v1, %v67_v17 }
  0x83   :  { %v71_v19 = vmul.f32 %v69_v18, %v69_v18 }
  0x85   :  { %v75_v20 = vsel %vm52_vm0, %v71_v19, 0.0 }
  0x86   :  { %76 = vadd.xlane.f32.xlu1 %v75_v20 }
  0xf1   :  { %v74_v24 = vpop.xlane.xlu1 %73 }
  0xf2   :  { %v78_v25 = vmul.f32 %v74_v24, %v3254_v10  ;;  %v111_v24 = vsub.f32 1.0, %v110_v23 }
  0xf4   :  { %v80_v29 = vadd.f32 1e-12, %v78_v25  ;;  %v112_v25 = vmul.f32 -10000.0, %v111_v24 }
  0xf6   :  { %3049 = vrsqrt.f32 %v80_v29  ;;  %vm88_vm3 = vweird.f32 %v80_v29  ;;  %v114_v26 = vrot.slane %v112_v25, 1  ;;  %v3331_v27 = vperm.slane %v112_v25, 0  ;;  %v175_v25 = vld [vmem:[%s3857_s5] sm:$0xf] }
  0xf9   :  { %v77_v30 = vpop.xlane.xlu1 %76 }
  0xfa   :  { %v79_v31 = vmul.f32 %v77_v30, %v3254_v10  ;;  %v3333_v30 = vperm.slane %v114_v26, 0  ;;  %v610_v26 = vsel %vm351_vm9, %v175_v25, 0  ;;  %v3026_v25 = vld [vmem:[%s3856_s4 + $0x6] ss:$0 sm:$0xff] }
  0xfc   :  { %v3050_v32 = vpop.eup %3049  ;;  %v81_v33 = vadd.f32 1e-12, %v79_v31 }
  0xfd   :  { %v83_v34 = vmul.f32 %v3050_v32, %v80_v29  ;;  %vm89_vm2 = vweird.f32 %v3050_v32 }
  0xfe   :  { %3051 = vrsqrt.f32 %v81_v33  ;;  %vm90_vm4 = vmor %vm88_vm3, %vm89_vm2  ;;  %vm98_vm6 = vweird.f32 %v81_v33 }
  0xff   :  { %v84_v35 = vmul.f32 %v3050_v32, %v83_v34 }
 0x101   :  { %v85_v36 = vmul.f32 0.5, %v84_v35 }
 0x103   :  { %v86_v37 = vsub.f32 1.5, %v85_v36 }
 0x104   :  { %v3052_v38 = vpop.eup %3051 }
 0x105   :  { %v87_v39 = vmul.f32 %v3050_v32, %v86_v37  ;;  %v93_v40 = vmul.f32 %v3052_v38, %v81_v33  ;;  %vm99_vm5 = vweird.f32 %v3052_v38 }
 0x106   :  { %vm100_vm7 = vmor %vm98_vm6, %vm99_vm5 }
 0x107   :  { %v94_v41 = vmul.f32 %v3052_v38, %v93_v40  ;;  %v91_v43 = vsel %vm90_vm4, %v3050_v32, %v87_v39  ;;  %v3022_v39 = vld [vmem:[%s3856_s4 + $0x3] ss:$0 sm:$0xff]  ;;  %v3023_v40 = vld [vmem:[%s3856_s4 + $0x4] ss:$0 sm:$0xff] }
 0x108   :  { %v102_v46 = vmul.f32 %v91_v43, %v68_v13 }
 0x109   :  { %v95_v44 = vmul.f32 0.5, %v94_v41 }
 0x10a   :  { %v105_v50 = vmul.f32 %v104_v47, %v102_v46 }
 0x10b   :  { %v96_v45 = vsub.f32 1.5, %v95_v44 }
 0x10c   :  { %v3283_v54 = vadd.f32 %v107_v51, %v105_v50 }
 0x10d   :  { %v97_v48 = vmul.f32 %v3052_v38, %v96_v45 }
 0x10f   :  { %v101_v49 = vsel %vm100_vm7, %v3052_v38, %v97_v48 }
 0x110   :  { %v103_v52 = vmul.f32 %v101_v49, %v69_v18  ;;  %v2961_v18 = vld [vmem:[%s3855_s3 + $0x40] sm:$0xff] }
 0x112   :  { %v106_v53 = vmul.f32 %v104_v47, %v103_v52 }
 0x114   :  { %v3285_v55 = vadd.f32 %v107_v51, %v106_v53 }
 0x116   :  { %v3289_v56 = vpack.c.bf16 %v3285_v55, %v3283_v54 }
 0x118   :  { %2557 = vmatmul.msk.bf16.vlgmr.msra.gmra.mxu0 %vm52_vm0, %v3289_v56  ;;  %2566 = vmatmul.msk.bf16.vlgmr.msra.gmra.mxu1 %vm52_vm0, %v3289_v56 }
 0x119   :  { %2575 = vmatmul.msk.bf16.vlgmr.msra.gmra.mxu2 %vm52_vm0, %v3289_v56 }
 0x195   :  { %v237_v58 = vpop.f32.mrf.mxu1  ;;  %v208_v60 = vpop.f32.mrf.mxu0 }
 0x196   :  { %v238_v59 = vadd.f32 %v3020_v57, %v237_v58  ;;  %v209_v2 = vadd.f32 %v3019_v61, %v208_v60 }
 0x198   :  { %v273_v62 = vpack.c.bf16 %v238_v59, %v238_v59  ;;  %v271_v9 = vpack.c.bf16 %v209_v2, %v209_v2 }
 0x19a   :  { %v280_v1 = vsel %vm275_vm8, %v273_v62, 0 }
 0x19b   :  { %289 = vmatpush.bf16.xpose.msra.mxu3 %v280_v1 }
 0x19c   :  { %v266_v3 = vpop.f32.mrf.mxu2 }
 0x19d   :  { %v267_v5 = vadd.f32 %v3021_v0, %v266_v3  ;;  %v239_v6 = vpop.f32.mrf.mxu1  ;;  %v210_v13 = vpop.f32.mrf.mxu0 }
 0x19e   :  { %v240_v7 = vadd.f32 %v3020_v57, %v239_v6  ;;  %v211_v16 = vadd.f32 %v3019_v61, %v210_v13 }
 0x19f   :  { %v346_v8 = vpack.c.bf16 %v267_v5, %v267_v5 }
 0x1a0   :  { %v274_v11 = vpack.c.bf16 %v240_v7, %v240_v7  ;;  %v272_v21 = vpack.c.bf16 %v211_v16, %v211_v16 }
 0x1a1   :  { %v353_v14 = vsel %vm351_vm9, %v346_v8, 0  ;;  %v2964_v8 = vld [vmem:[%s3855_s3 + $0x58] sm:$0xff] }
 0x1a2   :  { %362 = vmatpush.bf16.msrb.mxu1 %v353_v14  ;;  %2576 = vmatmul.msk.bf16.vlgmr.msra.gmra.mxu3 %vm275_vm8, %v271_v9  ;;  %v299_v15 = vsel %vm275_vm8, %v274_v11, 0  ;;  %v2963_v9 = vld [vmem:[%s3855_s3 + $0x50] sm:$0xff] }
 0x1a3   :  { %409 = vmatpush.bf16.msrb.mxu3 %v2960_v63  ;;  %308 = vmatpush.bf16.xpose.msrb.mxu0 %v299_v15 }
 0x1a4   :  { %v268_v17 = vpop.f32.mrf.mxu2 }
 0x1a5   :  { %v269_v19 = vadd.f32 %v3021_v0, %v268_v17 }
 0x1a6   :  { %467 = vmatpush.bf16.msra.mxu1 %v2964_v8 }
 0x1a7   :  { %410 = vmatpush.bf16.msrb.mxu3 %v2959_v4  ;;  %v347_v20 = vpack.c.bf16 %v269_v19, %v269_v19 }
 0x1a9   :  { %v372_v22 = vsel %vm351_vm9, %v347_v20, 0 }
 0x1aa   :  { %381 = vmatpush.bf16.msrb.mxu2 %v372_v22  ;;  %2577 = vmatmul.msk.bf16.vlgmr.msrb.gmra.mxu0 %vm275_vm8, %v272_v21 }
 0x1ab   :  { %438 = vmatpush.bf16.msra.mxu0 %v2962_v12  ;;  %468 = vmatpush.bf16.msra.mxu1 %v2963_v9 }
 0x1af   :  { %439 = vmatpush.bf16.msra.mxu0 %v2961_v18 }
 0x1b2   :  { %2588 = vmatmul.msk.bf16.vlgmr.msrb.gmra.mxu3 %vm52_vm0, %v3289_v56 }
 0x1ba   :  { %2597 = vmatmul.msk.bf16.vlgmr.msra.gmra.mxu0 %vm52_vm0, %v3289_v56 }
 0x225   :  { %v291_v28 = vpop.f32.mrf.mxu3 }
 0x226   :  { %v314_v29 = vmul.f32 0.35355338, %v291_v28 }
 0x227   :  { %v310_v31 = vpop.f32.mrf.mxu0 }
 0x228   :  { %v315_v32 = vmul.f32 0.35355338, %v310_v31  ;;  %v320_v33 = vadd.f32 %v3331_v27, %v314_v29 }
 0x22a   :  { %v322_v34 = vsel %vm275_vm8, %v320_v33, -inf  ;;  %v321_v35 = vadd.f32 %v3333_v30, %v315_v32 }
 0x22b   :  { %323 = vmax.xlane.f32.xlu0 %v322_v34 }
 0x22c   :  { %v325_v36 = vsel %vm275_vm8, %v321_v35, -inf }
 0x22d   :  { %326 = vmax.xlane.f32.xlu2 %v325_v36  ;;  %v293_v37 = vpop.f32.mrf.mxu3 }
 0x22f   :  { %v312_v38 = vpop.f32.mrf.mxu0 }
 0x235   :  { %v412_v41 = vpop.f32.mrf.mxu3 }
 0x236   :  { %v413_v42 = vadd.f32 %v3022_v39, %v412_v41 }
 0x237   :  { %v441_v43 = vpop.f32.mrf.mxu0 }
 0x238   :  { %v442_v44 = vadd.f32 %v3023_v40, %v441_v43  ;;  %v475_v19 = vpack.c.bf16 %v413_v42, %v413_v42 }
 0x23a   :  { %v477_v45 = vpack.c.bf16 %v442_v44, %v442_v44 }
 0x23c   :  { %v483_v46 = vsel %vm275_vm8, %v477_v45, 0  ;;  %v2968_v45 = vld [vmem:[%s3855_s3 + $0x78] sm:$0xff] }
 0x23d   :  { %492 = vmatpush.bf16.xpose.msra.mxu2 %v483_v46  ;;  %v414_v50 = vpop.f32.mrf.mxu3 }
 0x23e   :  { %v415_v52 = vadd.f32 %v3022_v39, %v414_v50 }
 0x23f   :  { %v443_v47 = vpop.f32.mrf.mxu0 }
 0x240   :  { %v444_v48 = vadd.f32 %v3023_v40, %v443_v47  ;;  %v476_v53 = vpack.c.bf16 %v415_v52, %v415_v52 }
 0x242   :  { %v478_v49 = vpack.c.bf16 %v444_v48, %v444_v48  ;;  %v2967_v48 = vld [vmem:[%s3855_s3 + $0x70] sm:$0xff] }
 0x244   :  { %v502_v51 = vsel %vm275_vm8, %v478_v49, 0 }
 0x245   :  { %511 = vmatpush.bf16.xpose.msra.mxu3 %v502_v51 }
 0x24c   :  { %2608 = vmatmul.msk.bf16.vlgmr.msra.gmra.mxu3 %vm275_vm8, %v476_v53 }
 0x24d   :  { %619 = vmatpush.bf16.msrb.mxu3 %v610_v26 }
 0x29e   :  { %v324_v57 = vpop.xlane.xlu0 %323 }
 0x29f   :  { %v328_v58 = vsub.f32 %v320_v33, %v324_v57  ;;  %v3024_v33 = vld [vmem:[%s3856_s4 + $0x5] ss:$0 sm:$0xff] }
 0x2a0   :  { %v327_v59 = vpop.xlane.xlu2 %326 }
 0x2a1   :  { %v330_v60 = vmul.f32 1.442695, %v328_v58  ;;  %v329_v61 = vsub.f32 %v321_v35, %v327_v59 }
 0x2a3   :  { %3053 = vpow2.f32 %v330_v60  ;;  %v332_v62 = vmul.f32 1.442695, %v329_v61 }
 0x2a5   :  { %3055 = vpow2.f32 %v332_v62 }
 0x2a9   :  { %v3054_v63 = vpop.eup %3053 }
 0x2aa   :  { %v334_v0 = vsel %vm275_vm8, %v3054_v63, 0.0 }
 0x2ab   :  { %v3056_v1 = vpop.eup %3055  ;;  %335 = vadd.xlane.f32.xlu1 %v334_v0  ;;  %v3025_v0 = vld [vmem:[%s3856_s4 + $0x7] ss:$0 sm:$0xff] }
 0x2ac   :  { %v337_v2 = vsel %vm275_vm8, %v3056_v1, 0.0 }
 0x2ad   :  { %338 = vadd.xlane.f32.xlu2 %v337_v2 }
 0x2cf   :  { %v513_v3 = vpop.f32.mrf.mxu3 }
 0x2d0   :  { %v518_v4 = vmul.f32 0.35355338, %v513_v3 }
 0x2d2   :  { %v520_v5 = vadd.f32 %v518_v4, %v3333_v30 }
 0x2d4   :  { %v524_v6 = vsel %vm275_vm8, %v520_v5, -inf }
 0x2d5   :  { %525 = vmax.xlane.f32.xlu2 %v524_v6  ;;  %v2965_v6 = vld [vmem:[%s3855_s3 + $0x60] sm:$0xff] }
 0x2d7   :  { %v515_v7 = vpop.f32.mrf.mxu3 }
 0x31e   :  { %v336_v11 = vpop.xlane.xlu1 %335 }
 0x31f   :  { %3057 = vrcp.f32 %v336_v11 }
 0x320   :  { %v339_v12 = vpop.xlane.xlu2 %338 }
 0x321   :  { %3059 = vrcp.f32 %v339_v12 }
 0x325   :  { %v3058_v13 = vpop.eup %3057 }
 0x326   :  { %v342_v14 = vmul.f32 %v3058_v13, %v3054_v63 }
 0x327   :  { %v3060_v15 = vpop.eup %3059 }
 0x328   :  { %v343_v16 = vmul.f32 %v3060_v15, %v3056_v1  ;;  %v344_v17 = vpack.c.bf16 %v342_v14, %v342_v14 }
 0x32a   :  { %2578 = vmatmul.msk.bf16.vlgmr.msrb.gmra.mxu1 %vm275_vm8, %v344_v17  ;;  %v345_v18 = vpack.c.bf16 %v343_v16, %v343_v16  ;;  %v176_v16 = vld [vmem:[%s3857_s5 + $0x4] sm:$0xf] }
 0x32b   :  { %v590_v17 = vsel %vm351_vm9, %v176_v16, 0 }
 0x32c   :  { %2579 = vmatmul.msk.bf16.vlgmr.msrb.gmra.mxu2 %vm275_vm8, %v345_v18  ;;  %v2970_v18 = vld [vmem:[%s3855_s3 + $0x88] sm:$0xff] }
 0x32d   :  { %599 = vmatpush.bf16.msrb.mxu2 %v590_v17 }
 0x33a   :  { %2606 = vmatmul.msk.bf16.vlgmr.msra.gmra.mxu1 %vm52_vm0, %v3289_v56 }
 0x33c   :  { %2607 = vmatmul.msk.bf16.vlgmr.msra.gmra.mxu2 %vm275_vm8, %v475_v19  ;;  %v2969_v19 = vld [vmem:[%s3855_s3 + $0x80] sm:$0xff] }
 0x33d   :  { %705 = vmatpush.bf16.msra.mxu2 %v2970_v18 }
 0x341   :  { %706 = vmatpush.bf16.msra.mxu2 %v2969_v19  ;;  %v177_v19 = vld [vmem:[%s3857_s5 + $0x8] sm:$0xf] }
 0x348   :  { %v526_v20 = vpop.xlane.xlu2 %525 }
 0x349   :  { %v528_v21 = vsub.f32 %v520_v5, %v526_v20  ;;  %v2966_v5 = vld [vmem:[%s3855_s3 + $0x68] sm:$0xff]  ;;  %v2972_v20 = vld [vmem:[%s3855_s3 + $0x98] sm:$0xff] }
 0x34b   :  { %v531_v22 = vmul.f32 1.442695, %v528_v21  ;;  %v2971_v21 = vld [vmem:[%s3855_s3 + $0x90] sm:$0xff] }
 0x34d   :  { %3061 = vpow2.f32 %v531_v22 }
 0x353   :  { %v3062_v23 = vpop.eup %3061 }
 0x354   :  { %v536_v24 = vsel %vm275_vm8, %v3062_v23, 0.0 }
 0x355   :  { %537 = vadd.xlane.f32.xlu1 %v536_v24 }
 0x3a7   :  { %v364_v28 = vpop.f32.mrf.mxu1 }
 0x3af   :  { %v366_v29 = vpop.f32.mrf.mxu1  ;;  %v383_v31 = vpop.f32.mrf.mxu2 }
 0x3b0   :  { %v387_v32 = vpack.c.bf16 %v383_v31, %v364_v28 }
 0x3b2   :  { %2612 = vmatmul.msk.bf16.vlgmr.msrb.gmra.mxu3 %vm275_vm8, %v387_v32 }
 0x3b7   :  { %v385_v34 = vpop.f32.mrf.mxu2  ;;  %v470_v35 = vpop.f32.mrf.mxu1 }
 0x3b8   :  { %v471_v36 = vadd.f32 %v3024_v33, %v470_v35 }
 0x3ba   :  { %v545_v37 = vpack.c.bf16 %v471_v36, %v471_v36 }
 0x3bc   :  { %v551_v38 = vsel %vm351_vm9, %v545_v37, 0 }
 0x3bd   :  { %560 = vmatpush.bf16.msrb.mxu0 %v551_v38  ;;  %v3027_v38 = vld [vmem:[%s3856_s4 + $0x8] ss:$0 sm:$0xff] }
 0x3bf   :  { %v472_v39 = vpop.f32.mrf.mxu1  ;;  %v494_v40 = vpop.f32.mrf.mxu2 }
 0x3c0   :  { %v473_v41 = vadd.f32 %v3024_v33, %v472_v39  ;;  %v517_v42 = vmul.f32 0.35355338, %v494_v40 }
 0x3c1   :  { %647 = vmatpush.bf16.msra.mxu0 %v2966_v5 }
 0x3c2   :  { %v546_v43 = vpack.c.bf16 %v473_v41, %v473_v41  ;;  %v519_v44 = vadd.f32 %v517_v42, %v3331_v27 }
 0x3c4   :  { %v570_v46 = vsel %vm351_vm9, %v546_v43, 0  ;;  %v521_v47 = vsel %vm275_vm8, %v519_v44, -inf }
 0x3c5   :  { %579 = vmatpush.bf16.msrb.mxu1 %v570_v46  ;;  %522 = vmax.xlane.f32.xlu0 %v521_v47 }
 0x3c6   :  { %648 = vmatpush.bf16.msra.mxu0 %v2965_v6  ;;  %v2974_v6 = vld [vmem:[%s3855_s3 + $0xa8] sm:$0xff] }
 0x3c7   :  { %v496_v49 = vpop.f32.mrf.mxu2 }
 0x3c8   :  { %v538_v50 = vpop.xlane.xlu1 %537 }
 0x3c9   :  { %676 = vmatpush.bf16.msra.mxu1 %v2968_v45  ;;  %3063 = vrcp.f32 %v538_v50 }
 0x3cd   :  { %677 = vmatpush.bf16.msra.mxu1 %v2967_v48 }
 0x3cf   :  { %v3064_v51 = vpop.eup %3063 }
 0x3d0   :  { %v542_v52 = vmul.f32 %v3064_v51, %v3062_v23 }
 0x3d2   :  { %v544_v53 = vpack.c.bf16 %v542_v52, %v542_v52 }
 0x3d4   :  { %2610 = vmatmul.msk.bf16.vlgmr.msrb.gmra.mxu1 %vm275_vm8, %v544_v53 }
 0x3e4   :  { %2630 = vmatmul.msk.bf16.vlgmr.msra.gmra.mxu1 %vm52_vm0, %v3289_v56 }
 0x435   :  { %v3426_v34 = vpop.f32.mrf.mxu3 }
 0x438   :  { %v523_v57 = vpop.xlane.xlu0 %522 }
 0x439   :  { %v527_v58 = vsub.f32 %v519_v44, %v523_v57 }
 0x43b   :  { %v529_v59 = vmul.f32 1.442695, %v527_v58 }
 0x43d   :  { %3065 = vpow2.f32 %v529_v59  ;;  %v3432_v37 = vpop.f32.mrf.mxu3 }
 0x443   :  { %v3066_v60 = vpop.eup %3065 }
 0x444   :  { %v533_v61 = vsel %vm275_vm8, %v3066_v60, 0.0 }
 0x445   :  { %534 = vadd.xlane.f32.xlu2 %v533_v61 }
 0x451   :  { %v581_v62 = vpop.f32.mrf.mxu1 }
 0x459   :  { %v583_v63 = vpop.f32.mrf.mxu1 }
 0x461   :  { %v679_v1 = vpop.f32.mrf.mxu1 }
 0x462   :  { %v680_v2 = vadd.f32 %v3025_v0, %v679_v1 }
 0x464   :  { %v715_v3 = vpack.c.bf16 %v680_v2, %v680_v2 }
 0x466   :  { %v721_v4 = vsel %vm275_vm8, %v715_v3, 0 }
 0x467   :  { %730 = vmatpush.bf16.xpose.msra.mxu3 %v721_v4 }
 0x469   :  { %v681_v8 = vpop.f32.mrf.mxu1 }
 0x46a   :  { %v682_v9 = vadd.f32 %v3025_v0, %v681_v8  ;;  %v2973_v8 = vld [vmem:[%s3855_s3 + $0xa0] sm:$0xff] }
 0x46c   :  { %v716_v12 = vpack.c.bf16 %v682_v9, %v682_v9  ;;  %v2975_v9 = vld [vmem:[%s3855_s3 + $0xb0] sm:$0xff] }
 0x46e   :  { %v740_v15 = vsel %vm275_vm8, %v716_v12, 0 }
 0x4b8   :  { %v535_v7 = vpop.xlane.xlu2 %534 }
 0x4b9   :  { %3067 = vrcp.f32 %v535_v7  ;;  %v2976_v7 = vld [vmem:[%s3855_s3 + $0xb8] sm:$0xff] }
 0x4bf   :  { %v3068_v11 = vpop.eup %3067 }
 0x4c0   :  { %v541_v13 = vmul.f32 %v3068_v11, %v3066_v60 }
 0x4c2   :  { %v543_v14 = vpack.c.bf16 %v541_v13, %v541_v13 }
 0x4c4   :  { %2609 = vmatmul.msk.bf16.vlgmr.msrb.gmra.mxu0 %vm275_vm8, %v543_v14 }
 0x4c5   :  { %749 = vmatpush.bf16.xpose.msrb.mxu0 %v740_v15 }
 0x4d4   :  { %2621 = vmatmul.msk.bf16.vlgmr.msra.gmra.mxu0 %vm52_vm0, %v3289_v56 }
 0x4d5   :  { %867 = vmatpush.bf16.msra.mxu0 %v2972_v20  ;;  %v828_v20 = vsel %vm351_vm9, %v177_v19, 0 }
 0x4d6   :  { %837 = vmatpush.bf16.msrb.mxu3 %v828_v20 }
 0x4d9   :  { %868 = vmatpush.bf16.msra.mxu0 %v2971_v21 }
 0x541   :  { %v562_v22 = vpop.f32.mrf.mxu0 }
 0x542   :  { %v585_v23 = vpack.c.bf16 %v581_v62, %v562_v22 }
 0x544   :  { %2611 = vmatmul.msk.bf16.vlgmr.msrb.gmra.mxu2 %vm275_vm8, %v585_v23 }
 0x549   :  { %v564_v24 = vpop.f32.mrf.mxu0 }
 0x551   :  { %v650_v26 = vpop.f32.mrf.mxu0 }
 0x552   :  { %v651_v28 = vadd.f32 %v3026_v25, %v650_v26 }
 0x554   :  { %v713_v29 = vpack.c.bf16 %v651_v28, %v651_v28  ;;  %2639 = vmatmul.msk.bf16.vlgmr.msra.gmra.mxu2 %vm52_vm0, %v3289_v56 }
 0x556   :  { %2640 = vmatmul.msk.bf16.vlgmr.msra.gmra.mxu3 %vm275_vm8, %v713_v29 }
 0x559   :  { %v652_v31 = vpop.f32.mrf.mxu0 }
 0x55a   :  { %v653_v32 = vadd.f32 %v3026_v25, %v652_v31  ;;  %v3029_v25 = vld [vmem:[%s3856_s4 + $0xa] ss:$0 sm:$0xff]  ;;  %v3028_v31 = vld [vmem:[%s3856_s4 + $0x9] ss:$0 sm:$0xff] }
 0x55c   :  { %v714_v33 = vpack.c.bf16 %v653_v32, %v653_v32 }
 0x55e   :  { %2641 = vmatmul.msk.bf16.vlgmr.msrb.gmra.mxu0 %vm275_vm8, %v714_v33 }
 0x56e   :  { %2653 = vmatmul.msk.bf16.vlgmr.msra.gmra.mxu0 %vm52_vm0, %v3289_v56 }
 0x5c7   :  { %v3428_v35 = vpop.f32.mrf.mxu2 }
 0x5cf   :  { %v3430_v36 = vpop.f32.mrf.mxu2 }
 0x5d7   :  { %v708_v39 = vpop.f32.mrf.mxu2 }
 0x5d8   :  { %v709_v40 = vadd.f32 %v3027_v38, %v708_v39 }
 0x5d9   :  { %v732_v41 = vpop.f32.mrf.mxu3 }
 0x5da   :  { %v783_v42 = vpack.c.bf16 %v709_v40, %v709_v40  ;;  %v755_v43 = vmul.f32 0.35355338, %v732_v41 }
 0x5db   :  { %v751_v44 = vpop.f32.mrf.mxu0 }
 0x5dc   :  { %v789_v45 = vsel %vm351_vm9, %v783_v42, 0  ;;  %v756_v46 = vmul.f32 0.35355338, %v751_v44  ;;  %v757_v47 = vadd.f32 %v755_v43, %v3331_v27 }
 0x5dd   :  { %798 = vmatpush.bf16.msrb.mxu1 %v789_v45 }
 0x5de   :  { %v759_v48 = vsel %vm275_vm8, %v757_v47, -inf  ;;  %v758_v49 = vadd.f32 %v756_v46, %v3333_v30 }
 0x5df   :  { %760 = vmax.xlane.f32.xlu0 %v759_v48  ;;  %v710_v50 = vpop.f32.mrf.mxu2 }
 0x5e0   :  { %v711_v51 = vadd.f32 %v3027_v38, %v710_v50  ;;  %v762_v52 = vsel %vm275_vm8, %v758_v49, -inf  ;;  %v3030_v38 = vld [vmem:[%s3856_s4 + $0xb] ss:$0 sm:$0xff] }
 0x5e1   :  { %763 = vmax.xlane.f32.xlu1 %v762_v52  ;;  %v734_v53 = vpop.f32.mrf.mxu3  ;;  %896 = vmatpush.bf16.msra.mxu1 %v2974_v6 }
 0x5e2   :  { %v784_v57 = vpack.c.bf16 %v711_v51, %v711_v51 }
 0x5e3   :  { %v753_v58 = vpop.f32.mrf.mxu0 }
 0x5e4   :  { %v808_v59 = vsel %vm351_vm9, %v784_v57, 0 }
 0x5e5   :  { %817 = vmatpush.bf16.msrb.mxu2 %v808_v59  ;;  %897 = vmatpush.bf16.msra.mxu1 %v2973_v8  ;;  %v622_v59 = vadd.f32 %v3426_v34, %v3428_v35 }
 0x5e9   :  { %925 = vmatpush.bf16.msra.mxu2 %v2976_v7 }
 0x5eb   :  { %v870_v29 = vpop.f32.mrf.mxu0 }
 0x5ec   :  { %v871_v39 = vadd.f32 %v3028_v31, %v870_v29 }
 0x5ed   :  { %926 = vmatpush.bf16.msra.mxu2 %v2975_v9 }
 0x5ee   :  { %v933_v44 = vpack.c.bf16 %v871_v39, %v871_v39 }
 0x652   :  { %v761_v60 = vpop.xlane.xlu0 %760 }
 0x653   :  { %v765_v61 = vsub.f32 %v757_v47, %v761_v60  ;;  %v872_v47 = vpop.f32.mrf.mxu0 }
 0x654   :  { %v764_v62 = vpop.xlane.xlu1 %763  ;;  %v873_v50 = vadd.f32 %v3028_v31, %v872_v47 }
 0x655   :  { %v767_v63 = vmul.f32 1.442695, %v765_v61  ;;  %v766_v0 = vsub.f32 %v758_v49, %v764_v62 }
 0x656   :  { %v934_v53 = vpack.c.bf16 %v873_v50, %v873_v50 }
 0x657   :  { %3069 = vpow2.f32 %v767_v63  ;;  %v769_v1 = vmul.f32 1.442695, %v766_v0 }
 0x659   :  { %3071 = vpow2.f32 %v769_v1 }
 0x65d   :  { %v3070_v2 = vpop.eup %3069 }
 0x65e   :  { %v771_v3 = vsel %vm275_vm8, %v3070_v2, 0.0 }
 0x65f   :  { %v3072_v4 = vpop.eup %3071  ;;  %772 = vadd.xlane.f32.xlu2 %v771_v3 }
 0x660   :  { %v774_v5 = vsel %vm275_vm8, %v3072_v4, 0.0 }
 0x661   :  { %775 = vadd.xlane.f32.xlu0 %v774_v5 }
 0x6d2   :  { %v773_v11 = vpop.xlane.xlu2 %772 }
 0x6d3   :  { %3073 = vrcp.f32 %v773_v11 }
 0x6d4   :  { %v776_v12 = vpop.xlane.xlu0 %775 }
 0x6d5   :  { %3075 = vrcp.f32 %v776_v12 }
 0x6d9   :  { %v3074_v13 = vpop.eup %3073 }
 0x6da   :  { %v779_v14 = vmul.f32 %v3074_v13, %v3070_v2 }
 0x6db   :  { %v3076_v15 = vpop.eup %3075 }
 0x6dc   :  { %v781_v16 = vpack.c.bf16 %v779_v14, %v779_v14  ;;  %v780_v17 = vmul.f32 %v3076_v15, %v3072_v4 }
 0x6de   :  { %v782_v18 = vpack.c.bf16 %v780_v17, %v780_v17  ;;  %2642 = vmatmul.msk.bf16.vlgmr.msrb.gmra.mxu1 %vm275_vm8, %v781_v16 }
 0x6e0   :  { %2643 = vmatmul.msk.bf16.vlgmr.msrb.gmra.mxu2 %vm275_vm8, %v782_v18 }
 0x6ee   :  { %2662 = vmatmul.msk.bf16.vlgmr.msra.gmra.mxu1 %vm52_vm0, %v3289_v56 }
 0x6f0   :  { %2671 = vmatmul.msk.bf16.vlgmr.msra.gmra.mxu2 %vm52_vm0, %v3289_v56 }
 0x75b   :  { %v800_v21 = vpop.f32.mrf.mxu1 }
 0x763   :  { %v802_v22 = vpop.f32.mrf.mxu1  ;;  %v819_v23 = vpop.f32.mrf.mxu2 }
 0x764   :  { %v823_v24 = vpack.c.bf16 %v819_v23, %v800_v21 }
 0x766   :  { %2644 = vmatmul.msk.bf16.vlgmr.msrb.gmra.mxu3 %vm275_vm8, %v823_v24 }
 0x76b   :  { %v821_v26 = vpop.f32.mrf.mxu2  ;;  %v899_v28 = vpop.f32.mrf.mxu1 }
 0x76c   :  { %v900_v56 = vadd.f32 %v3029_v25, %v899_v28  ;;  %v178_v26 = vld [vmem:[%s3857_s5 + $0xc] sm:$0xf] }
 0x76d   :  { %v1048_v28 = vsel %vm351_vm9, %v178_v26, 0 }
 0x76e   :  { %v935_v32 = vpack.c.bf16 %v900_v56, %v900_v56 }
 0x770   :  { %v941_v33 = vsel %vm275_vm8, %v935_v32, 0 }
 0x771   :  { %950 = vmatpush.bf16.xpose.msra.mxu3 %v941_v33 }
 0x773   :  { %v901_v40 = vpop.f32.mrf.mxu1  ;;  %v928_v41 = vpop.f32.mrf.mxu2 }
 0x774   :  { %v902_v42 = vadd.f32 %v3029_v25, %v901_v40  ;;  %v929_v43 = vadd.f32 %v3030_v38, %v928_v41 }
 0x776   :  { %v936_v45 = vpack.c.bf16 %v902_v42, %v902_v42  ;;  %v1003_v46 = vpack.c.bf16 %v929_v43, %v929_v43  ;;  %v624_v43 = vadd.f32 %v3432_v37, %v3430_v36 }
 0x778   :  { %v960_v48 = vsel %vm275_vm8, %v936_v45, 0  ;;  %v1009_v49 = vsel %vm351_vm9, %v1003_v46, 0  ;;  %2672 = vmatmul.msk.bf16.vlgmr.msra.gmra.mxu3 %vm275_vm8, %v933_v44 }
 0x779   :  { %969 = vmatpush.bf16.xpose.msrb.mxu0 %v960_v48  ;;  %1018 = vmatpush.bf16.msrb.mxu1 %v1009_v49 }
 0x77a   :  { %1057 = vmatpush.bf16.msrb.mxu3 %v1048_v28  ;;  %v2982_v28 = vld [vmem:[%s3861_s9 + $0x18] sm:$0xff] }
 0x77b   :  { %v930_v51 = vpop.f32.mrf.mxu2 }
 0x77c   :  { %v931_v52 = vadd.f32 %v3030_v38, %v930_v51  ;;  %v3501_v38 = vld [vmem:[%s3858_s6] sm:$0x3f] }
 0x77d   :  { %v1066_v39 = vperm.slane %v3501_v38, 0  ;;  %1219 = vmatpush.bf16.msra.mxu1 %v2982_v28 }
 0x77e   :  { %v1004_v57 = vpack.c.bf16 %v931_v52, %v931_v52 }
 0x780   :  { %v1028_v58 = vsel %vm351_vm9, %v1004_v57, 0  ;;  %2673 = vmatmul.msk.bf16.vlgmr.msrb.gmra.mxu0 %vm275_vm8, %v934_v53 }
 0x781   :  { %1037 = vmatpush.bf16.msrb.mxu2 %v1028_v58 }
 0x7e9   :  { %v839_v60 = vpop.f32.mrf.mxu3 }
 0x7ea   :  { %v844_v61 = vadd.f32 %v839_v60, %v622_v59 }
 0x7f1   :  { %v841_v62 = vpop.f32.mrf.mxu3 }
 0x7f2   :  { %v845_v45 = vadd.f32 %v841_v62, %v624_v43 }
 0x7fb   :  { %v952_v63 = vpop.f32.mrf.mxu3 }
 0x7fc   :  { %v975_v0 = vmul.f32 0.35355338, %v952_v63 }
 0x7fd   :  { %v971_v1 = vpop.f32.mrf.mxu0 }
 0x7fe   :  { %v976_v2 = vmul.f32 0.35355338, %v971_v1  ;;  %v977_v3 = vadd.f32 %v975_v0, %v3331_v27  ;;  %v2977_v1 = vld [vmem:[%s3859_s7] sm:$0xff] }
 0x800   :  { %v979_v4 = vsel %vm275_vm8, %v977_v3, -inf  ;;  %v978_v5 = vadd.f32 %v976_v2, %v3333_v30 }
 0x801   :  { %980 = vmax.xlane.f32.xlu2 %v979_v4 }
 0x802   :  { %v982_v6 = vsel %vm275_vm8, %v978_v5, -inf }
 0x803   :  { %983 = vmax.xlane.f32.xlu1 %v982_v6  ;;  %v954_v7 = vpop.f32.mrf.mxu3 }
 0x805   :  { %v973_v8 = vpop.f32.mrf.mxu0 }
 0x874   :  { %v981_v34 = vpop.xlane.xlu2 %980 }
 0x875   :  { %v985_v35 = vsub.f32 %v977_v3, %v981_v34 }
 0x876   :  { %v984_v9 = vpop.xlane.xlu1 %983 }
 0x877   :  { %v987_v11 = vmul.f32 1.442695, %v985_v35  ;;  %v986_v12 = vsub.f32 %v978_v5, %v984_v9 }
 0x879   :  { %3077 = vpow2.f32 %v987_v11  ;;  %v989_v13 = vmul.f32 1.442695, %v986_v12 }
 0x87b   :  { %3079 = vpow2.f32 %v989_v13 }
 0x87f   :  { %v3078_v14 = vpop.eup %3077 }
 0x880   :  { %v991_v15 = vsel %vm275_vm8, %v3078_v14, 0.0 }
 0x881   :  { %v3080_v16 = vpop.eup %3079  ;;  %992 = vadd.xlane.f32.xlu1 %v991_v15 }
 0x882   :  { %v994_v17 = vsel %vm275_vm8, %v3080_v16, 0.0 }
 0x883   :  { %995 = vadd.xlane.f32.xlu0 %v994_v17 }
 0x8f4   :  { %v993_v18 = vpop.xlane.xlu1 %992 }
 0x8f5   :  { %3081 = vrcp.f32 %v993_v18 }
 0x8f6   :  { %v996_v19 = vpop.xlane.xlu0 %995 }
 0x8f7   :  { %3083 = vrcp.f32 %v996_v19 }
 0x8fb   :  { %v3082_v20 = vpop.eup %3081 }
 0x8fc   :  { %v999_v21 = vmul.f32 %v3082_v20, %v3078_v14  ;;  %v1118_v20 = vperm.slane %v3501_v38, 2 }
 0x8fd   :  { %v3084_v22 = vpop.eup %3083 }
 0x8fe   :  { %v1001_v23 = vpack.c.bf16 %v999_v21, %v999_v21  ;;  %v1000_v24 = vmul.f32 %v3084_v22, %v3080_v16  ;;  %v1115_v16 = vperm.slane %v3501_v38, 1 }
 0x900   :  { %v1002_v25 = vpack.c.bf16 %v1000_v24, %v1000_v24  ;;  %2674 = vmatmul.msk.bf16.vlgmr.msrb.gmra.mxu1 %vm275_vm8, %v1001_v23 }
 0x902   :  { %2675 = vmatmul.msk.bf16.vlgmr.msrb.gmra.mxu2 %vm275_vm8, %v1002_v25 }
 0x97d   :  { %v1020_v56 = vpop.f32.mrf.mxu1 }
 0x985   :  { %v1022_v29 = vpop.f32.mrf.mxu1  ;;  %v1039_v31 = vpop.f32.mrf.mxu2 }
 0x986   :  { %v1043_v32 = vpack.c.bf16 %v1039_v31, %v1020_v56  ;;  %v2981_v56 = vld [vmem:[%s3861_s9 + $0x10] sm:$0xff]  ;;  %v2980_v29 = vld [vmem:[%s3861_s9 + $0x8] sm:$0xff]  ;;  %v3031_v31 = vld [vmem:[%s3860_s8] ss:$0 sm:$0xff] }
 0x987   :  { %1220 = vmatpush.bf16.msra.mxu1 %v2981_v56 }
 0x988   :  { %2676 = vmatmul.msk.bf16.vlgmr.msrb.gmra.mxu3 %vm275_vm8, %v1043_v32 }
 0x98b   :  { %1221 = vmatpush.bf16.msra.mxu1 %v2980_v29 }
 0x98d   :  { %v1041_v33 = vpop.f32.mrf.mxu2 }
 0x98e   :  { %v2979_v33 = vld [vmem:[%s3861_s9] sm:$0xff] }
 0x98f   :  { %1222 = vmatpush.bf16.msra.mxu1 %v2979_v33 }
 0xa0b   :  { %v1059_v40 = vpop.f32.mrf.mxu3 }
 0xa0c   :  { %v1064_v41 = vadd.f32 %v1059_v40, %v844_v61 }
 0xa0e   :  { %v1067_v42 = vadd.f32 %v1066_v39, %v1064_v41 }
 0xa10   :  { %v1069_v44 = vadd.f32 %v1067_v42, %v3283_v54 }
 0xa12   :  { %v1071_v46 = vsel %vm52_vm0, %v1069_v44, 0.0 }
 0xa13   :  { %1072 = vadd.xlane.f32.xlu2 %v1071_v46  ;;  %v1061_v47 = vpop.f32.mrf.mxu3 }
 0xa14   :  { %v1065_v48 = vadd.f32 %v1061_v47, %v845_v45 }
 0xa16   :  { %v1068_v49 = vadd.f32 %v1066_v39, %v1065_v48 }
 0xa18   :  { %v1070_v50 = vadd.f32 %v1068_v49, %v3285_v55  ;;  %v2978_v55 = vld [vmem:[%s3859_s7 + $0x8] sm:$0xff] }
 0xa19   :  { %1151 = vmatpush.bf16.msra.mxu0 %v2978_v55 }
 0xa1a   :  { %v1074_v51 = vsel %vm52_vm0, %v1070_v50, 0.0 }
 0xa1b   :  { %1075 = vadd.xlane.f32.xlu0 %v1074_v51 }
 0xa1d   :  { %1152 = vmatpush.bf16.msra.mxu0 %v2977_v1 }
 0xa86   :  { %v1073_v52 = vpop.xlane.xlu2 %1072 }
 0xa87   :  { %v1077_v53 = vmul.f32 %v1073_v52, %v3254_v10 }
 0xa89   :  { %v1079_v57 = vsub.f32 %v1069_v44, %v1077_v53 }
 0xa8b   :  { %v1081_v58 = vmul.f32 %v1079_v57, %v1079_v57 }
 0xa8d   :  { %v1083_v36 = vsel %vm52_vm0, %v1081_v58, 0.0 }
 0xa8e   :  { %1084 = vadd.xlane.f32.xlu1 %v1083_v36  ;;  %v1076_v54 = vpop.xlane.xlu0 %1075 }
 0xa8f   :  { %v1078_v37 = vmul.f32 %v1076_v54, %v3254_v10 }
 0xa91   :  { %v1080_v59 = vsub.f32 %v1070_v50, %v1078_v37 }
 0xa93   :  { %v1082_v60 = vmul.f32 %v1080_v59, %v1080_v59 }
 0xa95   :  { %v1086_v61 = vsel %vm52_vm0, %v1082_v60, 0.0 }
 0xa96   :  { %1087 = vadd.xlane.f32.xlu2 %v1086_v61  ;;  %v1186_v61 = vperm.slane %v3501_v38, 3 }
 0xb01   :  { %v1085_v62 = vpop.xlane.xlu1 %1084 }
 0xb02   :  { %v1089_v63 = vmul.f32 %v1085_v62, %v3254_v10 }
 0xb04   :  { %v1091_v0 = vadd.f32 1e-12, %v1089_v63 }
 0xb06   :  { %3085 = vrsqrt.f32 %v1091_v0  ;;  %vm1099_vm11 = vweird.f32 %v1091_v0 }
 0xb09   :  { %v1088_v2 = vpop.xlane.xlu2 %1087 }
 0xb0a   :  { %v1090_v3 = vmul.f32 %v1088_v2, %v3254_v10 }
 0xb0c   :  { %v3086_v4 = vpop.eup %3085  ;;  %v1092_v5 = vadd.f32 1e-12, %v1090_v3 }
 0xb0d   :  { %v1094_v6 = vmul.f32 %v3086_v4, %v1091_v0  ;;  %vm1100_vm10 = vweird.f32 %v3086_v4 }
 0xb0e   :  { %3087 = vrsqrt.f32 %v1092_v5  ;;  %vm1101_vm12 = vmor %vm1099_vm11, %vm1100_vm10  ;;  %vm1109_vm14 = vweird.f32 %v1092_v5 }
 0xb0f   :  { %v1095_v7 = vmul.f32 %v3086_v4, %v1094_v6 }
 0xb11   :  { %v1096_v8 = vmul.f32 0.5, %v1095_v7 }
 0xb13   :  { %v1097_v34 = vsub.f32 1.5, %v1096_v8 }
 0xb14   :  { %v3088_v35 = vpop.eup %3087 }
 0xb15   :  { %v1098_v9 = vmul.f32 %v3086_v4, %v1097_v34  ;;  %v1104_v11 = vmul.f32 %v3088_v35, %v1092_v5  ;;  %vm1110_vm13 = vweird.f32 %v3088_v35 }
 0xb16   :  { %vm1111_vm15 = vmor %vm1109_vm14, %vm1110_vm13 }
 0xb17   :  { %v1105_v12 = vmul.f32 %v3088_v35, %v1104_v11  ;;  %v1102_v13 = vsel %vm1101_vm12, %v3086_v4, %v1098_v9 }
 0xb18   :  { %v1113_v17 = vmul.f32 %v1102_v13, %v1079_v57 }
 0xb19   :  { %v1106_v14 = vmul.f32 0.5, %v1105_v12 }
 0xb1a   :  { %v1116_v21 = vmul.f32 %v1115_v16, %v1113_v17 }
 0xb1b   :  { %v1107_v15 = vsub.f32 1.5, %v1106_v14  ;;  %v2984_v14 = vld [vmem:[%s3855_s3 + $0xc8] sm:$0xff] }
 0xb1c   :  { %v1119_v24 = vadd.f32 %v1118_v20, %v1116_v21  ;;  %1375 = vmatpush.bf16.msra.mxu2 %v2984_v14  ;;  %v2985_v21 = vld [vmem:[%s3855_s3 + $0xd0] sm:$0xff] }
 0xb1d   :  { %v1108_v18 = vmul.f32 %v3088_v35, %v1107_v15  ;;  %v2986_v15 = vld [vmem:[%s3855_s3 + $0xd8] sm:$0xff] }
 0xb1e   :  { %1404 = vmatpush.bf16.msra.mxu3 %v2986_v15  ;;  %v2991_v15 = vld [vmem:[%s3855_s3 + $0x100] sm:$0xff] }
 0xb1f   :  { %v1112_v19 = vsel %vm1111_vm15, %v3088_v35, %v1108_v18 }
 0xb20   :  { %v1114_v22 = vmul.f32 %v1112_v19, %v1080_v59 }
 0xb22   :  { %v1117_v23 = vmul.f32 %v1115_v16, %v1114_v22  ;;  %v2988_v16 = vld [vmem:[%s3855_s3 + $0xe8] sm:$0xff]  ;;  %v2987_v22 = vld [vmem:[%s3855_s3 + $0xe0] sm:$0xff]  ;;  %1405 = vmatpush.bf16.msra.mxu3 %v2985_v21 }
 0xb23   :  { %1433 = vmatpush.bf16.msrb.mxu0 %v2988_v16 }
 0xb24   :  { %v1120_v25 = vadd.f32 %v1118_v20, %v1117_v23  ;;  %v2983_v20 = vld [vmem:[%s3855_s3 + $0xc0] sm:$0xff] }
 0xb25   :  { %1376 = vmatpush.bf16.msra.mxu2 %v2983_v20 }
 0xb26   :  { %v1121_v26 = vpack.c.bf16 %v1120_v25, %v1119_v24 }
 0xb27   :  { %1434 = vmatpush.bf16.msrb.mxu0 %v2987_v22  ;;  %v3035_v22 = vld [vmem:[%s3856_s4 + $0xf] ss:$0 sm:$0xff] }
 0xb28   :  { %2685 = vmatmul.msk.bf16.vlgmr.msra.gmra.mxu0 %vm52_vm0, %v1121_v26 }
 0xba5   :  { %v1154_v32 = vpop.f32.mrf.mxu0 }
 0xba6   :  { %v1155_v39 = vadd.f32 %v3031_v31, %v1154_v32 }
 0xba8   :  { %v1159_v40 = vmul.f32 %v1155_v39, %v1155_v39 }
 0xbaa   :  { %v1161_v41 = vmul.f32 %v1159_v40, %v1155_v39 }
 0xbac   :  { %v1163_v42 = vmul.f32 0.044715, %v1161_v41 }
 0xbad   :  { %v1156_v43 = vpop.f32.mrf.mxu0 }
 0xbae   :  { %v1165_v44 = vadd.f32 %v1163_v42, %v1155_v39  ;;  %v1157_v45 = vadd.f32 %v3031_v31, %v1156_v43 }
 0xbb0   :  { %v1167_v46 = vmul.f32 0.7978846, %v1165_v44  ;;  %v1160_v47 = vmul.f32 %v1157_v45, %v1157_v45  ;;  %v1275_v44 = vperm.slane %v3501_v38, 4 }
 0xbb2   :  { %v1162_v48 = vmul.f32 %v1160_v47, %v1157_v45  ;;  %3089 = vtanh.f32 %v1167_v46 }
 0xbb4   :  { %v1164_v49 = vmul.f32 0.044715, %v1162_v48  ;;  %v1278_v48 = vperm.slane %v3501_v38, 5  ;;  %v3032_v38 = vld [vmem:[%s3856_s4 + $0xe] ss:$0 sm:$0xff] }
 0xbb6   :  { %v1166_v50 = vadd.f32 %v1164_v49, %v1157_v45 }
 0xbb8   :  { %v1168_v51 = vmul.f32 0.7978846, %v1166_v50  ;;  %v3090_v52 = vpop.eup %3089 }
 0xbb9   :  { %v1171_v53 = vadd.f32 1.0, %v3090_v52 }
 0xbba   :  { %3091 = vtanh.f32 %v1168_v51 }
 0xbbb   :  { %v1173_v58 = vmul.f32 0.5, %v1171_v53 }
 0xbbd   :  { %v1175_v37 = vmul.f32 %v1173_v58, %v1155_v39 }
 0xbc0   :  { %v3092_v57 = vpop.eup %3091 }
 0xbc1   :  { %v1172_v36 = vadd.f32 1.0, %v3092_v57 }
 0xbc3   :  { %v1174_v54 = vmul.f32 0.5, %v1172_v36 }
 0xbc5   :  { %v1176_v59 = vmul.f32 %v1174_v54, %v1157_v45  ;;  %v3034_v54 = vld [vmem:[%s3856_s4 + $0xd] ss:$0 sm:$0xff] }
 0xbc7   :  { %v1177_v60 = vpack.c.bf16 %v1176_v59, %v1175_v37 }
 0xbc9   :  { %2702 = vmatmul.msk.bf16.vlgmr.msra.gmra.mxu1 %vm1211_vm1, %v1177_v60 }
 0xc46   :  { %v1224_v55 = vpop.f32.mrf.mxu1 }
 0xc47   :  { %v1225_v62 = vadd.f32 %v1224_v55, %v1186_v61 }
 0xc49   :  { %v1229_v63 = vadd.f32 %v1225_v62, %v1119_v24  ;;  %v3033_v62 = vld [vmem:[%s3856_s4 + $0xc] ss:$0 sm:$0xff] }
 0xc4b   :  { %v1231_v0 = vsel %vm52_vm0, %v1229_v63, 0.0 }
 0xc4c   :  { %1232 = vadd.xlane.f32.xlu0 %v1231_v0 }
 0xc4e   :  { %v1226_v1 = vpop.f32.mrf.mxu1 }
 0xc4f   :  { %v1227_v2 = vadd.f32 %v1226_v1, %v1186_v61  ;;  %v2990_v1 = vld [vmem:[%s3855_s3 + $0xf8] sm:$0xff] }
 0xc51   :  { %v1230_v3 = vadd.f32 %v1227_v2, %v1120_v25 }
 0xc53   :  { %v1234_v4 = vsel %vm52_vm0, %v1230_v3, 0.0 }
 0xc54   :  { %1235 = vadd.xlane.f32.xlu1 %v1234_v4 }
 0xcbf   :  { %v1233_v5 = vpop.xlane.xlu0 %1232 }
 0xcc0   :  { %v1237_v6 = vmul.f32 %v1233_v5, %v3254_v10 }
 0xcc2   :  { %v1239_v7 = vsub.f32 %v1229_v63, %v1237_v6  ;;  %v2989_v6 = vld [vmem:[%s3855_s3 + $0xf0] sm:$0xff] }
 0xcc4   :  { %v1241_v8 = vmul.f32 %v1239_v7, %v1239_v7 }
 0xcc6   :  { %v1243_v34 = vsel %vm52_vm0, %v1241_v8, 0.0 }
 0xcc7   :  { %v1236_v35 = vpop.xlane.xlu1 %1235  ;;  %1244 = vadd.xlane.f32.xlu2 %v1243_v34 }
 0xcc8   :  { %v1238_v9 = vmul.f32 %v1236_v35, %v3254_v10 }
 0xcca   :  { %v1240_v11 = vsub.f32 %v1230_v3, %v1238_v9 }
 0xccc   :  { %v1242_v12 = vmul.f32 %v1240_v11, %v1240_v11 }
 0xcce   :  { %v1246_v13 = vsel %vm52_vm0, %v1242_v12, 0.0 }
 0xccf   :  { %1247 = vadd.xlane.f32.xlu0 %v1246_v13 }
 0xd3a   :  { %v1245_v17 = vpop.xlane.xlu2 %1244 }
 0xd3b   :  { %v1249_v18 = vmul.f32 %v1245_v17, %v3254_v10 }
 0xd3d   :  { %v1251_v19 = vadd.f32 1e-12, %v1249_v18 }
 0xd3f   :  { %3093 = vrsqrt.f32 %v1251_v19  ;;  %vm1259_vm3 = vweird.f32 %v1251_v19 }
 0xd42   :  { %v1248_v23 = vpop.xlane.xlu0 %1247 }
 0xd43   :  { %v1250_v24 = vmul.f32 %v1248_v23, %v3254_v10 }
 0xd45   :  { %v3094_v25 = vpop.eup %3093  ;;  %v1252_v26 = vadd.f32 1e-12, %v1250_v24 }
 0xd46   :  { %v1254_v28 = vmul.f32 %v3094_v25, %v1251_v19  ;;  %vm1260_vm2 = vweird.f32 %v3094_v25 }
 0xd47   :  { %3095 = vrsqrt.f32 %v1252_v26  ;;  %vm1261_vm4 = vmor %vm1259_vm3, %vm1260_vm2  ;;  %vm1269_vm6 = vweird.f32 %v1252_v26 }
 0xd48   :  { %v1255_v56 = vmul.f32 %v3094_v25, %v1254_v28 }
 0xd4a   :  { %v1256_v29 = vmul.f32 0.5, %v1255_v56 }
 0xd4c   :  { %v1257_v31 = vsub.f32 1.5, %v1256_v29 }
 0xd4d   :  { %v3096_v32 = vpop.eup %3095 }
 0xd4e   :  { %v1258_v33 = vmul.f32 %v3094_v25, %v1257_v31  ;;  %v1264_v39 = vmul.f32 %v3096_v32, %v1252_v26  ;;  %vm1270_vm5 = vweird.f32 %v3096_v32  ;;  %v3036_v31 = vld [vmem:[%s3856_s4 + $0x10] ss:$0 sm:$0xff] }
 0xd4f   :  { %vm1271_vm7 = vmor %vm1269_vm6, %vm1270_vm5  ;;  %vm2462_vm5 = vcmask 1041409   ;;  %vm2531_vm6 = vcmask 17408  }
 0xd50   :  { %v1265_v40 = vmul.f32 %v3096_v32, %v1264_v39  ;;  %v1262_v41 = vsel %vm1261_vm4, %v3094_v25, %v1258_v33 }
 0xd51   :  { %v1273_v45 = vmul.f32 %v1262_v41, %v1239_v7 }
 0xd52   :  { %v1266_v42 = vmul.f32 0.5, %v1265_v40 }
 0xd53   :  { %v1276_v49 = vmul.f32 %v1275_v44, %v1273_v45 }
 0xd54   :  { %v1267_v43 = vsub.f32 1.5, %v1266_v42 }
 0xd55   :  { %v3570_v52 = vadd.f32 %v1278_v48, %v1276_v49 }
 0xd56   :  { %v1268_v46 = vmul.f32 %v3096_v32, %v1267_v43 }
 0xd58   :  { %v1272_v47 = vsel %vm1271_vm7, %v3096_v32, %v1268_v46 }
 0xd59   :  { %v1274_v50 = vmul.f32 %v1272_v47, %v1240_v11  ;;  %v2992_v11 = vld [vmem:[%s3855_s3 + $0x108] sm:$0xff] }
 0xd5b   :  { %v1277_v51 = vmul.f32 %v1275_v44, %v1274_v50 }
 0xd5d   :  { %v3572_v53 = vadd.f32 %v1278_v48, %v1277_v51 }
 0xd5f   :  { %v3576_v57 = vpack.c.bf16 %v3572_v53, %v3570_v52 }
 0xd61   :  { %2776 = vmatmul.msk.bf16.vlgmr.msra.gmra.mxu2 %vm52_vm0, %v3576_v57  ;;  %2785 = vmatmul.msk.bf16.vlgmr.msra.gmra.mxu3 %vm52_vm0, %v3576_v57 }
 0xd62   :  { %2794 = vmatmul.msk.bf16.vlgmr.msrb.gmra.mxu0 %vm52_vm0, %v3576_v57 }
 0xddf   :  { %v1436_v58 = vpop.f32.mrf.mxu0 }
 0xde0   :  { %v1437_v36 = vadd.f32 %v3032_v38, %v1436_v58 }
 0xde2   :  { %v1511_v37 = vpack.c.bf16 %v1437_v36, %v1437_v36 }
 0xde4   :  { %v1517_v59 = vsel %vm351_vm9, %v1511_v37, 0  ;;  %v1407_v60 = vpop.f32.mrf.mxu3  ;;  %v1378_v55 = vpop.f32.mrf.mxu2 }
 0xde5   :  { %v1408_v61 = vadd.f32 %v3034_v54, %v1407_v60  ;;  %1526 = vmatpush.bf16.msrb.mxu3 %v1517_v59  ;;  %v1379_v5 = vadd.f32 %v3033_v62, %v1378_v55 }
 0xde7   :  { %v1443_v63 = vpack.c.bf16 %v1408_v61, %v1408_v61  ;;  %v1438_v0 = vpop.f32.mrf.mxu0  ;;  %v1441_v35 = vpack.c.bf16 %v1379_v5, %v1379_v5 }
 0xde8   :  { %v1439_v2 = vadd.f32 %v3032_v38, %v1438_v0  ;;  %v2994_v0 = vld [vmem:[%s3855_s3 + $0x118] sm:$0xff] }
 0xde9   :  { %v1449_v3 = vsel %vm275_vm8, %v1443_v63, 0  ;;  %1631 = vmatpush.bf16.msra.mxu3 %v2994_v0 }
 0xdea   :  { %v1512_v4 = vpack.c.bf16 %v1439_v2, %v1439_v2  ;;  %1458 = vmatpush.bf16.xpose.msrb.mxu1 %v1449_v3 }
 0xdec   :  { %v1536_v7 = vsel %vm351_vm9, %v1512_v4, 0  ;;  %v1409_v8 = vpop.f32.mrf.mxu3  ;;  %v1380_v12 = vpop.f32.mrf.mxu2 }
 0xded   :  { %v1410_v34 = vadd.f32 %v3034_v54, %v1409_v8  ;;  %1545 = vmatpush.bf16.msra.mxu0 %v1536_v7  ;;  %v1381_v14 = vadd.f32 %v3033_v62, %v1380_v12 }
 0xdef   :  { %v1444_v9 = vpack.c.bf16 %v1410_v34, %v1410_v34  ;;  %v1442_v16 = vpack.c.bf16 %v1381_v14, %v1381_v14 }
 0xdf1   :  { %v1468_v13 = vsel %vm275_vm8, %v1444_v9, 0  ;;  %2795 = vmatmul.msk.bf16.vlgmr.msrb.gmra.mxu1 %vm275_vm8, %v1441_v35 }
 0xdf2   :  { %1573 = vmatpush.bf16.msra.mxu1 %v2990_v1  ;;  %1477 = vmatpush.bf16.xpose.msrb.mxu2 %v1468_v13  ;;  %v2993_v1 = vld [vmem:[%s3855_s3 + $0x110] sm:$0xff] }
 0xdf3   :  { %1632 = vmatpush.bf16.msra.mxu3 %v2993_v1 }
 0xdf6   :  { %1574 = vmatpush.bf16.msra.mxu1 %v2989_v6 }
 0xdf9   :  { %2796 = vmatmul.msk.bf16.vlgmr.msrb.gmra.mxu2 %vm275_vm8, %v1442_v16 }
 0xdfa   :  { %1602 = vmatpush.bf16.msra.mxu2 %v2992_v11 }
 0xdfe   :  { %1603 = vmatpush.bf16.msra.mxu2 %v2991_v15  ;;  %v2763_v15 = vld [vmem:[%s3857_s5 + $0x10] sm:$0xf] }
 0xdff   :  { %v1774_v16 = vsel %vm351_vm9, %v2763_v15, 0  ;;  %v3039_v15 = vld [vmem:[%s3856_s4 + $0x12] ss:$0 sm:$0xff] }
 0xe01   :  { %2807 = vmatmul.msk.bf16.vlgmr.msra.gmra.mxu1 %vm52_vm0, %v3576_v57 }
 0xe09   :  { %2816 = vmatmul.msk.bf16.vlgmr.msra.gmra.mxu2 %vm52_vm0, %v3576_v57 }
 0xe6e   :  { %v1460_v17 = vpop.f32.mrf.mxu1 }
 0xe6f   :  { %v1483_v18 = vmul.f32 0.35355338, %v1460_v17 }
 0xe71   :  { %v1485_v19 = vadd.f32 %v1483_v18, %v3331_v27 }
 0xe73   :  { %v1487_v20 = vsel %vm275_vm8, %v1485_v19, -inf }
 0xe74   :  { %1488 = vmax.xlane.f32.xlu0 %v1487_v20 }
 0xe76   :  { %v1462_v21 = vpop.f32.mrf.mxu1 }
 0xe77   :  { %v3037_v21 = vld [vmem:[%s3856_s4 + $0x11] ss:$0 sm:$0xff] }
 0xe7c   :  { %v1479_v23 = vpop.f32.mrf.mxu2 }
 0xe7d   :  { %v1484_v24 = vmul.f32 0.35355338, %v1479_v23 }
 0xe7e   :  { %v1576_v25 = vpop.f32.mrf.mxu1 }
 0xe7f   :  { %v1577_v26 = vadd.f32 %v3035_v22, %v1576_v25  ;;  %v1486_v28 = vadd.f32 %v1484_v24, %v3333_v30 }
 0xe81   :  { %v1490_v56 = vsel %vm275_vm8, %v1486_v28, -inf  ;;  %v1639_v35 = vpack.c.bf16 %v1577_v26, %v1577_v26 }
 0xe82   :  { %1491 = vmax.xlane.f32.xlu1 %v1490_v56 }
 0xe84   :  { %v1481_v29 = vpop.f32.mrf.mxu2 }
 0xe86   :  { %v1578_v44 = vpop.f32.mrf.mxu1 }
 0xe87   :  { %v1579_v46 = vadd.f32 %v3035_v22, %v1578_v44 }
 0xe89   :  { %v1640_v47 = vpack.c.bf16 %v1579_v46, %v1579_v46 }
 0xe8c   :  { %v1605_v32 = vpop.f32.mrf.mxu2 }
 0xe8d   :  { %v1606_v33 = vadd.f32 %v3036_v31, %v1605_v32 }
 0xe8f   :  { %v1641_v39 = vpack.c.bf16 %v1606_v33, %v1606_v33 }
 0xe91   :  { %v1647_v40 = vsel %vm275_vm8, %v1641_v39, 0  ;;  %v2998_v39 = vld [vmem:[%s3855_s3 + $0x138] sm:$0xff] }
 0xe92   :  { %1656 = vmatpush.bf16.xpose.msrb.mxu0 %v1647_v40 }
 0xe94   :  { %v1607_v41 = vpop.f32.mrf.mxu2 }
 0xe95   :  { %v1608_v42 = vadd.f32 %v3036_v31, %v1607_v41 }
 0xe97   :  { %v1642_v43 = vpack.c.bf16 %v1608_v42, %v1608_v42  ;;  %v2997_v42 = vld [vmem:[%s3855_s3 + $0x130] sm:$0xff] }
 0xe99   :  { %v1666_v45 = vsel %vm275_vm8, %v1642_v43, 0 }
 0xe9a   :  { %1675 = vmatpush.bf16.xpose.msrb.mxu1 %v1666_v45 }
 0xea1   :  { %2827 = vmatmul.msk.bf16.vlgmr.msrb.gmra.mxu1 %vm275_vm8, %v1640_v47 }
 0xea2   :  { %1783 = vmatpush.bf16.msra.mxu1 %v1774_v16 }
 0xee7   :  { %v1489_v48 = vpop.xlane.xlu0 %1488 }
 0xee8   :  { %v1493_v49 = vsub.f32 %v1485_v19, %v1489_v48 }
 0xeea   :  { %v1495_v50 = vmul.f32 1.442695, %v1493_v49 }
 0xeec   :  { %3097 = vpow2.f32 %v1495_v50 }
 0xef2   :  { %v3098_v51 = vpop.eup %3097 }
 0xef3   :  { %v1499_v38 = vsel %vm275_vm8, %v3098_v51, 0.0 }
 0xef4   :  { %1500 = vadd.xlane.f32.xlu1 %v1499_v38 }
 0xef5   :  { %v1492_v58 = vpop.xlane.xlu1 %1491 }
 0xef6   :  { %v1494_v36 = vsub.f32 %v1486_v28, %v1492_v58 }
 0xef8   :  { %v1497_v54 = vmul.f32 1.442695, %v1494_v36 }
 0xefa   :  { %3099 = vpow2.f32 %v1497_v54  ;;  %v3038_v54 = vld [vmem:[%s3856_s4 + $0x13] ss:$0 sm:$0xff] }
 0xf00   :  { %v3100_v37 = vpop.eup %3099 }
 0xf01   :  { %v1502_v59 = vsel %vm275_vm8, %v3100_v37, 0.0 }
 0xf02   :  { %1503 = vadd.xlane.f32.xlu2 %v1502_v59 }
 0xf1e   :  { %v1677_v60 = vpop.f32.mrf.mxu1 }
 0xf1f   :  { %v1682_v61 = vmul.f32 0.35355338, %v1677_v60 }
 0xf21   :  { %v1684_v55 = vadd.f32 %v1682_v61, %v3333_v30 }
 0xf23   :  { %v1688_v62 = vsel %vm275_vm8, %v1684_v55, -inf }
 0xf24   :  { %1689 = vmax.xlane.f32.xlu2 %v1688_v62  ;;  %v2995_v62 = vld [vmem:[%s3855_s3 + $0x120] sm:$0xff] }
 0xf26   :  { %v1679_v63 = vpop.f32.mrf.mxu1 }
 0xf67   :  { %v1501_v2 = vpop.xlane.xlu1 %1500 }
 0xf68   :  { %3101 = vrcp.f32 %v1501_v2 }
 0xf6e   :  { %v3102_v3 = vpop.eup %3101 }
 0xf6f   :  { %v1507_v4 = vmul.f32 %v3102_v3, %v3098_v51 }
 0xf71   :  { %v1509_v5 = vpack.c.bf16 %v1507_v4, %v1507_v4 }
 0xf73   :  { %2797 = vmatmul.msk.bf16.vlgmr.msrb.gmra.mxu3 %vm275_vm8, %v1509_v5 }
 0xf75   :  { %v1504_v6 = vpop.xlane.xlu2 %1503 }
 0xf76   :  { %3103 = vrcp.f32 %v1504_v6 }
 0xf7c   :  { %v3104_v7 = vpop.eup %3103 }
 0xf7d   :  { %v1508_v8 = vmul.f32 %v3104_v7, %v3100_v37  ;;  %v2764_v7 = vld [vmem:[%s3857_s5 + $0x14] sm:$0xf] }
 0xf7f   :  { %v1510_v34 = vpack.c.bf16 %v1508_v8, %v1508_v8  ;;  %v1754_v8 = vsel %vm351_vm9, %v2764_v7, 0 }
 0xf81   :  { %2798 = vmatmul.msk.bf16.vlgmr.msra.gmra.mxu0 %vm275_vm8, %v1510_v34  ;;  %v3000_v34 = vld [vmem:[%s3855_s3 + $0x148] sm:$0xff] }
 0xf82   :  { %1763 = vmatpush.bf16.msra.mxu0 %v1754_v8 }
 0xf83   :  { %2825 = vmatmul.msk.bf16.vlgmr.msra.gmra.mxu3 %vm52_vm0, %v3576_v57 }
 0xf91   :  { %2826 = vmatmul.msk.bf16.vlgmr.msrb.gmra.mxu0 %vm275_vm8, %v1639_v35  ;;  %v2999_v35 = vld [vmem:[%s3855_s3 + $0x140] sm:$0xff] }
 0xf92   :  { %1869 = vmatpush.bf16.msrb.mxu0 %v3000_v34 }
 0xf96   :  { %1870 = vmatpush.bf16.msrb.mxu0 %v2999_v35 }
 0xf97   :  { %v1690_v9 = vpop.xlane.xlu2 %1689 }
 0xf98   :  { %v1692_v11 = vsub.f32 %v1684_v55, %v1690_v9  ;;  %v2996_v55 = vld [vmem:[%s3855_s3 + $0x128] sm:$0xff]  ;;  %v3002_v9 = vld [vmem:[%s3855_s3 + $0x158] sm:$0xff] }
 0xf9a   :  { %v1695_v12 = vmul.f32 1.442695, %v1692_v11  ;;  %v3001_v11 = vld [vmem:[%s3855_s3 + $0x150] sm:$0xff] }
 0xf9c   :  { %3105 = vpow2.f32 %v1695_v12 }
 0xfa2   :  { %v3106_v13 = vpop.eup %3105 }
 0xfa3   :  { %v1700_v14 = vsel %vm275_vm8, %v3106_v13, 0.0 }
 0xfa4   :  { %1701 = vadd.xlane.f32.xlu1 %v1700_v14 }
 0xff6   :  { %v1528_v17 = vpop.f32.mrf.mxu3 }
 0xffe   :  { %v1530_v18 = vpop.f32.mrf.mxu3  ;;  %v1547_v19 = vpop.f32.mrf.mxu0 }
 0xfff   :  { %v1551_v20 = vpack.c.bf16 %v1547_v19, %v1528_v17 }
0x1001   :  { %2831 = vmatmul.msk.bf16.vlgmr.msra.gmra.mxu1 %vm275_vm8, %v1551_v20 }
0x1006   :  { %v1549_v22 = vpop.f32.mrf.mxu0  ;;  %v1634_v23 = vpop.f32.mrf.mxu3 }
0x1007   :  { %v1635_v24 = vadd.f32 %v3037_v21, %v1634_v23 }
0x1009   :  { %v1709_v25 = vpack.c.bf16 %v1635_v24, %v1635_v24 }
0x100b   :  { %v1715_v26 = vsel %vm351_vm9, %v1709_v25, 0 }
0x100c   :  { %1724 = vmatpush.bf16.msrb.mxu2 %v1715_v26 }
0x100e   :  { %v1636_v28 = vpop.f32.mrf.mxu3  ;;  %v1658_v56 = vpop.f32.mrf.mxu0 }
0x100f   :  { %v1637_v29 = vadd.f32 %v3037_v21, %v1636_v28  ;;  %v1681_v31 = vmul.f32 0.35355338, %v1658_v56  ;;  %v3040_v28 = vld [vmem:[%s3856_s4 + $0x14] ss:$0 sm:$0xff] }
0x1010   :  { %1811 = vmatpush.bf16.msra.mxu2 %v2996_v55 }
0x1011   :  { %v1710_v32 = vpack.c.bf16 %v1637_v29, %v1637_v29  ;;  %v1683_v33 = vadd.f32 %v1681_v31, %v3331_v27 }
0x1013   :  { %v1734_v40 = vsel %vm351_vm9, %v1710_v32, 0  ;;  %v1685_v41 = vsel %vm275_vm8, %v1683_v33, -inf }
0x1014   :  { %1743 = vmatpush.bf16.msrb.mxu3 %v1734_v40  ;;  %1686 = vmax.xlane.f32.xlu0 %v1685_v41 }
0x1015   :  { %1812 = vmatpush.bf16.msra.mxu2 %v2995_v62 }
0x1016   :  { %v1660_v43 = vpop.f32.mrf.mxu0 }
0x1017   :  { %v1702_v44 = vpop.xlane.xlu1 %1701 }
0x1018   :  { %1840 = vmatpush.bf16.msra.mxu3 %v2998_v39  ;;  %3107 = vrcp.f32 %v1702_v44 }
0x101c   :  { %1841 = vmatpush.bf16.msra.mxu3 %v2997_v42 }
0x101e   :  { %v3108_v45 = vpop.eup %3107 }
0x101f   :  { %v1706_v46 = vmul.f32 %v3108_v45, %v3106_v13 }
0x1021   :  { %v1708_v47 = vpack.c.bf16 %v1706_v46, %v1706_v46 }
0x1023   :  { %2829 = vmatmul.msk.bf16.vlgmr.msrb.gmra.mxu3 %vm275_vm8, %v1708_v47 }
0x1033   :  { %2849 = vmatmul.msk.bf16.vlgmr.msra.gmra.mxu3 %vm52_vm0, %v3576_v57 }
0x107e   :  { %v3706_v22 = vpop.f32.mrf.mxu1 }
0x1086   :  { %v1787_v24 = vpop.f32.mrf.mxu1 }
0x1087   :  { %v1687_v48 = vpop.xlane.xlu0 %1686 }
0x1088   :  { %v1691_v49 = vsub.f32 %v1683_v33, %v1687_v48 }
0x108a   :  { %v1693_v50 = vmul.f32 1.442695, %v1691_v49 }
0x108c   :  { %3109 = vpow2.f32 %v1693_v50 }
0x1092   :  { %v3110_v51 = vpop.eup %3109 }
0x1093   :  { %v1697_v38 = vsel %vm275_vm8, %v3110_v51, 0.0 }
0x1094   :  { %1698 = vadd.xlane.f32.xlu2 %v1697_v38 }
0x10a6   :  { %v1745_v58 = vpop.f32.mrf.mxu3 }
0x10ae   :  { %v1747_v36 = vpop.f32.mrf.mxu3 }
0x10b6   :  { %v1843_v37 = vpop.f32.mrf.mxu3 }
0x10b7   :  { %v1844_v59 = vadd.f32 %v3038_v54, %v1843_v37 }
0x10b9   :  { %v1879_v60 = vpack.c.bf16 %v1844_v59, %v1844_v59 }
0x10bb   :  { %v1885_v61 = vsel %vm275_vm8, %v1879_v60, 0 }
0x10bc   :  { %1894 = vmatpush.bf16.xpose.msrb.mxu1 %v1885_v61 }
0x10be   :  { %v1845_v0 = vpop.f32.mrf.mxu3 }
0x10bf   :  { %v1846_v1 = vadd.f32 %v3038_v54, %v1845_v0  ;;  %v3003_v0 = vld [vmem:[%s3855_s3 + $0x160] sm:$0xff] }
0x10c1   :  { %v1880_v3 = vpack.c.bf16 %v1846_v1, %v1846_v1  ;;  %v3006_v1 = vld [vmem:[%s3855_s3 + $0x178] sm:$0xff] }
0x10c3   :  { %v1904_v6 = vsel %vm275_vm8, %v1880_v3, 0 }
0x1107   :  { %v1699_v63 = vpop.xlane.xlu2 %1698 }
0x1108   :  { %3111 = vrcp.f32 %v1699_v63  ;;  %v3004_v63 = vld [vmem:[%s3855_s3 + $0x168] sm:$0xff] }
0x110e   :  { %v3112_v2 = vpop.eup %3111 }
0x110f   :  { %v1705_v4 = vmul.f32 %v3112_v2, %v3110_v51  ;;  %v3005_v2 = vld [vmem:[%s3855_s3 + $0x170] sm:$0xff] }
0x1111   :  { %v1707_v5 = vpack.c.bf16 %v1705_v4, %v1705_v4 }
0x1113   :  { %2828 = vmatmul.msk.bf16.vlgmr.msrb.gmra.mxu2 %vm275_vm8, %v1707_v5 }
0x1114   :  { %1913 = vmatpush.bf16.xpose.msrb.mxu2 %v1904_v6 }
0x1123   :  { %2840 = vmatmul.msk.bf16.vlgmr.msra.gmra.mxu2 %vm52_vm0, %v3576_v57 }
0x1124   :  { %2031 = vmatpush.bf16.msra.mxu2 %v3002_v9  ;;  %v2765_v9 = vld [vmem:[%s3857_s5 + $0x18] sm:$0xf] }
0x1128   :  { %2032 = vmatpush.bf16.msra.mxu2 %v3001_v11  ;;  %v1992_v11 = vsel %vm351_vm9, %v2765_v9, 0 }
0x1129   :  { %2001 = vmatpush.bf16.msra.mxu1 %v1992_v11 }
0x1196   :  { %v1726_v12 = vpop.f32.mrf.mxu2 }
0x1197   :  { %v1749_v13 = vpack.c.bf16 %v1745_v58, %v1726_v12 }
0x1199   :  { %2830 = vmatmul.msk.bf16.vlgmr.msra.gmra.mxu0 %vm275_vm8, %v1749_v13 }
0x119e   :  { %v1728_v14 = vpop.f32.mrf.mxu2 }
0x11a6   :  { %v1814_v16 = vpop.f32.mrf.mxu2 }
0x11a7   :  { %v1815_v17 = vadd.f32 %v3039_v15, %v1814_v16  ;;  %v3042_v16 = vld [vmem:[%s3856_s4 + $0x16] ss:$0 sm:$0xff] }
0x11a9   :  { %v1877_v18 = vpack.c.bf16 %v1815_v17, %v1815_v17  ;;  %2858 = vmatmul.msk.bf16.vlgmr.msrb.gmra.mxu0 %vm52_vm0, %v3576_v57 }
0x11ab   :  { %2859 = vmatmul.msk.bf16.vlgmr.msrb.gmra.mxu1 %vm275_vm8, %v1877_v18 }
0x11ae   :  { %v1816_v19 = vpop.f32.mrf.mxu2 }
0x11af   :  { %v1817_v20 = vadd.f32 %v3039_v15, %v1816_v19 }
0x11b1   :  { %v1878_v21 = vpack.c.bf16 %v1817_v20, %v1817_v20  ;;  %v3041_v20 = vld [vmem:[%s3856_s4 + $0x15] ss:$0 sm:$0xff] }
0x11b3   :  { %2860 = vmatmul.msk.bf16.vlgmr.msrb.gmra.mxu2 %vm275_vm8, %v1878_v21 }
0x11c3   :  { %2872 = vmatmul.msk.bf16.vlgmr.msra.gmra.mxu2 %vm52_vm0, %v3576_v57 }
0x1216   :  { %v3708_v23 = vpop.f32.mrf.mxu0 }
0x121e   :  { %v1767_v25 = vpop.f32.mrf.mxu0 }
0x121f   :  { %v3710_v26 = vadd.f32 %v1787_v24, %v1767_v25  ;;  %v3043_v25 = vld [vmem:[%s3856_s4 + $0x17] ss:$0 sm:$0xff] }
0x1226   :  { %v1872_v56 = vpop.f32.mrf.mxu0 }
0x1227   :  { %v1873_v29 = vadd.f32 %v3040_v28, %v1872_v56 }
0x1228   :  { %v1896_v31 = vpop.f32.mrf.mxu1 }
0x1229   :  { %v1947_v32 = vpack.c.bf16 %v1873_v29, %v1873_v29  ;;  %v1919_v33 = vmul.f32 0.35355338, %v1896_v31 }
0x122b   :  { %v1953_v39 = vsel %vm351_vm9, %v1947_v32, 0  ;;  %v1921_v40 = vadd.f32 %v1919_v33, %v3331_v27 }
0x122c   :  { %1962 = vmatpush.bf16.msrb.mxu3 %v1953_v39 }
0x122d   :  { %v1923_v41 = vsel %vm275_vm8, %v1921_v40, -inf }
0x122e   :  { %1924 = vmax.xlane.f32.xlu0 %v1923_v41  ;;  %v1874_v42 = vpop.f32.mrf.mxu0 }
0x122f   :  { %v1875_v43 = vadd.f32 %v3040_v28, %v1874_v42 }
0x1230   :  { %v1898_v44 = vpop.f32.mrf.mxu1  ;;  %2060 = vmatpush.bf16.msra.mxu3 %v3004_v63 }
0x1231   :  { %v1948_v45 = vpack.c.bf16 %v1875_v43, %v1875_v43 }
0x1233   :  { %v1972_v46 = vsel %vm351_vm9, %v1948_v45, 0 }
0x1234   :  { %1981 = vmatpush.bf16.msra.mxu0 %v1972_v46  ;;  %2061 = vmatpush.bf16.msra.mxu3 %v3003_v0 }
0x1236   :  { %v1915_v47 = vpop.f32.mrf.mxu2 }
0x1237   :  { %v1920_v48 = vmul.f32 0.35355338, %v1915_v47 }
0x1238   :  { %2089 = vmatpush.bf16.msrb.mxu0 %v3006_v1 }
0x1239   :  { %v1922_v49 = vadd.f32 %v1920_v48, %v3333_v30 }
0x123b   :  { %v1926_v50 = vsel %vm275_vm8, %v1922_v49, -inf }
0x123c   :  { %1927 = vmax.xlane.f32.xlu1 %v1926_v50  ;;  %2090 = vmatpush.bf16.msrb.mxu0 %v3005_v2  ;;  %v1786_v50 = vadd.f32 %v3706_v22, %v3708_v23 }
0x123e   :  { %v1917_v51 = vpop.f32.mrf.mxu2 }
0x1246   :  { %v2034_v19 = vpop.f32.mrf.mxu2 }
0x1247   :  { %v2035_v28 = vadd.f32 %v3041_v20, %v2034_v19 }
0x1249   :  { %v2097_v33 = vpack.c.bf16 %v2035_v28, %v2035_v28 }
0x124e   :  { %v2036_v41 = vpop.f32.mrf.mxu2 }
0x124f   :  { %v2037_v44 = vadd.f32 %v3041_v20, %v2036_v41  ;;  %v3780_v20 = vld [vmem:[%s3858_s6 + $0x8] sm:$0x3f] }
0x1251   :  { %v2098_v47 = vpack.c.bf16 %v2037_v44, %v2037_v44 }
0x12a1   :  { %v1925_v38 = vpop.xlane.xlu0 %1924 }
0x12a2   :  { %v1929_v58 = vsub.f32 %v1921_v40, %v1925_v38 }
0x12a4   :  { %v1931_v36 = vmul.f32 1.442695, %v1929_v58 }
0x12a6   :  { %3113 = vpow2.f32 %v1931_v36 }
0x12ac   :  { %v3114_v54 = vpop.eup %3113 }
0x12ad   :  { %v1935_v37 = vsel %vm275_vm8, %v3114_v54, 0.0 }
0x12ae   :  { %1936 = vadd.xlane.f32.xlu2 %v1935_v37 }
0x12af   :  { %v1928_v59 = vpop.xlane.xlu1 %1927 }
0x12b0   :  { %v1930_v60 = vsub.f32 %v1922_v49, %v1928_v59 }
0x12b2   :  { %v1933_v61 = vmul.f32 1.442695, %v1930_v60 }
0x12b4   :  { %3115 = vpow2.f32 %v1933_v61 }
0x12ba   :  { %v3116_v55 = vpop.eup %3115 }
0x12bb   :  { %v1938_v62 = vsel %vm275_vm8, %v3116_v55, 0.0 }
0x12bc   :  { %1939 = vadd.xlane.f32.xlu0 %v1938_v62 }
0x1321   :  { %v1937_v3 = vpop.xlane.xlu2 %1936 }
0x1322   :  { %3117 = vrcp.f32 %v1937_v3 }
0x1328   :  { %v3118_v4 = vpop.eup %3117 }
0x1329   :  { %v1943_v5 = vmul.f32 %v3118_v4, %v3114_v54 }
0x132b   :  { %v1945_v6 = vpack.c.bf16 %v1943_v5, %v1943_v5 }
0x132d   :  { %2861 = vmatmul.msk.bf16.vlgmr.msrb.gmra.mxu3 %vm275_vm8, %v1945_v6 }
0x132f   :  { %v1940_v7 = vpop.xlane.xlu0 %1939 }
0x1330   :  { %3119 = vrcp.f32 %v1940_v7 }
0x1336   :  { %v3120_v8 = vpop.eup %3119 }
0x1337   :  { %v1944_v34 = vmul.f32 %v3120_v8, %v3116_v55 }
0x1339   :  { %v1946_v35 = vpack.c.bf16 %v1944_v34, %v1944_v34 }
0x133b   :  { %2862 = vmatmul.msk.bf16.vlgmr.msra.gmra.mxu0 %vm275_vm8, %v1946_v35 }
0x133d   :  { %2881 = vmatmul.msk.bf16.vlgmr.msra.gmra.mxu3 %vm52_vm0, %v3576_v57 }
0x134b   :  { %2890 = vmatmul.msk.bf16.vlgmr.msrb.gmra.mxu0 %vm52_vm0, %v3576_v57 }
0x13b0   :  { %v1964_v12 = vpop.f32.mrf.mxu3 }
0x13b8   :  { %v1966_v13 = vpop.f32.mrf.mxu3  ;;  %v1983_v14 = vpop.f32.mrf.mxu0 }
0x13b9   :  { %v1987_v15 = vpack.c.bf16 %v1983_v14, %v1964_v12  ;;  %v2766_v14 = vld [vmem:[%s3857_s5 + $0x1c] sm:$0xf]  ;;  %s2538_s5 = sshll.u32 %s3170_s25, 4  ;;  %s2539_s5 = int_to_ptr.vmem [resolvable:$true] %s2538_s5 }
0x13bb   :  { %2863 = vmatmul.msk.bf16.vlgmr.msra.gmra.mxu1 %vm275_vm8, %v1987_v15  ;;  %v2212_v15 = vsel %vm351_vm9, %v2766_v14, 0  ;;  %v3044_v14 = vld [vmem:[%s3860_s8 + $0x1] ss:$0 sm:$0xff] }
0x13c0   :  { %v1985_v17 = vpop.f32.mrf.mxu0  ;;  %v2063_v18 = vpop.f32.mrf.mxu3 }
0x13c1   :  { %v2064_v57 = vadd.f32 %v3042_v16, %v2063_v18 }
0x13c3   :  { %v2099_v21 = vpack.c.bf16 %v2064_v57, %v2064_v57 }
0x13c5   :  { %v2105_v24 = vsel %vm275_vm8, %v2099_v21, 0  ;;  %v2230_v21 = vperm.slane %v3780_v20, 0 }
0x13c6   :  { %2114 = vmatpush.bf16.xpose.msrb.mxu1 %v2105_v24 }
0x13c8   :  { %v2065_v56 = vpop.f32.mrf.mxu3  ;;  %v2092_v29 = vpop.f32.mrf.mxu0 }
0x13c9   :  { %v2066_v31 = vadd.f32 %v3042_v16, %v2065_v56  ;;  %v2093_v32 = vadd.f32 %v3043_v25, %v2092_v29 }
0x13cb   :  { %v2100_v39 = vpack.c.bf16 %v2066_v31, %v2066_v31  ;;  %v2167_v40 = vpack.c.bf16 %v2093_v32, %v2093_v32 }
0x13cd   :  { %v2124_v42 = vsel %vm275_vm8, %v2100_v39, 0  ;;  %v2173_v43 = vsel %vm351_vm9, %v2167_v40, 0  ;;  %2891 = vmatmul.msk.bf16.vlgmr.msrb.gmra.mxu1 %vm275_vm8, %v2097_v33 }
0x13ce   :  { %2133 = vmatpush.bf16.xpose.msrb.mxu2 %v2124_v42  ;;  %2182 = vmatpush.bf16.msrb.mxu3 %v2173_v43 }
0x13cf   :  { %2221 = vmatpush.bf16.msra.mxu1 %v2212_v15 }
0x13d0   :  { %v2094_v45 = vpop.f32.mrf.mxu0 }
0x13d1   :  { %v2095_v46 = vadd.f32 %v3043_v25, %v2094_v45 }
0x13d3   :  { %v2168_v48 = vpack.c.bf16 %v2095_v46, %v2095_v46 }
0x13d5   :  { %v2192_v49 = vsel %vm351_vm9, %v2168_v48, 0  ;;  %2892 = vmatmul.msk.bf16.vlgmr.msrb.gmra.mxu2 %vm275_vm8, %v2098_v47 }
0x13d6   :  { %2201 = vmatpush.bf16.msra.mxu0 %v2192_v49 }
0x1438   :  { %v2003_v51 = vpop.f32.mrf.mxu1 }
0x1439   :  { %v2008_v38 = vadd.f32 %v2003_v51, %v1786_v50 }
0x1440   :  { %v2005_v58 = vpop.f32.mrf.mxu1 }
0x1441   :  { %v2009_v36 = vadd.f32 %v2005_v58, %v3710_v26  ;;  %v3007_v58 = vld [vmem:[%s3859_s7 + $0x10] sm:$0xff] }
0x144a   :  { %v2116_v54 = vpop.f32.mrf.mxu1 }
0x144b   :  { %v2139_v37 = vmul.f32 0.35355338, %v2116_v54 }
0x144d   :  { %v2141_v59 = vadd.f32 %v2139_v37, %v3331_v27 }
0x144f   :  { %v2143_v60 = vsel %vm275_vm8, %v2141_v59, -inf }
0x1450   :  { %2144 = vmax.xlane.f32.xlu1 %v2143_v60 }
0x1452   :  { %v2118_v61 = vpop.f32.mrf.mxu1 }
0x1458   :  { %v2135_v55 = vpop.f32.mrf.mxu2 }
0x1459   :  { %v2140_v62 = vmul.f32 0.35355338, %v2135_v55 }
0x145b   :  { %v2142_v63 = vadd.f32 %v2140_v62, %v3333_v30 }
0x145d   :  { %v2146_v0 = vsel %vm275_vm8, %v2142_v63, -inf }
0x145e   :  { %2147 = vmax.xlane.f32.xlu2 %v2146_v0 }
0x1460   :  { %v2137_v22 = vpop.f32.mrf.mxu2 }
0x14c3   :  { %v2145_v23 = vpop.xlane.xlu1 %2144 }
0x14c4   :  { %v2149_v1 = vsub.f32 %v2141_v59, %v2145_v23 }
0x14c6   :  { %v2151_v2 = vmul.f32 1.442695, %v2149_v1 }
0x14c8   :  { %3121 = vpow2.f32 %v2151_v2 }
0x14ce   :  { %v3122_v26 = vpop.eup %3121 }
0x14cf   :  { %v2155_v3 = vsel %vm275_vm8, %v3122_v26, 0.0 }
0x14d0   :  { %2156 = vadd.xlane.f32.xlu0 %v2155_v3  ;;  %v2279_v3 = vperm.slane %v3780_v20, 1 }
0x14d1   :  { %v2148_v27 = vpop.xlane.xlu2 %2147 }
0x14d2   :  { %v2150_v4 = vsub.f32 %v2142_v63, %v2148_v27 }
0x14d4   :  { %v2153_v5 = vmul.f32 1.442695, %v2150_v4 }
0x14d6   :  { %3123 = vpow2.f32 %v2153_v5 }
0x14dc   :  { %v3124_v6 = vpop.eup %3123 }
0x14dd   :  { %v2158_v7 = vsel %vm275_vm8, %v3124_v6, 0.0 }
0x14de   :  { %2159 = vadd.xlane.f32.xlu1 %v2158_v7 }
0x1543   :  { %v2157_v30 = vpop.xlane.xlu0 %2156 }
0x1544   :  { %3125 = vrcp.f32 %v2157_v30 }
0x154a   :  { %v3126_v8 = vpop.eup %3125 }
0x154b   :  { %v2163_v34 = vmul.f32 %v3126_v8, %v3122_v26 }
0x154d   :  { %v2165_v35 = vpack.c.bf16 %v2163_v34, %v2163_v34 }
0x154f   :  { %2893 = vmatmul.msk.bf16.vlgmr.msrb.gmra.mxu3 %vm275_vm8, %v2165_v35 }
0x1551   :  { %v2160_v9 = vpop.xlane.xlu1 %2159 }
0x1552   :  { %3127 = vrcp.f32 %v2160_v9 }
0x1558   :  { %v3128_v11 = vpop.eup %3127 }
0x1559   :  { %v2164_v12 = vmul.f32 %v3128_v11, %v3124_v6  ;;  %v2282_v6 = vperm.slane %v3780_v20, 2  ;;  %v3012_v11 = vld [vmem:[%s3861_s9 + $0x38] sm:$0xff] }
0x155a   :  { %2385 = vmatpush.bf16.msra.mxu3 %v3012_v11 }
0x155b   :  { %v2166_v13 = vpack.c.bf16 %v2164_v12, %v2164_v12  ;;  %v3011_v12 = vld [vmem:[%s3861_s9 + $0x30] sm:$0xff] }
0x155d   :  { %2894 = vmatmul.msk.bf16.vlgmr.msra.gmra.mxu0 %vm275_vm8, %v2166_v13  ;;  %v3010_v13 = vld [vmem:[%s3861_s9 + $0x28] sm:$0xff] }
0x155e   :  { %2386 = vmatpush.bf16.msra.mxu3 %v3011_v12 }
0x1562   :  { %2387 = vmatpush.bf16.msra.mxu3 %v3010_v13 }
0x15d2   :  { %v2184_v16 = vpop.f32.mrf.mxu3 }
0x15da   :  { %v2186_v17 = vpop.f32.mrf.mxu3  ;;  %v2203_v18 = vpop.f32.mrf.mxu0 }
0x15db   :  { %v2207_v57 = vpack.c.bf16 %v2203_v18, %v2184_v16  ;;  %v3009_v16 = vld [vmem:[%s3861_s9 + $0x20] sm:$0xff] }
0x15dc   :  { %2388 = vmatpush.bf16.msra.mxu3 %v3009_v16 }
0x15dd   :  { %2895 = vmatmul.msk.bf16.vlgmr.msra.gmra.mxu1 %vm275_vm8, %v2207_v57 }
0x15e2   :  { %v2205_v19 = vpop.f32.mrf.mxu0 }
0x165a   :  { %v2223_v24 = vpop.f32.mrf.mxu1 }
0x165b   :  { %v2228_v25 = vadd.f32 %v2223_v24, %v2008_v38 }
0x165d   :  { %v2231_v28 = vadd.f32 %v2230_v21, %v2228_v25 }
0x165f   :  { %v2233_v56 = vadd.f32 %v2231_v28, %v3570_v52 }
0x1661   :  { %v2235_v29 = vsel %vm52_vm0, %v2233_v56, 0.0 }
0x1662   :  { %2236 = vadd.xlane.f32.xlu2 %v2235_v29  ;;  %v2225_v31 = vpop.f32.mrf.mxu1 }
0x1663   :  { %v2229_v32 = vadd.f32 %v2225_v31, %v2009_v36 }
0x1665   :  { %v2232_v33 = vadd.f32 %v2230_v21, %v2229_v32 }
0x1667   :  { %v2234_v39 = vadd.f32 %v2232_v33, %v3572_v53  ;;  %v3008_v53 = vld [vmem:[%s3859_s7 + $0x18] sm:$0xff] }
0x1668   :  { %2317 = vmatpush.bf16.msra.mxu2 %v3008_v53 }
0x1669   :  { %v2238_v40 = vsel %vm52_vm0, %v2234_v39, 0.0 }
0x166a   :  { %2239 = vadd.xlane.f32.xlu0 %v2238_v40 }
0x166c   :  { %2318 = vmatpush.bf16.msra.mxu2 %v3007_v58 }
0x16d5   :  { %v2237_v41 = vpop.xlane.xlu2 %2236 }
0x16d6   :  { %v2241_v42 = vmul.f32 %v2237_v41, %v3254_v10 }
0x16d8   :  { %v2243_v43 = vsub.f32 %v2233_v56, %v2241_v42 }
0x16da   :  { %v2245_v44 = vmul.f32 %v2243_v43, %v2243_v43 }
0x16dc   :  { %v2247_v45 = vsel %vm52_vm0, %v2245_v44, 0.0 }
0x16dd   :  { %2248 = vadd.xlane.f32.xlu1 %v2247_v45  ;;  %v2240_v52 = vpop.xlane.xlu0 %2239 }
0x16de   :  { %v2242_v46 = vmul.f32 %v2240_v52, %v3254_v10 }
0x16e0   :  { %v2244_v47 = vsub.f32 %v2234_v39, %v2242_v46 }
0x16e2   :  { %v2246_v48 = vmul.f32 %v2244_v47, %v2244_v47 }
0x16e4   :  { %v2250_v49 = vsel %vm52_vm0, %v2246_v48, 0.0 }
0x16e5   :  { %2251 = vadd.xlane.f32.xlu2 %v2250_v49 }
0x1750   :  { %v2249_v50 = vpop.xlane.xlu1 %2248 }
0x1751   :  { %v2253_v51 = vmul.f32 %v2249_v50, %v3254_v10 }
0x1753   :  { %v2255_v38 = vadd.f32 1e-12, %v2253_v51 }
0x1755   :  { %3129 = vrsqrt.f32 %v2255_v38  ;;  %vm2263_vm9 = vweird.f32 %v2255_v38 }
0x1758   :  { %v2252_v36 = vpop.xlane.xlu2 %2251 }
0x1759   :  { %v2254_v54 = vmul.f32 %v2252_v36, %v3254_v10 }
0x175b   :  { %v3130_v37 = vpop.eup %3129  ;;  %v2256_v59 = vadd.f32 1e-12, %v2254_v54 }
0x175c   :  { %v2258_v60 = vmul.f32 %v3130_v37, %v2255_v38  ;;  %vm2264_vm8 = vweird.f32 %v3130_v37 }
0x175d   :  { %3131 = vrsqrt.f32 %v2256_v59  ;;  %vm2265_vm10 = vmor %vm2263_vm9, %vm2264_vm8  ;;  %vm2273_vm12 = vweird.f32 %v2256_v59 }
0x175e   :  { %v2259_v61 = vmul.f32 %v3130_v37, %v2258_v60 }
0x1760   :  { %v2260_v55 = vmul.f32 0.5, %v2259_v61 }
0x1762   :  { %v2261_v62 = vsub.f32 1.5, %v2260_v55 }
0x1763   :  { %v3132_v63 = vpop.eup %3131 }
0x1764   :  { %v2262_v0 = vmul.f32 %v3130_v37, %v2261_v62  ;;  %v2268_v22 = vmul.f32 %v3132_v63, %v2256_v59  ;;  %vm2274_vm11 = vweird.f32 %v3132_v63 }
0x1765   :  { %vm2275_vm13 = vmor %vm2273_vm12, %vm2274_vm11 }
0x1766   :  { %v2269_v23 = vmul.f32 %v3132_v63, %v2268_v22  ;;  %v2266_v1 = vsel %vm2265_vm10, %v3130_v37, %v2262_v0 }
0x1767   :  { %v2277_v27 = vmul.f32 %v2266_v1, %v2243_v43 }
0x1768   :  { %v2270_v2 = vmul.f32 0.5, %v2269_v23 }
0x1769   :  { %v2280_v7 = vmul.f32 %v2279_v3, %v2277_v27 }
0x176a   :  { %v2271_v26 = vsub.f32 1.5, %v2270_v2 }
0x176b   :  { %v2283_v34 = vadd.f32 %v2282_v6, %v2280_v7 }
0x176c   :  { %v2272_v4 = vmul.f32 %v3132_v63, %v2271_v26  ;;  %v3014_v26 = vld [vmem:[%s3862_s10 + $0x8] sm:$0xff] }
0x176d   :  { %2486 = vmatpush.bf16.msrb.mxu0 %v3014_v26 }
0x176e   :  { %v2276_v5 = vsel %vm2275_vm13, %v3132_v63, %v2272_v4  ;;  %v3013_v4 = vld [vmem:[%s3862_s10] sm:$0xff] }
0x176f   :  { %v2278_v30 = vmul.f32 %v2276_v5, %v2244_v47  ;;  %v2353_v47 = vperm.slane %v3780_v20, 3 }
0x1771   :  { %v2281_v8 = vmul.f32 %v2279_v3, %v2278_v30  ;;  %2487 = vmatpush.bf16.msrb.mxu0 %v3013_v4 }
0x1773   :  { %v2284_v35 = vadd.f32 %v2282_v6, %v2281_v8 }
0x1775   :  { %v2285_v9 = vpack.c.bf16 %v2284_v35, %v2283_v34 }
0x1777   :  { %2909 = vmatmul.msk.bf16.vlgmr.msra.gmra.mxu2 %vm52_vm0, %v2285_v9 }
0x17fa   :  { %v2320_v15 = vpop.f32.mrf.mxu2 }
0x17fb   :  { %v2321_v17 = vadd.f32 %v3044_v14, %v2320_v15 }
0x17fd   :  { %v2325_v18 = vmul.f32 %v2321_v17, %v2321_v17 }
0x17ff   :  { %v2327_v57 = vmul.f32 %v2325_v18, %v2321_v17  ;;  %v2444_v18 = vperm.slane %v3780_v20, 5 }
0x1801   :  { %v2329_v19 = vmul.f32 0.044715, %v2327_v57 }
0x1802   :  { %v2322_v21 = vpop.f32.mrf.mxu2 }
0x1803   :  { %v2331_v24 = vadd.f32 %v2329_v19, %v2321_v17  ;;  %v2323_v25 = vadd.f32 %v3044_v14, %v2322_v21  ;;  %v2441_v14 = vperm.slane %v3780_v20, 4  ;;  %v3016_v20 = vld [vmem:[%s3864_s12 + $0x8] sm:$0xff] }
0x1804   :  { %2524 = vmatpush.bf16.msrb.mxu1 %v3016_v20 }
0x1805   :  { %v2333_v28 = vmul.f32 0.7978846, %v2331_v24  ;;  %v2326_v56 = vmul.f32 %v2323_v25, %v2323_v25 }
0x1807   :  { %v2328_v29 = vmul.f32 %v2326_v56, %v2323_v25  ;;  %3133 = vtanh.f32 %v2333_v28 }
0x1809   :  { %v2330_v31 = vmul.f32 0.044715, %v2328_v29 }
0x180b   :  { %v2332_v32 = vadd.f32 %v2330_v31, %v2323_v25 }
0x180d   :  { %v2334_v33 = vmul.f32 0.7978846, %v2332_v32  ;;  %v3134_v39 = vpop.eup %3133 }
0x180e   :  { %v2337_v40 = vadd.f32 1.0, %v3134_v39 }
0x180f   :  { %3135 = vtanh.f32 %v2334_v33 }
0x1810   :  { %v2339_v42 = vmul.f32 0.5, %v2337_v40 }
0x1812   :  { %v2341_v45 = vmul.f32 %v2339_v42, %v2321_v17  ;;  %v3045_v42 = vld [vmem:[%s3863_s11] ss:$0 sm:$0xff] }
0x1815   :  { %v3136_v41 = vpop.eup %3135 }
0x1816   :  { %v2338_v43 = vadd.f32 1.0, %v3136_v41  ;;  %v3015_v41 = vld [vmem:[%s3864_s12] sm:$0xff] }
0x1817   :  { %2525 = vmatpush.bf16.msrb.mxu1 %v3015_v41 }
0x1818   :  { %v2340_v44 = vmul.f32 0.5, %v2338_v43 }
0x181a   :  { %v2342_v52 = vmul.f32 %v2340_v44, %v2323_v25 }
0x181c   :  { %v2343_v46 = vpack.c.bf16 %v2342_v52, %v2341_v45 }
0x181e   :  { %2934 = vmatmul.msk.bf16.vlgmr.msra.gmra.mxu3 %vm1211_vm1, %v2343_v46 }
0x18a1   :  { %v2390_v48 = vpop.f32.mrf.mxu3 }
0x18a2   :  { %v2391_v49 = vadd.f32 %v2390_v48, %v2353_v47 }
0x18a4   :  { %v2395_v53 = vadd.f32 %v2391_v49, %v2283_v34 }
0x18a6   :  { %v2397_v50 = vsel %vm52_vm0, %v2395_v53, 0.0 }
0x18a7   :  { %2398 = vadd.xlane.f32.xlu1 %v2397_v50 }
0x18a9   :  { %v2392_v51 = vpop.f32.mrf.mxu3 }
0x18aa   :  { %v2393_v38 = vadd.f32 %v2392_v51, %v2353_v47  ;;  %v3046_v47 = vld [vmem:[%s3865_s13] ss:$0 sm:$0xff] }
0x18ac   :  { %v2396_v58 = vadd.f32 %v2393_v38, %v2284_v35 }
0x18ae   :  { %v2400_v36 = vsel %vm52_vm0, %v2396_v58, 0.0 }
0x18af   :  { %2401 = vadd.xlane.f32.xlu0 %v2400_v36 }
0x191a   :  { %v2399_v54 = vpop.xlane.xlu1 %2398 }
0x191b   :  { %v2403_v37 = vmul.f32 %v2399_v54, %v3254_v10 }
0x191d   :  { %v2405_v59 = vsub.f32 %v2395_v53, %v2403_v37 }
0x191f   :  { %v2407_v60 = vmul.f32 %v2405_v59, %v2405_v59 }
0x1921   :  { %v2409_v61 = vsel %vm52_vm0, %v2407_v60, 0.0 }
0x1922   :  { %v2402_v55 = vpop.xlane.xlu0 %2401  ;;  %2410 = vadd.xlane.f32.xlu0 %v2409_v61 }
0x1923   :  { %v2404_v62 = vmul.f32 %v2402_v55, %v3254_v10 }
0x1925   :  { %v2406_v63 = vsub.f32 %v2396_v58, %v2404_v62 }
0x1927   :  { %v2408_v0 = vmul.f32 %v2406_v63, %v2406_v63 }
0x1929   :  { %v2412_v22 = vsel %vm52_vm0, %v2408_v0, 0.0 }
0x192a   :  { %2413 = vadd.xlane.f32.xlu2 %v2412_v22 }
0x1995   :  { %v2411_v23 = vpop.xlane.xlu0 %2410 }
0x1996   :  { %v2415_v1 = vmul.f32 %v2411_v23, %v3254_v10 }
0x1998   :  { %v2417_v2 = vadd.f32 1e-12, %v2415_v1 }
0x199a   :  { %3137 = vrsqrt.f32 %v2417_v2  ;;  %vm2425_vm15 = vweird.f32 %v2417_v2 }
0x199d   :  { %v2414_v3 = vpop.xlane.xlu2 %2413 }
0x199e   :  { %v2416_v27 = vmul.f32 %v2414_v3, %v3254_v10 }
0x19a0   :  { %v3138_v5 = vpop.eup %3137  ;;  %v2418_v6 = vadd.f32 1e-12, %v2416_v27 }
0x19a1   :  { %v2420_v7 = vmul.f32 %v3138_v5, %v2417_v2  ;;  %vm2426_vm14 = vweird.f32 %v3138_v5 }
0x19a2   :  { %3139 = vrsqrt.f32 %v2418_v6  ;;  %vm2427_vm1 = vmor %vm2425_vm15, %vm2426_vm14  ;;  %vm2435_vm3 = vweird.f32 %v2418_v6 }
0x19a3   :  { %v2421_v30 = vmul.f32 %v3138_v5, %v2420_v7 }
0x19a5   :  { %v2422_v8 = vmul.f32 0.5, %v2421_v30 }
0x19a7   :  { %v2423_v34 = vsub.f32 1.5, %v2422_v8 }
0x19a8   :  { %v3140_v35 = vpop.eup %3139 }
0x19a9   :  { %v2424_v9 = vmul.f32 %v3138_v5, %v2423_v34  ;;  %v2430_v11 = vmul.f32 %v3140_v35, %v2418_v6  ;;  %vm2436_vm2 = vweird.f32 %v3140_v35 }
0x19aa   :  { %vm2437_vm4 = vmor %vm2435_vm3, %vm2436_vm2 }
0x19ab   :  { %v2428_v12 = vsel %vm2427_vm1, %v3138_v5, %v2424_v9  ;;  %v2431_v10 = vmul.f32 %v3140_v35, %v2430_v11 }
0x19ac   :  { %v2439_v15 = vmul.f32 %v2428_v12, %v2405_v59 }
0x19ad   :  { %v2432_v13 = vmul.f32 0.5, %v2431_v10 }
0x19ae   :  { %v2442_v57 = vmul.f32 %v2441_v14, %v2439_v15 }
0x19af   :  { %v2433_v16 = vsub.f32 1.5, %v2432_v13 }
0x19b0   :  { %v2445_v24 = vadd.f32 %v2444_v18, %v2442_v57 }
0x19b1   :  { %v2434_v17 = vmul.f32 %v3140_v35, %v2433_v16 }
0x19b2   :  { %v2447_v56 = vpack.c.bf16 %v2445_v24, %v2445_v24 }
0x19b3   :  { %v2438_v19 = vsel %vm2437_vm4, %v3140_v35, %v2434_v17 }
0x19b4   :  { %v2440_v21 = vmul.f32 %v2438_v19, %v2406_v63  ;;  %v2459_v32 = vunpack.c.l.b16 %v2447_v56 }
0x19b6   :  { %v2443_v25 = vmul.f32 %v2441_v14, %v2440_v21 }
0x19b8   :  { %v2446_v28 = vadd.f32 %v2444_v18, %v2443_v25 }
0x19ba   :  { %v2448_v29 = vpack.c.bf16 %v2446_v28, %v2446_v28 }
0x19bc   :  { %v2460_v31 = vunpack.c.l.b16 %v2448_v29 }
0x19be   :  { %v2461_v33 = vrot.slane %v2460_v31, 7 }
0x19c0   :  { %v2463_v39 = vsel %vm2462_vm5, %v2461_v33, %v2459_v32 }
0x19c1   :  { %v2464_v40 = vpack.c.b16 %v2463_v39, %v2463_v39 }
0x19c3   :  { %2943 = vmatmul.msk.bf16.vlgmr.msrb.gmra.mxu0 %vm52_vm0, %v2464_v40 }
0x1a40   :  { %v2489_v43 = vpop.f32.mrf.mxu0 }
0x1a41   :  { %v2490_v44 = vadd.f32 %v3045_v42, %v2489_v43 }
0x1a43   :  { %3141 = vtanh.f32 %v2490_v44 }
0x1a48   :  { %v2491_v45 = vpop.f32.mrf.mxu0 }
0x1a49   :  { %v3142_v52 = vpop.eup %3141 }
0x1a4a   :  { %v2494_v46 = vpack.c.bf16 %v3142_v52, %v3142_v52 }
0x1a4c   :  { %2952 = vmatmul.msk.bf16.vlgmr.msrb.gmra.mxu1 %vm52_vm0, %v2494_v46 }
0x1ac9   :  { %v2527_v48 = vpop.f32.mrf.mxu1 }
0x1aca   :  { %v2528_v49 = vadd.f32 %v3046_v47, %v2527_v48 }
0x1acc   :  { %2532 = vst.msk [vmem:[#allocation2] sm:$0x3] %vm2531_vm6, %v2528_v49 }
0x1acd   :  { %2543 = dma.vmem_to_hbm [thread:$0]  %s2539_s5, 32, %s2541_s26, [#allocation3]  }
0x1ad1   :  { %v2529_v53 = vpop.f32.mrf.mxu1 }
0x1ad2   :  { %3167 = dma.done.wait [#allocation3], 32  }
0x1ad3   :  { %3168 = vsyncadd [#allocation3], 4294967264 }
0x1ad4   :  { %2548 = vsyncpa [#allocation3], 1 }

</bundles_post_ra>
